<compile_context>
chip_gen: v7x
topology: tpu7x:2x2x1
jax: 0.10.0
libtpu: 0.0.40
codegen_flags: <defaults>
</compile_context>

<pallas_src>
import jax
import jax.numpy as jnp
from jax.experimental import pallas as pl
from jax.experimental.pallas import tpu as pltpu


def _round_up(x, m):
    return ((x + m - 1) // m) * m


def _fused_encoder_kernel(x_ref, w1, b1, w2, b2, w3, b3, w4, b4, o_ref):
    """Whole 4-layer MLP on VMEM-resident operands, no grid.

    Weights are bf16, biases f32, accumulation f32 (MXU-native on all gens).
    """
    h = jnp.dot(x_ref[...].astype(jnp.bfloat16), w1[...],
                preferred_element_type=jnp.float32) + b1[...]
    h = jnp.maximum(h, 0.0)
    h = jnp.dot(h.astype(jnp.bfloat16), w2[...],
                preferred_element_type=jnp.float32) + b2[...]
    h = jnp.maximum(h, 0.0)
    h = jnp.dot(h.astype(jnp.bfloat16), w3[...],
                preferred_element_type=jnp.float32) + b3[...]
    h = jnp.maximum(h, 0.0)
    h = jnp.dot(h.astype(jnp.bfloat16), w4[...],
                preferred_element_type=jnp.float32) + b4[...]
    o_ref[...] = h.astype(o_ref.dtype)


def init_encoder_params(input_dim, feature_dim, key):
    """Deterministic init matching the layer shapes of the PyTorch Encoder."""
    dims = [input_dim, 500, 500, 2000, feature_dim]
    params = []
    for i in range(4):
        key, wk, bk = jax.random.split(key, 3)
        fan_in, fan_out = dims[i], dims[i + 1]
        bound = 1.0 / jnp.sqrt(fan_in)
        # stored as (in, out) so the kernel computes x @ W (== PyTorch x @ W_t.T)
        w = jax.random.uniform(
            wk, (fan_in, fan_out), jnp.float32, minval=-bound, maxval=bound
        )
        b = jax.random.uniform(
            bk, (fan_out,), jnp.float32, minval=-bound, maxval=bound
        )
        params.append((w, b))
    return params


def pad_encoder_params(params, weight_dtype=jnp.bfloat16):
    """Pad once at init: lane dim to 128-mult for hidden layers only; the
    first layer keeps K = round_up(input_dim, 8) and the last layer keeps its
    true output width. Weights cast to bf16; biases stay f32 as (1, Np)."""
    padded = []
    n_layers = len(params)
    kp = _round_up(params[0][0].shape[0], 8)  # padded input width (sublane 8-mult)
    for i, (w, b) in enumerate(params):
        K, N = w.shape
        np_ = N if i == n_layers - 1 else _round_up(N, 128)
        wp = (
            jnp.zeros((kp, np_), jnp.float32).at[:K, :N].set(w).astype(weight_dtype)
        )
        bp = jnp.zeros((1, np_), jnp.float32).at[0, :N].set(b)
        padded.append((wp, bp))
        kp = np_  # next layer's K must match this layer's padded N
    return padded


@jax.jit
def encoder_forward(x, padded_params):
    """Encoder.forward: Linear->ReLU, Linear->ReLU, Linear->ReLU, Linear."""
    M, K = x.shape
    d0p = padded_params[0][0].shape[0]   # padded input dim (8-mult)
    dout = padded_params[-1][0].shape[1]  # true feature_dim (unpadded)
    Mp = _round_up(max(M, 1), 8)

    # pad the (small) activation input; zero cols contribute zero to the matmul
    xp = jnp.zeros((Mp, d0p), x.dtype).at[:M, :K].set(x)

    flat = []
    for w, b in padded_params:
        flat.append(w)
        flat.append(b)

    vmem = pl.BlockSpec(memory_space=pltpu.MemorySpace.VMEM)  # whole array in VMEM

    out = pl.pallas_call(
        _fused_encoder_kernel,
        out_shape=jax.ShapeDtypeStruct((Mp, dout), x.dtype),
        in_specs=[vmem] * (1 + len(flat)),
        out_specs=vmem,
        compiler_params=pltpu.CompilerParams(
            vmem_limit_bytes=16 * 1024 * 1024,
        ),
    )(xp, *flat)

    return out[:M]


if __name__ == "__main__":
    batch = 8
    input_dim = 64
    feature_dim = 32

    key = jax.random.PRNGKey(0)
    key, xkey = jax.random.split(key)
    x = jax.random.normal(xkey, (batch, input_dim), dtype=jnp.float32)

    params = init_encoder_params(input_dim, feature_dim, key)
    padded_params = pad_encoder_params(params)  # done once, outside the forward

    out = encoder_forward(x, padded_params)
    out = jax.block_until_ready(out)
    assert out.shape == (batch, feature_dim), out.shape

    # --- reference 1: exact simulation of the bf16-weight kernel path -------
    Mp = _round_up(batch, 8)
    d0p = padded_params[0][0].shape[0]
    ref_bf16 = jnp.zeros((Mp, d0p), jnp.float32).at[:batch, :input_dim].set(x)
    for i, (wp, bp) in enumerate(padded_params):
        ref_bf16 = (
            jnp.dot(ref_bf16.astype(jnp.bfloat16), wp,
                    preferred_element_type=jnp.float32) + bp
        )
        if i < 3:
            ref_bf16 = jnp.maximum(ref_bf16, 0.0)
    ref_bf16 = ref_bf16[:batch]
    assert jnp.allclose(out, ref_bf16, atol=2e-3, rtol=2e-3), (
        float(jnp.max(jnp.abs(out - ref_bf16)))
    )

    # --- reference 2: plain fp32 JAX (unpadded weights), loose tolerance ----
    ref = x
    for i, (w, b) in enumerate(params):
        ref = ref @ w + b
        if i < 3:
            ref = jnp.maximum(ref, 0.0)
    assert jnp.allclose(out, ref, atol=5e-2, rtol=5e-2), (
        float(jnp.max(jnp.abs(out - ref)))
    )

    print("KERNEL_OK")
</pallas_src>

<mosaic_0001>
module attributes {stable_mosaic.version = 11 : i64} {
  func.func @_fused_encoder_kernel(%arg0: memref<8x64xf32, #tpu.memory_space<vmem>>, %arg1: memref<64x512xbf16, #tpu.memory_space<vmem>>, %arg2: memref<1x512xf32, #tpu.memory_space<vmem>>, %arg3: memref<512x512xbf16, #tpu.memory_space<vmem>>, %arg4: memref<1x512xf32, #tpu.memory_space<vmem>>, %arg5: memref<512x2048xbf16, #tpu.memory_space<vmem>>, %arg6: memref<1x2048xf32, #tpu.memory_space<vmem>>, %arg7: memref<2048x32xbf16, #tpu.memory_space<vmem>>, %arg8: memref<1x32xf32, #tpu.memory_space<vmem>>, %arg9: memref<8x32xf32, #tpu.memory_space<vmem>>) attributes {dimension_semantics = [], scalar_prefetch = 0 : i64, scratch_operands = 0 : i64, tpu.core_type = #tpu.core_type<tc>} {
    %c0 = arith.constant 0 : index
    %c0_0 = arith.constant 0 : index
    %0 = vector.load %arg0[%c0, %c0_0] : memref<8x64xf32, #tpu.memory_space<vmem>>, vector<8x64xf32>
    %1 = arith.truncf %0 : vector<8x64xf32> to vector<8x64xbf16>
    %c0_1 = arith.constant 0 : index
    %c0_2 = arith.constant 0 : index
    %2 = vector.load %arg1[%c0_1, %c0_2] : memref<64x512xbf16, #tpu.memory_space<vmem>>, vector<64x512xbf16>
    %cst = arith.constant dense<0.000000e+00> : vector<8x512xf32>
    %3 = tpu.matmul %1, %2, %cst {dimension_numbers = #tpu.dot_dimension_numbers<[1], [0], [0], [1], [0, 0, 1, 1], [], []>} : vector<8x64xbf16>, vector<64x512xbf16>, vector<8x512xf32> -> vector<8x512xf32>
    %c0_3 = arith.constant 0 : index
    %c0_4 = arith.constant 0 : index
    %4 = vector.load %arg2[%c0_3, %c0_4] : memref<1x512xf32, #tpu.memory_space<vmem>>, vector<1x512xf32>
    %5 = vector.broadcast %4 : vector<1x512xf32> to vector<8x512xf32>
    %6 = arith.addf %3, %5 : vector<8x512xf32>
    %cst_5 = arith.constant 0.000000e+00 : f32
    %7 = vector.broadcast %cst_5 : f32 to vector<8x512xf32>
    %8 = arith.maximumf %6, %7 : vector<8x512xf32>
    %9 = arith.truncf %8 : vector<8x512xf32> to vector<8x512xbf16>
    %c0_6 = arith.constant 0 : index
    %c0_7 = arith.constant 0 : index
    %10 = vector.load %arg3[%c0_6, %c0_7] : memref<512x512xbf16, #tpu.memory_space<vmem>>, vector<512x512xbf16>
    %cst_8 = arith.constant dense<0.000000e+00> : vector<8x512xf32>
    %11 = tpu.matmul %9, %10, %cst_8 {dimension_numbers = #tpu.dot_dimension_numbers<[1], [0], [0], [1], [0, 0, 1, 1], [], []>} : vector<8x512xbf16>, vector<512x512xbf16>, vector<8x512xf32> -> vector<8x512xf32>
    %c0_9 = arith.constant 0 : index
    %c0_10 = arith.constant 0 : index
    %12 = vector.load %arg4[%c0_9, %c0_10] : memref<1x512xf32, #tpu.memory_space<vmem>>, vector<1x512xf32>
    %13 = vector.broadcast %12 : vector<1x512xf32> to vector<8x512xf32>
    %14 = arith.addf %11, %13 : vector<8x512xf32>
    %cst_11 = arith.constant 0.000000e+00 : f32
    %15 = vector.broadcast %cst_11 : f32 to vector<8x512xf32>
    %16 = arith.maximumf %14, %15 : vector<8x512xf32>
    %17 = arith.truncf %16 : vector<8x512xf32> to vector<8x512xbf16>
    %c0_12 = arith.constant 0 : index
    %c0_13 = arith.constant 0 : index
    %18 = vector.load %arg5[%c0_12, %c0_13] : memref<512x2048xbf16, #tpu.memory_space<vmem>>, vector<512x2048xbf16>
    %cst_14 = arith.constant dense<0.000000e+00> : vector<8x2048xf32>
    %19 = tpu.matmul %17, %18, %cst_14 {dimension_numbers = #tpu.dot_dimension_numbers<[1], [0], [0], [1], [0, 0, 1, 1], [], []>} : vector<8x512xbf16>, vector<512x2048xbf16>, vector<8x2048xf32> -> vector<8x2048xf32>
    %c0_15 = arith.constant 0 : index
    %c0_16 = arith.constant 0 : index
    %20 = vector.load %arg6[%c0_15, %c0_16] : memref<1x2048xf32, #tpu.memory_space<vmem>>, vector<1x2048xf32>
    %21 = vector.broadcast %20 : vector<1x2048xf32> to vector<8x2048xf32>
    %22 = arith.addf %19, %21 : vector<8x2048xf32>
    %cst_17 = arith.constant 0.000000e+00 : f32
    %23 = vector.broadcast %cst_17 : f32 to vector<8x2048xf32>
    %24 = arith.maximumf %22, %23 : vector<8x2048xf32>
    %25 = arith.truncf %24 : vector<8x2048xf32> to vector<8x2048xbf16>
    %c0_18 = arith.constant 0 : index
    %c0_19 = arith.constant 0 : index
    %26 = vector.load %arg7[%c0_18, %c0_19] : memref<2048x32xbf16, #tpu.memory_space<vmem>>, vector<2048x32xbf16>
    %cst_20 = arith.constant dense<0.000000e+00> : vector<8x32xf32>
    %27 = tpu.matmul %25, %26, %cst_20 {dimension_numbers = #tpu.dot_dimension_numbers<[1], [0], [0], [1], [0, 0, 1, 1], [], []>} : vector<8x2048xbf16>, vector<2048x32xbf16>, vector<8x32xf32> -> vector<8x32xf32>
    %c0_21 = arith.constant 0 : index
    %c0_22 = arith.constant 0 : index
    %28 = vector.load %arg8[%c0_21, %c0_22] : memref<1x32xf32, #tpu.memory_space<vmem>>, vector<1x32xf32>
    %29 = vector.broadcast %28 : vector<1x32xf32> to vector<8x32xf32>
    %30 = arith.addf %27, %29 : vector<8x32xf32>
    %c0_23 = arith.constant 0 : index
    %c0_24 = arith.constant 0 : index
    %31 = vector.load %arg9[%c0_23, %c0_24] : memref<8x32xf32, #tpu.memory_space<vmem>>, vector<8x32xf32>
    tpu.vector_store %arg9[%c0_23, %c0_24], %30 {strides = array<i32>} : memref<8x32xf32, #tpu.memory_space<vmem>>, vector<8x32xf32>,
    return
  }
}

</mosaic_0001>

<bundles_post_ra>
// kernel: encoder_forward.1
= control target key start
LH: loop header
LB: loop body
LE: loop exit
PB: predicated region body
PF: predicated region fallthrough
CT: control target
= control target key end

     0   :  { %14 = vsyncpa [#allocation3], 0  ;;  %s8826_s0 = inlined_call_operand.hbm [shape: f32[8,64], index: 0, kind: input, shape index: {}]   ;;  %s8827_s1 = inlined_call_operand.hbm [shape: bf16[64,512], index: 1, kind: input, shape index: {}]   ;;  %s8828_s2 = inlined_call_operand.hbm [shape: f32[1,512], index: 2, kind: input, shape index: {}]   ;;  %s8829_s3 = inlined_call_operand.hbm [shape: bf16[512,512], index: 3, kind: input, shape index: {}]   ;;  %s8830_s4 = inlined_call_operand.hbm [shape: f32[1,512], index: 4, kind: input, shape index: {}]   ;;  %s8831_s5 = inlined_call_operand.hbm [shape: bf16[512,2048], index: 5, kind: input, shape index: {}]   ;;  %s8832_s6 = inlined_call_operand.hbm [shape: f32[1,2048], index: 6, kind: input, shape index: {}]   ;;  %s8833_s7 = inlined_call_operand.vmem [shape: bf16[2048,32], index: 7, kind: input, shape index: {}]   ;;  %s8834_s8 = inlined_call_operand.hbm [shape: f32[1,32], index: 8, kind: input, shape index: {}]   ;;  %s8835_s9 = inlined_call_operand.hbm [shape: f32[8,32], index: 9, kind: output, shape index: {}]  }
   0x1   :  { %15 = vsyncpa [#allocation6], 0 }
   0x2   :  { %16 = vsyncpa [#allocation9], 0 }
   0x3   :  { %17 = vsyncpa [#allocation12], 0 }
   0x4   :  { %18 = vsyncpa [#allocation15], 0 }
   0x5   :  { %19 = vsyncpa [#allocation4], 0  ;;  %s8116_s30 = smov [#allocation5]   ;;  %s7906_s13 = scalar_lea.hbm %s8827_s1, 2048 }
   0x6   :  { %s35_s10 = sshll.u32 %s8116_s30, 4  ;;  %p7907_p0 = scmp.ne.s32.totalorder %s8827_s1, %s7906_s13  ;;  %s36_s10 = int_to_ptr.vmem [resolvable:$true] %s35_s10 }
   0x7   :  { %p7910_p1 = scmp.lt.u32.totalorder %s7906_s13, %s8827_s1 }
   0x9   :  { %p7912_p2 = pnand %p7910_p1, %p7907_p0 }
   0xb   :  { %7915 = shalt.err (!%p7912_p2)
}
   0xc   :  { %s7916_s18 = scalar_lea.vmem %s36_s10, 2048  ;;  %p7921_p4 = scmp.lt.s32.totalorder %s36_s10, %s36_s10 }
   0xd   :  { %p7917_p3 = scmp.ne.s32.totalorder %s36_s10, %s7916_s18  ;;  %p7922_p5 = scmp.lt.s32.totalorder %s7916_s18, %s7916_s18 }
   0xf   :  { %p7923_p6 = por %p7922_p5, %p7921_p4 }
  0x11   :  { %p7924_p7 = pnand %p7923_p6, %p7917_p3 }
  0x13   :  { %7927 = shalt.err (!%p7924_p7)
}
  0x14   :  { %s8117_s19 = smov 256   ;;  %s8118_s20 = smov 16  }
  0x15   :  { %41 = dma.hbm_to_vmem [thread:$0]  %s8827_s1, 2048, %s36_s10, [#allocation6], %s8117_s19, %s8117_s19, %s8118_s20  }
  0x16   :  { %s8119_s23 = smov [#allocation8]   ;;  %s8120_s25 = smov [#allocation11]  }
  0x17   :  { %s57_s24 = sshll.u32 %s8119_s23, 4  ;;  %s79_s26 = sshll.u32 %s8120_s25, 4  ;;  %s58_s24 = int_to_ptr.vmem [resolvable:$true] %s57_s24  ;;  %s80_s26 = int_to_ptr.vmem [resolvable:$true] %s79_s26 }
  0x18   :  { %s7928_s29 = scalar_lea.hbm %s8829_s3, 16384 }
  0x19   :  { %p7929_p8 = scmp.ne.s32.totalorder %s8829_s3, %s7928_s29  ;;  %p7932_p9 = scmp.lt.u32.totalorder %s7928_s29, %s8829_s3 }
  0x1b   :  { %p7934_p10 = pnand %p7932_p9, %p7929_p8 }
  0x1d   :  { %7937 = shalt.err (!%p7934_p10)
}
  0x1e   :  { %s7938_s1 = scalar_lea.vmem %s58_s24, 16384  ;;  %p7943_p12 = scmp.lt.s32.totalorder %s58_s24, %s58_s24 }
  0x1f   :  { %p7939_p11 = scmp.ne.s32.totalorder %s58_s24, %s7938_s1  ;;  %p7944_p13 = scmp.lt.s32.totalorder %s7938_s1, %s7938_s1 }
  0x21   :  { %p7945_p0 = por %p7944_p13, %p7943_p12 }
  0x23   :  { %p7946_p1 = pnand %p7945_p0, %p7939_p11 }
  0x25   :  { %7949 = shalt.err (!%p7946_p1)
}
  0x26   :  { %63 = dma.hbm_to_vmem [thread:$0]  %s8829_s3, 16384, %s58_s24, [#allocation9], %s8117_s19, %s8117_s19, %s8118_s20  }
  0x27   :  { %s7950_s17 = scalar_lea.hbm %s8831_s5, 65536 }
  0x28   :  { %p7951_p2 = scmp.ne.s32.totalorder %s8831_s5, %s7950_s17  ;;  %p7954_p3 = scmp.lt.u32.totalorder %s7950_s17, %s8831_s5 }
  0x2a   :  { %p7956_p4 = pnand %p7954_p3, %p7951_p2 }
  0x2c   :  { %7959 = shalt.err (!%p7956_p4)
}
  0x2d   :  { %s7960_s25 = scalar_lea.vmem %s80_s26, 65536  ;;  %p7965_p6 = scmp.lt.s32.totalorder %s80_s26, %s80_s26 }
  0x2e   :  { %p7961_p5 = scmp.ne.s32.totalorder %s80_s26, %s7960_s25  ;;  %p7966_p7 = scmp.lt.s32.totalorder %s7960_s25, %s7960_s25 }
  0x30   :  { %p7967_p8 = por %p7966_p7, %p7965_p6 }
  0x32   :  { %p7968_p9 = pnand %p7967_p8, %p7961_p5 }
  0x34   :  { %7971 = shalt.err (!%p7968_p9)
}
  0x35   :  { %s8121_s3 = smov 1024   ;;  %s8122_s19 = smov 64  }
  0x36   :  { %85 = dma.hbm_to_vmem [thread:$0]  %s8831_s5, 65536, %s80_s26, [#allocation12], %s8121_s3, %s8121_s3, %s8122_s19  }
  0x37   :  { %s8123_s27 = smov [#allocation2]   ;;  %s8124_s29 = smov [#allocation7]  }
  0x38   :  { %s26_s28 = sshll.u32 %s8123_s27, 4  ;;  %s48_s30 = sshll.u32 %s8124_s29, 4  ;;  %s27_s28 = int_to_ptr.vmem [resolvable:$true] %s26_s28  ;;  %s49_s30 = int_to_ptr.vmem [resolvable:$true] %s48_s30 }
  0x39   :  { %s7972_s13 = scalar_lea.hbm %s8826_s0, 128 }
  0x3a   :  { %p7973_p10 = scmp.ne.s32.totalorder %s8826_s0, %s7972_s13  ;;  %p7976_p11 = scmp.lt.u32.totalorder %s7972_s13, %s8826_s0 }
  0x3c   :  { %p7978_p12 = pnand %p7976_p11, %p7973_p10 }
  0x3e   :  { %7981 = shalt.err (!%p7978_p12)
}
  0x3f   :  { %s7982_s5 = scalar_lea.vmem %s27_s28, 128  ;;  %p7987_p0 = scmp.lt.s32.totalorder %s27_s28, %s27_s28 }
  0x40   :  { %p7983_p13 = scmp.ne.s32.totalorder %s27_s28, %s7982_s5  ;;  %p7988_p1 = scmp.lt.s32.totalorder %s7982_s5, %s7982_s5 }
  0x42   :  { %p7989_p2 = por %p7988_p1, %p7987_p0 }
  0x44   :  { %p7990_p3 = pnand %p7989_p2, %p7983_p13 }
  0x46   :  { %7993 = shalt.err (!%p7990_p3)
}
  0x47   :  { %29 = dma.hbm_to_vmem [thread:$0]  %s8826_s0, 128, %s27_s28, [#allocation3]  }
  0x48   :  { %s7994_s21 = scalar_lea.hbm %s8828_s2, 64 }
  0x49   :  { %p7995_p4 = scmp.ne.s32.totalorder %s8828_s2, %s7994_s21  ;;  %p7998_p5 = scmp.lt.u32.totalorder %s7994_s21, %s8828_s2 }
  0x4b   :  { %p8000_p6 = pnand %p7998_p5, %p7995_p4 }
  0x4d   :  { %8003 = shalt.err (!%p8000_p6)
}
  0x4e   :  { %s8004_s19 = scalar_lea.vmem %s49_s30, 64  ;;  %p8009_p8 = scmp.lt.s32.totalorder %s49_s30, %s49_s30 }
  0x4f   :  { %p8005_p7 = scmp.ne.s32.totalorder %s49_s30, %s8004_s19  ;;  %p8010_p9 = scmp.lt.s32.totalorder %s8004_s19, %s8004_s19 }
  0x51   :  { %p8011_p10 = por %p8010_p9, %p8009_p8 }
  0x53   :  { %p8012_p11 = pnand %p8011_p10, %p8005_p7 }
  0x55   :  { %8015 = shalt.err (!%p8012_p11)
}
  0x56   :  { %51 = dma.hbm_to_vmem [thread:$0]  %s8828_s2, 64, %s49_s30, [#allocation6]  }
  0x57   :  { %s8125_s24 = smov [#allocation10]   ;;  %s8126_s28 = smov [#allocation13]  }
  0x58   :  { %s70_s27 = sshll.u32 %s8125_s24, 4  ;;  %s92_s29 = sshll.u32 %s8126_s28, 4  ;;  %s71_s27 = int_to_ptr.vmem [resolvable:$true] %s70_s27  ;;  %s93_s29 = int_to_ptr.vmem [resolvable:$true] %s92_s29 }
  0x59   :  { %s8016_s13 = scalar_lea.hbm %s8830_s4, 64 }
  0x5a   :  { %p8017_p12 = scmp.ne.s32.totalorder %s8830_s4, %s8016_s13  ;;  %p8020_p13 = scmp.lt.u32.totalorder %s8016_s13, %s8830_s4 }
  0x5c   :  { %p8022_p0 = pnand %p8020_p13, %p8017_p12 }
  0x5e   :  { %8025 = shalt.err (!%p8022_p0)
}
  0x5f   :  { %s8026_s2 = scalar_lea.vmem %s71_s27, 64  ;;  %p8031_p2 = scmp.lt.s32.totalorder %s71_s27, %s71_s27 }
  0x60   :  { %p8027_p1 = scmp.ne.s32.totalorder %s71_s27, %s8026_s2  ;;  %p8032_p3 = scmp.lt.s32.totalorder %s8026_s2, %s8026_s2 }
  0x62   :  { %p8033_p4 = por %p8032_p3, %p8031_p2 }
  0x64   :  { %p8034_p5 = pnand %p8033_p4, %p8027_p1 }
  0x66   :  { %8037 = shalt.err (!%p8034_p5)
}
  0x67   :  { %73 = dma.hbm_to_vmem [thread:$0]  %s8830_s4, 64, %s71_s27, [#allocation9]  }
  0x68   :  { %s8038_s17 = scalar_lea.hbm %s8832_s6, 256 }
  0x69   :  { %p8039_p6 = scmp.ne.s32.totalorder %s8832_s6, %s8038_s17  ;;  %p8042_p7 = scmp.lt.u32.totalorder %s8038_s17, %s8832_s6 }
  0x6b   :  { %p8044_p8 = pnand %p8042_p7, %p8039_p6 }
  0x6d   :  { %8047 = shalt.err (!%p8044_p8)
}
  0x6e   :  { %s8048_s25 = scalar_lea.vmem %s93_s29, 256  ;;  %p8053_p10 = scmp.lt.s32.totalorder %s93_s29, %s93_s29 }
  0x6f   :  { %p8049_p9 = scmp.ne.s32.totalorder %s93_s29, %s8048_s25  ;;  %p8054_p11 = scmp.lt.s32.totalorder %s8048_s25, %s8048_s25 }
  0x71   :  { %p8055_p12 = por %p8054_p11, %p8053_p10 }
  0x73   :  { %p8056_p13 = pnand %p8055_p12, %p8049_p9 }
  0x75   :  { %8059 = shalt.err (!%p8056_p13)
}
  0x76   :  { %95 = dma.hbm_to_vmem [thread:$0]  %s8832_s6, 256, %s93_s29, [#allocation12]  }
  0x77   :  { %s8127_s19 = smov [#allocation14]   ;;  %s8060_s27 = scalar_lea.hbm %s8834_s8, 16 }
  0x78   :  { %s104_s0 = sshll.u32 %s8127_s19, 4  ;;  %p8061_p0 = scmp.ne.s32.totalorder %s8834_s8, %s8060_s27  ;;  %s105_s0 = int_to_ptr.vmem [resolvable:$true] %s104_s0 }
  0x79   :  { %p8064_p1 = scmp.lt.u32.totalorder %s8060_s27, %s8834_s8 }
  0x7b   :  { %p8066_p2 = pnand %p8064_p1, %p8061_p0 }
  0x7d   :  { %8069 = shalt.err (!%p8066_p2)
}
  0x7e   :  { %s8070_s1 = scalar_lea.vmem %s105_s0, 16  ;;  %s8074_s6 = scalar_lea.vmem %s105_s0, 32 }
  0x7f   :  { %p8071_p3 = scmp.ne.s32.totalorder %s105_s0, %s8070_s1  ;;  %p8075_p4 = scmp.lt.s32.totalorder %s105_s0, %s105_s0 }
  0x80   :  { %p8076_p5 = scmp.lt.s32.totalorder %s8074_s6, %s8070_s1 }
  0x82   :  { %p8077_p6 = por %p8076_p5, %p8075_p4 }
  0x84   :  { %p8078_p7 = pnand %p8077_p6, %p8071_p3 }
  0x86   :  { %8081 = shalt.err (!%p8078_p7)
}
  0x87   :  { %107 = dma.hbm_to_vmem [thread:$0]  %s8834_s8, 16, %s105_s0, [#allocation15]  }
  0x88   :  { %8104 = dma.done.wait [#allocation3], 128  }
  0x89   :  { %8105 = vsyncadd [#allocation3], 4294967168 }
  0x8a   :  { %8106 = dma.done.wait [#allocation6], 2112  }
  0x8b   :  { %8107 = vsyncadd [#allocation6], 4294965184 }
  0x8c   :  { %8108 = dma.done.wait [#allocation9], 16448  }
  0x8d   :  { %8109 = vsyncadd [#allocation9], 4294950848 }
  0x8e   :  { %8110 = dma.done.wait [#allocation12], 65792  }
  0x8f   :  { %8111 = vsyncadd [#allocation12], 4294901504 }
  0x90   :  { %8112 = dma.done.wait [#allocation15], 16  }
  0x91   :  { %8113 = vsyncadd [#allocation15], 4294967280  ;;  %v8128_v0 = vmov 0   ;;  %v7562_v1 = vld [vmem:[#allocation5 + $0x4] ss:$16 sps:$4 sm:$0xff]   ;;  %v133_v14 = vld [vmem:[#allocation2] sm:$0xff] }
  0x92   :  { %289 = vmatprep.mubr.bf16.mxu0 %v8128_v0  ;;  %330 = vmatprep.mubr.bf16.mxu1 %v8128_v0  ;;  %v7564_v2 = vld [vmem:[#allocation5] ss:$16 sps:$4 sm:$0xff]   ;;  %v7565_v3 = vld [vmem:[#allocation5 + $0x24] ss:$16 sps:$4 sm:$0xff]   ;;  %v7574_v7 = vld [vmem:[#allocation5 + $0xc] ss:$16 sps:$4 sm:$0xff]   ;;  %v134_v17 = vpack.c.bf16 %v133_v14, %v133_v14 }
  0x93   :  { %257 = vmatprep.subr.bf16.mxu0 %v7562_v1  ;;  %v7567_v4 = vld [vmem:[#allocation5 + $0x20] ss:$16 sps:$4 sm:$0xff]   ;;  %v7568_v5 = vld [vmem:[#allocation5 + $0x44] ss:$16 sps:$4 sm:$0xff]   ;;  %v7576_v8 = vld [vmem:[#allocation5 + $0x8] ss:$16 sps:$4 sm:$0xff]   ;;  %298 = vmatprep.subr.bf16.mxu1 %v7574_v7 }
  0x94   :  { %258 = vmatpush1.bf16.msra.mxu0 %v7564_v2  ;;  %v7570_v6 = vld [vmem:[#allocation5 + $0x40] ss:$16 sps:$4 sm:$0xff]   ;;  %v7577_v9 = vld [vmem:[#allocation5 + $0x2c] ss:$16 sps:$4 sm:$0xff]   ;;  %v7571_v10 = vld [vmem:[#allocation5 + $0x64] ss:$16 sps:$4 sm:$0xff]   ;;  %299 = vmatpush1.bf16.msra.mxu1 %v7576_v8 }
  0x95   :  { %259 = vmatprep.subr.bf16.mxu0 %v7565_v3  ;;  %v7579_v11 = vld [vmem:[#allocation5 + $0x28] ss:$16 sps:$4 sm:$0xff]   ;;  %v7573_v12 = vld [vmem:[#allocation5 + $0x60] ss:$16 sps:$4 sm:$0xff]   ;;  %300 = vmatprep.subr.bf16.mxu1 %v7577_v9  ;;  %v7580_v13 = vld [vmem:[#allocation5 + $0x4c] ss:$16 sps:$4 sm:$0xff]  }
  0x96   :  { %v7588_v15 = vld [vmem:[#allocation8 + $0x4] ss:$16 sps:$4 sm:$0xff]   ;;  %v7583_v18 = vld [vmem:[#allocation5 + $0x6c] ss:$16 sps:$4 sm:$0xff]   ;;  %vm253_vm0 = vcmask 523264   ;;  %vm6504_vm1 = vcmask 261120  }
  0x97   :  { %v7582_v16 = vld [vmem:[#allocation5 + $0x48] ss:$16 sps:$4 sm:$0xff]   ;;  %v7586_v19 = vld [vmem:[#allocation8] ss:$16 sps:$4 sm:$0xff]   ;;  %v7591_v22 = vld [vmem:[#allocation8 + $0xc] ss:$16 sps:$4 sm:$0xff]  }
  0x98   :  { %260 = vmatpush1.bf16.msra.mxu0 %v7567_v4  ;;  %301 = vmatpush1.bf16.msra.mxu1 %v7579_v11  ;;  %v7594_v20 = vld [vmem:[#allocation8 + $0x24] ss:$16 sps:$4 sm:$0xff]   ;;  %v7592_v23 = vld [vmem:[#allocation8 + $0x20] ss:$16 sps:$4 sm:$0xff]   ;;  %v7589_v25 = vld [vmem:[#allocation8 + $0x8] ss:$16 sps:$4 sm:$0xff]  }
  0x99   :  { %261 = vmatprep.subr.bf16.mxu0 %v7568_v5  ;;  %302 = vmatprep.subr.bf16.mxu1 %v7580_v13  ;;  %v7585_v21 = vld [vmem:[#allocation5 + $0x68] ss:$16 sps:$4 sm:$0xff]   ;;  %v7597_v26 = vld [vmem:[#allocation8 + $0x2c] ss:$16 sps:$4 sm:$0xff]   ;;  %v7598_v27 = vld [vmem:[#allocation8 + $0x40] ss:$16 sps:$4 sm:$0xff]  }
  0x9a   :  { %v7600_v24 = vld [vmem:[#allocation8 + $0x44] ss:$16 sps:$4 sm:$0xff]   ;;  %v7595_v29 = vld [vmem:[#allocation8 + $0x28] ss:$16 sps:$4 sm:$0xff]   ;;  %v7603_v30 = vld [vmem:[#allocation8 + $0x4c] ss:$16 sps:$4 sm:$0xff]  }
  0x9b   :  { %v7606_v28 = vld [vmem:[#allocation8 + $0x64] ss:$16 sps:$4 sm:$0xff]   ;;  %v7604_v31 = vld [vmem:[#allocation8 + $0x60] ss:$16 sps:$4 sm:$0xff]   ;;  %v7601_v33 = vld [vmem:[#allocation8 + $0x48] ss:$16 sps:$4 sm:$0xff]  }
  0x9c   :  { %262 = vmatpush1.bf16.msra.mxu0 %v7570_v6  ;;  %303 = vmatpush1.bf16.msra.mxu1 %v7582_v16  ;;  %v7612_v32 = vld [vmem:[#allocation8 + $0x84] ss:$16 sps:$4 sm:$0xff]   ;;  %v7609_v34 = vld [vmem:[#allocation8 + $0x6c] ss:$16 sps:$4 sm:$0xff]   ;;  %v7610_v35 = vld [vmem:[#allocation8 + $0x80] ss:$16 sps:$4 sm:$0xff]  }
  0x9d   :  { %263 = vmatprep.subr.bf16.mxu0 %v7571_v10  ;;  %304 = vmatprep.subr.bf16.mxu1 %v7583_v18  ;;  %v7618_v36 = vld [vmem:[#allocation8 + $0xa4] ss:$16 sps:$4 sm:$0xff]   ;;  %v7607_v37 = vld [vmem:[#allocation8 + $0x68] ss:$16 sps:$4 sm:$0xff]   ;;  %v7615_v38 = vld [vmem:[#allocation8 + $0x8c] ss:$16 sps:$4 sm:$0xff]  }
  0x9e   :  { %v7616_v39 = vld [vmem:[#allocation8 + $0xa0] ss:$16 sps:$4 sm:$0xff]   ;;  %v7624_v40 = vld [vmem:[#allocation8 + $0xc4] ss:$16 sps:$4 sm:$0xff]   ;;  %v7613_v41 = vld [vmem:[#allocation8 + $0x88] ss:$16 sps:$4 sm:$0xff]  }
  0x9f   :  { %v7621_v42 = vld [vmem:[#allocation8 + $0xac] ss:$16 sps:$4 sm:$0xff]   ;;  %v7622_v43 = vld [vmem:[#allocation8 + $0xc0] ss:$16 sps:$4 sm:$0xff]   ;;  %v7630_v44 = vld [vmem:[#allocation8 + $0xe4] ss:$16 sps:$4 sm:$0xff]  }
  0xa0   :  { %264 = vmatpush1.bf16.msra.mxu0 %v7573_v12  ;;  %305 = vmatpush1.bf16.msra.mxu1 %v7585_v21  ;;  %v7619_v45 = vld [vmem:[#allocation8 + $0xa8] ss:$16 sps:$4 sm:$0xff]   ;;  %v7627_v46 = vld [vmem:[#allocation8 + $0xcc] ss:$16 sps:$4 sm:$0xff]   ;;  %v7628_v47 = vld [vmem:[#allocation8 + $0xe0] ss:$16 sps:$4 sm:$0xff]   ;;  %v153_v21 = vlaneseq }
  0xa1   :  { %1137 = vmatprep.subr.bf16.mxu0 %v7588_v15  ;;  %1219 = vmatprep.subr.bf16.mxu1 %v7591_v22  ;;  %v7636_v48 = vld [vmem:[#allocation8 + $0x104] ss:$16 sps:$4 sm:$0xff]   ;;  %v7625_v49 = vld [vmem:[#allocation8 + $0xc8] ss:$16 sps:$4 sm:$0xff]   ;;  %v7633_v50 = vld [vmem:[#allocation8 + $0xec] ss:$16 sps:$4 sm:$0xff]  }
  0xa2   :  { %v7631_v51 = vld [vmem:[#allocation8 + $0xe8] ss:$16 sps:$4 sm:$0xff]   ;;  %v7634_v52 = vld [vmem:[#allocation8 + $0x100] ss:$16 sps:$4 sm:$0xff]   ;;  %v7639_v53 = vld [vmem:[#allocation8 + $0x10c] ss:$16 sps:$4 sm:$0xff]  }
  0xa3   :  { %6541 = vmatmul.mubr.msk.bf16.vlgmr.msra.gmra.mrb[0].mxu0 %vm253_vm0, %v134_v17  ;;  %6542 = vmatmul.mubr.msk.bf16.vlgmr.msra.gmra.mrb[0].mxu1 %vm253_vm0, %v134_v17  ;;  %v7642_v54 = vld [vmem:[#allocation8 + $0x124] ss:$16 sps:$4 sm:$0xff]   ;;  %v7640_v55 = vld [vmem:[#allocation8 + $0x120] ss:$16 sps:$4 sm:$0xff]   ;;  %v7637_v57 = vld [vmem:[#allocation8 + $0x108] ss:$16 sps:$4 sm:$0xff]  }
  0xa4   :  { %1138 = vmatpush1.bf16.msra.mxu0 %v7586_v19  ;;  %1220 = vmatpush1.bf16.msra.mxu1 %v7589_v25  ;;  %v7648_v56 = vld [vmem:[#allocation8 + $0x144] ss:$16 sps:$4 sm:$0xff]   ;;  %v7645_v58 = vld [vmem:[#allocation8 + $0x12c] ss:$16 sps:$4 sm:$0xff]   ;;  %v7646_v59 = vld [vmem:[#allocation8 + $0x140] ss:$16 sps:$4 sm:$0xff]  }
  0xa5   :  { %1139 = vmatprep.subr.bf16.mxu0 %v7594_v20  ;;  %1221 = vmatprep.subr.bf16.mxu1 %v7597_v26  ;;  %v7654_v60 = vld [vmem:[#allocation8 + $0x164] ss:$16 sps:$4 sm:$0xff]   ;;  %v7643_v61 = vld [vmem:[#allocation8 + $0x128] ss:$16 sps:$4 sm:$0xff]   ;;  %v7651_v62 = vld [vmem:[#allocation8 + $0x14c] ss:$16 sps:$4 sm:$0xff]  }
  0xa6   :  { %v7652_v63 = vld [vmem:[#allocation8 + $0x160] ss:$16 sps:$4 sm:$0xff]   ;;  %v7660_v0 = vld [vmem:[#allocation8 + $0x184] ss:$16 sps:$4 sm:$0xff]   ;;  %v7649_v1 = vld [vmem:[#allocation8 + $0x148] ss:$16 sps:$4 sm:$0xff]  }
  0xa7   :  { %v7657_v2 = vld [vmem:[#allocation8 + $0x16c] ss:$16 sps:$4 sm:$0xff]   ;;  %v7658_v3 = vld [vmem:[#allocation8 + $0x180] ss:$16 sps:$4 sm:$0xff]   ;;  %v7666_v4 = vld [vmem:[#allocation8 + $0x1a4] ss:$16 sps:$4 sm:$0xff]  }
  0xa8   :  { %1140 = vmatpush1.bf16.msra.mxu0 %v7592_v23  ;;  %1222 = vmatpush1.bf16.msra.mxu1 %v7595_v29  ;;  %v7655_v5 = vld [vmem:[#allocation8 + $0x168] ss:$16 sps:$4 sm:$0xff]   ;;  %v7663_v6 = vld [vmem:[#allocation8 + $0x18c] ss:$16 sps:$4 sm:$0xff]   ;;  %v7664_v7 = vld [vmem:[#allocation8 + $0x1a0] ss:$16 sps:$4 sm:$0xff]  }
  0xa9   :  { %1141 = vmatprep.subr.bf16.mxu0 %v7600_v24  ;;  %1223 = vmatprep.subr.bf16.mxu1 %v7603_v30  ;;  %v7661_v8 = vld [vmem:[#allocation8 + $0x188] ss:$16 sps:$4 sm:$0xff]   ;;  %v7669_v9 = vld [vmem:[#allocation8 + $0x1ac] ss:$16 sps:$4 sm:$0xff]   ;;  %v7672_v11 = vld [vmem:[#allocation8 + $0x1c4] ss:$16 sps:$4 sm:$0xff]  }
  0xaa   :  { %v7667_v10 = vld [vmem:[#allocation8 + $0x1a8] ss:$16 sps:$4 sm:$0xff]   ;;  %v7675_v12 = vld [vmem:[#allocation8 + $0x1cc] ss:$16 sps:$4 sm:$0xff]   ;;  %v7670_v13 = vld [vmem:[#allocation8 + $0x1c0] ss:$16 sps:$4 sm:$0xff]  }
  0xab   :  { %v7673_v14 = vld [vmem:[#allocation8 + $0x1c8] ss:$16 sps:$4 sm:$0xff]   ;;  %v7678_v15 = vld [vmem:[#allocation8 + $0x1e4] ss:$16 sps:$4 sm:$0xff]   ;;  %v7681_v16 = vld [vmem:[#allocation8 + $0x1ec] ss:$16 sps:$4 sm:$0xff]  }
  0xac   :  { %1142 = vmatpush1.bf16.msra.mxu0 %v7598_v27  ;;  %1224 = vmatpush1.bf16.msra.mxu1 %v7601_v33  ;;  %v7676_v17 = vld [vmem:[#allocation8 + $0x1e0] ss:$16 sps:$4 sm:$0xff]   ;;  %v7679_v18 = vld [vmem:[#allocation8 + $0x1e8] ss:$16 sps:$4 sm:$0xff]   ;;  %v7684_v19 = vld [vmem:[#allocation8 + $0x204] ss:$16 sps:$4 sm:$0xff]  }
  0xad   :  { %1143 = vmatprep.subr.bf16.mxu0 %v7606_v28  ;;  %1225 = vmatprep.subr.bf16.mxu1 %v7609_v34  ;;  %v7687_v20 = vld [vmem:[#allocation8 + $0x20c] ss:$16 sps:$4 sm:$0xff]   ;;  %v8278_v22 = vshrl.u32 %v153_v21, 7  ;;  %v7744_v21 = vld [vmem:[#allocation8 + $0x344] ss:$16 sps:$4 sm:$0xff]  }
  0xae   :  { %v8283_v24 = vld [vmem:[#allocation7] sm:$0xf] }
  0xaf   :  { %v8281_v23 = vsub.s32 0, %v8278_v22  ;;  %v8286_v25 = vsub.s32 1, %v8278_v22  ;;  %v8293_v29 = vsub.s32 3, %v8278_v22 }
  0xb0   :  { %1144 = vmatpush1.bf16.msra.mxu0 %v7604_v31  ;;  %1226 = vmatpush1.bf16.msra.mxu1 %v7607_v37 }
  0xb1   :  { %1145 = vmatprep.subr.bf16.mxu0 %v7612_v32  ;;  %1227 = vmatprep.subr.bf16.mxu1 %v7615_v38  ;;  %v156_v26 = vrot.slane %v8283_v24, %v8281_v23  ;;  %v160_v27 = vrot.slane %v8283_v24, %v8286_v25  ;;  %v168_v37 = vrot.slane %v8283_v24, %v8293_v29 }
  0xb4   :  { %1146 = vmatpush1.bf16.msra.mxu0 %v7610_v35  ;;  %1228 = vmatpush1.bf16.msra.mxu1 %v7613_v41 }
  0xb5   :  { %1147 = vmatprep.subr.bf16.mxu0 %v7618_v36  ;;  %1229 = vmatprep.subr.bf16.mxu1 %v7621_v42 }
  0xb8   :  { %1148 = vmatpush1.bf16.msra.mxu0 %v7616_v39  ;;  %1230 = vmatpush1.bf16.msra.mxu1 %v7619_v45  ;;  %v7682_v39 = vld [vmem:[#allocation8 + $0x200] ss:$16 sps:$4 sm:$0xff]  }
  0xb9   :  { %1149 = vmatprep.subr.bf16.mxu0 %v7624_v40  ;;  %1231 = vmatprep.subr.bf16.mxu1 %v7627_v46  ;;  %v7685_v40 = vld [vmem:[#allocation8 + $0x208] ss:$16 sps:$4 sm:$0xff]  }
  0xbc   :  { %1150 = vmatpush1.bf16.msra.mxu0 %v7622_v43  ;;  %1232 = vmatpush1.bf16.msra.mxu1 %v7625_v49  ;;  %v7690_v43 = vld [vmem:[#allocation8 + $0x224] ss:$16 sps:$4 sm:$0xff]   ;;  %v7688_v49 = vld [vmem:[#allocation8 + $0x220] ss:$16 sps:$4 sm:$0xff]  }
  0xbd   :  { %1151 = vmatprep.subr.bf16.mxu0 %v7630_v44  ;;  %1233 = vmatprep.subr.bf16.mxu1 %v7633_v50  ;;  %v7693_v44 = vld [vmem:[#allocation8 + $0x22c] ss:$16 sps:$4 sm:$0xff]   ;;  %v7691_v50 = vld [vmem:[#allocation8 + $0x228] ss:$16 sps:$4 sm:$0xff]  }
  0xc0   :  { %1152 = vmatpush1.bf16.msra.mxu0 %v7628_v47  ;;  %1234 = vmatpush1.bf16.msra.mxu1 %v7631_v51 }
  0xc1   :  { %1153 = vmatprep.subr.bf16.mxu0 %v7636_v48  ;;  %1235 = vmatprep.subr.bf16.mxu1 %v7639_v53  ;;  %v7699_v53 = vld [vmem:[#allocation8 + $0x24c] ss:$16 sps:$4 sm:$0xff]  }
  0xc4   :  { %1154 = vmatpush1.bf16.msra.mxu0 %v7634_v52  ;;  %1236 = vmatpush1.bf16.msra.mxu1 %v7637_v57  ;;  %v7696_v52 = vld [vmem:[#allocation8 + $0x244] ss:$16 sps:$4 sm:$0xff]  }
  0xc5   :  { %1155 = vmatprep.subr.bf16.mxu0 %v7642_v54  ;;  %1237 = vmatprep.subr.bf16.mxu1 %v7645_v58  ;;  %v7702_v57 = vld [vmem:[#allocation8 + $0x264] ss:$16 sps:$4 sm:$0xff]   ;;  %v7705_v58 = vld [vmem:[#allocation8 + $0x26c] ss:$16 sps:$4 sm:$0xff]  }
  0xc8   :  { %1156 = vmatpush1.bf16.msra.mxu0 %v7640_v55  ;;  %1238 = vmatpush1.bf16.msra.mxu1 %v7643_v61  ;;  %v7694_v55 = vld [vmem:[#allocation8 + $0x240] ss:$16 sps:$4 sm:$0xff]   ;;  %v7708_v61 = vld [vmem:[#allocation8 + $0x284] ss:$16 sps:$4 sm:$0xff]  }
  0xc9   :  { %1157 = vmatprep.subr.bf16.mxu0 %v7648_v56  ;;  %1239 = vmatprep.subr.bf16.mxu1 %v7651_v62  ;;  %v7697_v56 = vld [vmem:[#allocation8 + $0x248] ss:$16 sps:$4 sm:$0xff]   ;;  %v7711_v62 = vld [vmem:[#allocation8 + $0x28c] ss:$16 sps:$4 sm:$0xff]  }
  0xcc   :  { %1158 = vmatpush1.bf16.msra.mxu0 %v7646_v59  ;;  %1240 = vmatpush1.bf16.msra.mxu1 %v7649_v1  ;;  %v7700_v59 = vld [vmem:[#allocation8 + $0x260] ss:$16 sps:$4 sm:$0xff]   ;;  %v7714_v1 = vld [vmem:[#allocation8 + $0x2a4] ss:$16 sps:$4 sm:$0xff]  }
  0xcd   :  { %1159 = vmatprep.subr.bf16.mxu0 %v7654_v60  ;;  %1241 = vmatprep.subr.bf16.mxu1 %v7657_v2  ;;  %v7703_v60 = vld [vmem:[#allocation8 + $0x268] ss:$16 sps:$4 sm:$0xff]   ;;  %v7717_v2 = vld [vmem:[#allocation8 + $0x2ac] ss:$16 sps:$4 sm:$0xff]  }
  0xd0   :  { %1160 = vmatpush1.bf16.msra.mxu0 %v7652_v63  ;;  %1242 = vmatpush1.bf16.msra.mxu1 %v7655_v5  ;;  %v7706_v63 = vld [vmem:[#allocation8 + $0x280] ss:$16 sps:$4 sm:$0xff]   ;;  %v7720_v5 = vld [vmem:[#allocation8 + $0x2c4] ss:$16 sps:$4 sm:$0xff]  }
  0xd1   :  { %1161 = vmatprep.subr.bf16.mxu0 %v7660_v0  ;;  %1243 = vmatprep.subr.bf16.mxu1 %v7663_v6  ;;  %v7709_v0 = vld [vmem:[#allocation8 + $0x288] ss:$16 sps:$4 sm:$0xff]   ;;  %v7723_v6 = vld [vmem:[#allocation8 + $0x2cc] ss:$16 sps:$4 sm:$0xff]  }
  0xd4   :  { %1162 = vmatpush1.bf16.msra.mxu0 %v7658_v3  ;;  %1244 = vmatpush1.bf16.msra.mxu1 %v7661_v8  ;;  %v7712_v3 = vld [vmem:[#allocation8 + $0x2a0] ss:$16 sps:$4 sm:$0xff]   ;;  %v7721_v8 = vld [vmem:[#allocation8 + $0x2c8] ss:$16 sps:$4 sm:$0xff]  }
  0xd5   :  { %1163 = vmatprep.subr.bf16.mxu0 %v7666_v4  ;;  %1245 = vmatprep.subr.bf16.mxu1 %v7669_v9  ;;  %v7715_v4 = vld [vmem:[#allocation8 + $0x2a8] ss:$16 sps:$4 sm:$0xff]   ;;  %v7726_v9 = vld [vmem:[#allocation8 + $0x2e4] ss:$16 sps:$4 sm:$0xff]  }
  0xd8   :  { %1164 = vmatpush1.bf16.msra.mxu0 %v7664_v7  ;;  %1246 = vmatpush1.bf16.msra.mxu1 %v7667_v10  ;;  %v7718_v7 = vld [vmem:[#allocation8 + $0x2c0] ss:$16 sps:$4 sm:$0xff]   ;;  %v7729_v10 = vld [vmem:[#allocation8 + $0x2ec] ss:$16 sps:$4 sm:$0xff]  }
  0xd9   :  { %1165 = vmatprep.subr.bf16.mxu0 %v7672_v11  ;;  %1247 = vmatprep.subr.bf16.mxu1 %v7675_v12  ;;  %v7724_v11 = vld [vmem:[#allocation8 + $0x2e0] ss:$16 sps:$4 sm:$0xff]   ;;  %v7727_v12 = vld [vmem:[#allocation8 + $0x2e8] ss:$16 sps:$4 sm:$0xff]  }
  0xdc   :  { %1166 = vmatpush1.bf16.msra.mxu0 %v7670_v13  ;;  %1248 = vmatpush1.bf16.msra.mxu1 %v7673_v14  ;;  %v7732_v13 = vld [vmem:[#allocation8 + $0x304] ss:$16 sps:$4 sm:$0xff]   ;;  %v7735_v14 = vld [vmem:[#allocation8 + $0x30c] ss:$16 sps:$4 sm:$0xff]  }
  0xdd   :  { %1167 = vmatprep.subr.bf16.mxu0 %v7678_v15  ;;  %1249 = vmatprep.subr.bf16.mxu1 %v7681_v16  ;;  %v7730_v15 = vld [vmem:[#allocation8 + $0x300] ss:$16 sps:$4 sm:$0xff]   ;;  %v7733_v16 = vld [vmem:[#allocation8 + $0x308] ss:$16 sps:$4 sm:$0xff]  }
  0xe0   :  { %1168 = vmatpush1.bf16.msra.mxu0 %v7676_v17  ;;  %1250 = vmatpush1.bf16.msra.mxu1 %v7679_v18  ;;  %v7738_v17 = vld [vmem:[#allocation8 + $0x324] ss:$16 sps:$4 sm:$0xff]   ;;  %v7741_v18 = vld [vmem:[#allocation8 + $0x32c] ss:$16 sps:$4 sm:$0xff]  }
  0xe1   :  { %1178 = vmatprep.subr.bf16.mxu0 %v7684_v19  ;;  %1260 = vmatprep.subr.bf16.mxu1 %v7687_v20  ;;  %v7736_v19 = vld [vmem:[#allocation8 + $0x320] ss:$16 sps:$4 sm:$0xff]   ;;  %v7739_v20 = vld [vmem:[#allocation8 + $0x328] ss:$16 sps:$4 sm:$0xff]  }
 0x176   :  { %v291_v28 = vpop.f32.mrb[0].mxu0  ;;  %v8297_v41 = vpop.f32.mrb[0].mxu1 }
 0x177   :  { %v292_v30 = vadd.f32 %v291_v28, %v156_v26  ;;  %v293_v31 = vpop.f32.mrb[1].mxu0  ;;  %v334_v45 = vpop.f32.mrb[1].mxu1  ;;  %v7747_v26 = vld [vmem:[#allocation8 + $0x34c] ss:$16 sps:$4 sm:$0xff]   ;;  %v7745_v28 = vld [vmem:[#allocation8 + $0x348] ss:$16 sps:$4 sm:$0xff]  }
 0x178   :  { %v294_v32 = vadd.f32 %v293_v31, %v160_v27  ;;  %v295_v33 = vpop.f32.mrb[2].mxu0  ;;  %v335_v46 = vadd.f32 %v334_v45, %v168_v37  ;;  %v336_v47 = vpop.f32.mrb[2].mxu1  ;;  %v7742_v27 = vld [vmem:[#allocation8 + $0x340] ss:$16 sps:$4 sm:$0xff]   ;;  %v7753_v31 = vld [vmem:[#allocation8 + $0x36c] ss:$16 sps:$4 sm:$0xff]  }
 0x179   :  { %v339_v34 = vmax.f32 %v292_v30, 0.0  ;;  %v296_v35 = vpop.f32.mrb[3].mxu0  ;;  %v337_v48 = vpop.f32.mrb[3].mxu1  ;;  %v7750_v30 = vld [vmem:[#allocation8 + $0x364] ss:$16 sps:$4 sm:$0xff]  }
 0x17a   :  { %v340_v36 = vmax.f32 %v294_v32, 0.0  ;;  %v342_v51 = vmax.f32 %v335_v46, 0.0  ;;  %v7748_v32 = vld [vmem:[#allocation8 + $0x360] ss:$16 sps:$4 sm:$0xff]   ;;  %v7751_v33 = vld [vmem:[#allocation8 + $0x368] ss:$16 sps:$4 sm:$0xff]  }
 0x17b   :  { %v343_v42 = vpack.c.bf16 %v339_v34, %v339_v34  ;;  %v7756_v34 = vld [vmem:[#allocation8 + $0x384] ss:$16 sps:$4 sm:$0xff]   ;;  %v7759_v35 = vld [vmem:[#allocation8 + $0x38c] ss:$16 sps:$4 sm:$0xff]   ;;  %v7757_v37 = vld [vmem:[#allocation8 + $0x388] ss:$16 sps:$4 sm:$0xff]  }
 0x17c   :  { %v344_v38 = vpack.c.bf16 %v340_v36, %v340_v36  ;;  %v346_v54 = vpack.c.bf16 %v342_v51, %v342_v51  ;;  %v7754_v36 = vld [vmem:[#allocation8 + $0x380] ss:$16 sps:$4 sm:$0xff]   ;;  %v7768_v45 = vld [vmem:[#allocation8 + $0x3c4] ss:$16 sps:$4 sm:$0xff]   ;;  %v7771_v46 = vld [vmem:[#allocation8 + $0x3cc] ss:$16 sps:$4 sm:$0xff]  }
 0x17d   :  { %v7766_v47 = vld [vmem:[#allocation8 + $0x3c0] ss:$16 sps:$4 sm:$0xff]   ;;  %v7769_v48 = vld [vmem:[#allocation8 + $0x3c8] ss:$16 sps:$4 sm:$0xff]   ;;  %v7777_v51 = vld [vmem:[#allocation8 + $0x3ec] ss:$16 sps:$4 sm:$0xff]  }
 0x17e   :  { %1169 = vmatprep.mubr.bf16.mxu0 %v344_v38  ;;  %1251 = vmatprep.mubr.bf16.mxu1 %v344_v38  ;;  %v8300_v38 = vsub.s32 2, %v8278_v22 }
 0x17f   :  { %1170 = vmatmul.mubr.bf16.vlgmr.msra.gmra.mrb[4].mxu0 %v343_v42  ;;  %1252 = vmatmul.mubr.bf16.vlgmr.msra.gmra.mrb[4].mxu1 %v343_v42  ;;  %v7760_v42 = vld [vmem:[#allocation8 + $0x3a0] ss:$16 sps:$4 sm:$0xff]  }
 0x180   :  { %1179 = vmatpush1.bf16.msra.mxu0 %v7682_v39  ;;  %1261 = vmatpush1.bf16.msra.mxu1 %v7685_v40  ;;  %v7762_v39 = vld [vmem:[#allocation8 + $0x3a4] ss:$16 sps:$4 sm:$0xff]   ;;  %v7765_v40 = vld [vmem:[#allocation8 + $0x3ac] ss:$16 sps:$4 sm:$0xff]  }
 0x181   :  { %1180 = vmatprep.subr.bf16.mxu0 %v7690_v43  ;;  %1262 = vmatprep.subr.bf16.mxu1 %v7693_v44  ;;  %v7763_v43 = vld [vmem:[#allocation8 + $0x3a8] ss:$16 sps:$4 sm:$0xff]   ;;  %v164_v44 = vrot.slane %v8283_v24, %v8300_v38  ;;  %v7772_v24 = vld [vmem:[#allocation8 + $0x3e0] ss:$16 sps:$4 sm:$0xff]  }
 0x182   :  { %1210 = vmatprep.mubr.bf16.mxu0 %v346_v54  ;;  %1292 = vmatprep.mubr.bf16.mxu1 %v346_v54  ;;  %v1310_v54 = vld [vmem:[#allocation11 + $0x8] sm:$0xff] }
 0x184   :  { %1181 = vmatpush1.bf16.msra.mxu0 %v7688_v49  ;;  %1263 = vmatpush1.bf16.msra.mxu1 %v7691_v50  ;;  %v333_v49 = vadd.f32 %v8297_v41, %v164_v44  ;;  %v7774_v50 = vld [vmem:[#allocation8 + $0x3e4] ss:$16 sps:$4 sm:$0xff]   ;;  %v1326_v41 = vld [vmem:[#allocation11 + $0x88] sm:$0xff] }
 0x185   :  { %1182 = vmatprep.subr.bf16.mxu0 %v7696_v52  ;;  %1264 = vmatprep.subr.bf16.mxu1 %v7699_v53  ;;  %v1309_v52 = vld [vmem:[#allocation11] sm:$0xff] }
 0x186   :  { %v1317_v53 = vld [vmem:[#allocation11 + $0x40] sm:$0xff] }
 0x187   :  { %v1413_v44 = vld [vmem:[#allocation11 + $0x340] sm:$0xff] }
 0x188   :  { %1183 = vmatpush1.bf16.msra.mxu0 %v7694_v55  ;;  %1265 = vmatpush1.bf16.msra.mxu1 %v7697_v56  ;;  %v1318_v55 = vld [vmem:[#allocation11 + $0x48] sm:$0xff]  ;;  %v7775_v56 = vld [vmem:[#allocation8 + $0x3e8] ss:$16 sps:$4 sm:$0xff]  }
 0x189   :  { %1184 = vmatprep.subr.bf16.mxu0 %v7702_v57  ;;  %1266 = vmatprep.subr.bf16.mxu1 %v7705_v58  ;;  %v341_v57 = vmax.f32 %v333_v49, 0.0  ;;  %v6672_v58 = vcombine.high %v1309_v52, %v1317_v53 }
 0x18c   :  { %1185 = vmatpush1.bf16.msra.mxu0 %v7700_v59  ;;  %1267 = vmatpush1.bf16.msra.mxu1 %v7703_v60  ;;  %v6674_v59 = vcombine.high %v1310_v54, %v1318_v55  ;;  %v1325_v60 = vld [vmem:[#allocation11 + $0x80] sm:$0xff] }
 0x18d   :  { %1186 = vmatprep.subr.bf16.mxu0 %v7708_v61  ;;  %1268 = vmatprep.subr.bf16.mxu1 %v7711_v62  ;;  %v1333_v61 = vld [vmem:[#allocation11 + $0xc0] sm:$0xff]  ;;  %v1334_v62 = vld [vmem:[#allocation11 + $0xc8] sm:$0xff] }
 0x190   :  { %1187 = vmatpush1.bf16.msra.mxu0 %v7706_v63  ;;  %1269 = vmatpush1.bf16.msra.mxu1 %v7709_v0  ;;  %v6671_v63 = vcombine.low %v1309_v52, %v1317_v53  ;;  %v6673_v0 = vcombine.low %v1310_v54, %v1318_v55  ;;  %v1429_v52 = vld [vmem:[#allocation11 + $0x3c0] sm:$0xff]  ;;  %v1422_v53 = vld [vmem:[#allocation11 + $0x388] sm:$0xff] }
 0x191   :  { %1188 = vmatprep.subr.bf16.mxu0 %v7714_v1  ;;  %1270 = vmatprep.subr.bf16.mxu1 %v7717_v2  ;;  %v345_v1 = vpack.c.bf16 %v341_v57, %v341_v57  ;;  %v6688_v2 = vcombine.high %v1325_v60, %v1333_v61  ;;  %v1430_v54 = vld [vmem:[#allocation11 + $0x3c8] sm:$0xff] }
 0x192   :  { %v6786_v57 = vcombine.high %v1422_v53, %v1430_v54 }
 0x194   :  { %1189 = vmatpush1.bf16.msra.mxu0 %v7712_v3  ;;  %1271 = vmatpush1.bf16.msra.mxu1 %v7715_v4  ;;  %v6690_v3 = vcombine.high %v1326_v41, %v1334_v62  ;;  %v1341_v4 = vld [vmem:[#allocation11 + $0x100] sm:$0xff] }
 0x195   :  { %1190 = vmatprep.subr.bf16.mxu0 %v7720_v5  ;;  %1272 = vmatprep.subr.bf16.mxu1 %v7723_v6  ;;  %v1349_v5 = vld [vmem:[#allocation11 + $0x140] sm:$0xff]  ;;  %v1342_v6 = vld [vmem:[#allocation11 + $0x108] sm:$0xff] }
 0x198   :  { %1191 = vmatpush1.bf16.msra.mxu0 %v7718_v7  ;;  %1273 = vmatpush1.bf16.msra.mxu1 %v7721_v8  ;;  %v1350_v7 = vld [vmem:[#allocation11 + $0x148] sm:$0xff]  ;;  %v6687_v8 = vcombine.low %v1325_v60, %v1333_v61 }
 0x199   :  { %1192 = vmatprep.subr.bf16.mxu0 %v7726_v9  ;;  %1274 = vmatprep.subr.bf16.mxu1 %v7729_v10  ;;  %v6689_v9 = vcombine.low %v1326_v41, %v1334_v62  ;;  %v6704_v10 = vcombine.high %v1341_v4, %v1349_v5  ;;  %v1438_v60 = vld [vmem:[#allocation11 + $0x408] sm:$0xff]  ;;  %v6785_v62 = vcombine.low %v1422_v53, %v1430_v54 }
 0x19a   :  { %v1446_v61 = vld [vmem:[#allocation11 + $0x448] sm:$0xff] }
 0x19b   :  { %v1542_v54 = vld [vmem:[#allocation11 + $0x748] sm:$0xff] }
 0x19c   :  { %1193 = vmatpush1.bf16.msra.mxu0 %v7724_v11  ;;  %1275 = vmatpush1.bf16.msra.mxu1 %v7727_v12  ;;  %v6706_v11 = vcombine.high %v1342_v6, %v1350_v7  ;;  %v1357_v12 = vld [vmem:[#allocation11 + $0x180] sm:$0xff] }
 0x19d   :  { %1194 = vmatprep.subr.bf16.mxu0 %v7732_v13  ;;  %1276 = vmatprep.subr.bf16.mxu1 %v7735_v14  ;;  %v1365_v13 = vld [vmem:[#allocation11 + $0x1c0] sm:$0xff]  ;;  %v1358_v14 = vld [vmem:[#allocation11 + $0x188] sm:$0xff] }
 0x1a0   :  { %1195 = vmatpush1.bf16.msra.mxu0 %v7730_v15  ;;  %1277 = vmatpush1.bf16.msra.mxu1 %v7733_v16  ;;  %v1366_v15 = vld [vmem:[#allocation11 + $0x1c8] sm:$0xff]  ;;  %v6703_v16 = vcombine.low %v1341_v4, %v1349_v5 }
 0x1a1   :  { %1196 = vmatprep.subr.bf16.mxu0 %v7738_v17  ;;  %1278 = vmatprep.subr.bf16.mxu1 %v7741_v18  ;;  %v6705_v17 = vcombine.low %v1342_v6, %v1350_v7  ;;  %v6720_v18 = vcombine.high %v1357_v12, %v1365_v13  ;;  %v1462_v4 = vld [vmem:[#allocation11 + $0x4c8] sm:$0xff]  ;;  %v6801_v6 = vcombine.low %v1438_v60, %v1446_v61 }
 0x1a4   :  { %1197 = vmatpush1.bf16.msra.mxu0 %v7736_v19  ;;  %1279 = vmatpush1.bf16.msra.mxu1 %v7739_v20  ;;  %v6722_v19 = vcombine.high %v1358_v14, %v1366_v15  ;;  %v1373_v20 = vld [vmem:[#allocation11 + $0x200] sm:$0xff] }
 0x1a5   :  { %1198 = vmatprep.subr.bf16.mxu0 %v7744_v21  ;;  %1280 = vmatprep.subr.bf16.mxu1 %v7747_v26  ;;  %v1381_v21 = vld [vmem:[#allocation11 + $0x240] sm:$0xff]  ;;  %v1374_v26 = vld [vmem:[#allocation11 + $0x208] sm:$0xff] }
 0x1a8   :  { %1199 = vmatpush1.bf16.msra.mxu0 %v7742_v27  ;;  %1281 = vmatpush1.bf16.msra.mxu1 %v7745_v28  ;;  %v1382_v27 = vld [vmem:[#allocation11 + $0x248] sm:$0xff]  ;;  %v6719_v28 = vcombine.low %v1357_v12, %v1365_v13 }
 0x1a9   :  { %1200 = vmatprep.subr.bf16.mxu0 %v7750_v30  ;;  %1282 = vmatprep.subr.bf16.mxu1 %v7753_v31  ;;  %v6721_v30 = vcombine.low %v1358_v14, %v1366_v15  ;;  %v6736_v31 = vcombine.high %v1373_v20, %v1381_v21  ;;  %v1478_v12 = vld [vmem:[#allocation11 + $0x548] sm:$0xff] }
 0x1ac   :  { %1201 = vmatpush1.bf16.msra.mxu0 %v7748_v32  ;;  %1283 = vmatpush1.bf16.msra.mxu1 %v7751_v33  ;;  %v6738_v32 = vcombine.high %v1374_v26, %v1382_v27  ;;  %v1389_v33 = vld [vmem:[#allocation11 + $0x280] sm:$0xff] }
 0x1ad   :  { %1202 = vmatprep.subr.bf16.mxu0 %v7756_v34  ;;  %1284 = vmatprep.subr.bf16.mxu1 %v7759_v35  ;;  %v1397_v34 = vld [vmem:[#allocation11 + $0x2c0] sm:$0xff]  ;;  %v1390_v35 = vld [vmem:[#allocation11 + $0x288] sm:$0xff] }
 0x1b0   :  { %1203 = vmatpush1.bf16.msra.mxu0 %v7754_v36  ;;  %1285 = vmatpush1.bf16.msra.mxu1 %v7757_v37  ;;  %v1398_v36 = vld [vmem:[#allocation11 + $0x2c8] sm:$0xff]  ;;  %v6735_v37 = vcombine.low %v1373_v20, %v1381_v21 }
 0x1b1   :  { %1204 = vmatprep.subr.bf16.mxu0 %v7762_v39  ;;  %1286 = vmatprep.subr.bf16.mxu1 %v7765_v40  ;;  %v6737_v39 = vcombine.low %v1374_v26, %v1382_v27  ;;  %v6752_v40 = vcombine.high %v1389_v33, %v1397_v34  ;;  %v1494_v20 = vld [vmem:[#allocation11 + $0x5c8] sm:$0xff] }
 0x1b4   :  { %1205 = vmatpush1.bf16.msra.mxu0 %v7760_v42  ;;  %1287 = vmatpush1.bf16.msra.mxu1 %v7763_v43  ;;  %v6754_v42 = vcombine.high %v1390_v35, %v1398_v36  ;;  %v1405_v43 = vld [vmem:[#allocation11 + $0x300] sm:$0xff] }
 0x1b5   :  { %1206 = vmatprep.subr.bf16.mxu0 %v7768_v45  ;;  %1288 = vmatprep.subr.bf16.mxu1 %v7771_v46  ;;  %v1406_v45 = vld [vmem:[#allocation11 + $0x308] sm:$0xff]  ;;  %v6768_v49 = vcombine.high %v1405_v43, %v1413_v44  ;;  %v6767_v55 = vcombine.low %v1405_v43, %v1413_v44 }
 0x1b6   :  { %v1414_v46 = vld [vmem:[#allocation11 + $0x348] sm:$0xff] }
 0x1b7   :  { %v1526_v43 = vld [vmem:[#allocation11 + $0x6c8] sm:$0xff] }
 0x1b8   :  { %1207 = vmatpush1.bf16.msra.mxu0 %v7766_v47  ;;  %1289 = vmatpush1.bf16.msra.mxu1 %v7769_v48  ;;  %v6751_v47 = vcombine.low %v1389_v33, %v1397_v34  ;;  %v6753_v48 = vcombine.low %v1390_v35, %v1398_v36  ;;  %v1510_v33 = vld [vmem:[#allocation11 + $0x648] sm:$0xff] }
 0x1b9   :  { %1208 = vmatprep.subr.bf16.mxu0 %v7774_v50  ;;  %1290 = vmatprep.subr.bf16.mxu1 %v7777_v51  ;;  %v6770_v50 = vcombine.high %v1406_v45, %v1414_v46  ;;  %v1421_v51 = vld [vmem:[#allocation11 + $0x380] sm:$0xff] }
 0x1ba   :  { %v6783_v41 = vcombine.low %v1421_v51, %v1429_v52 }
 0x1bc   :  { %1209 = vmatpush1.bf16.msra.mxu0 %v7772_v24  ;;  %1291 = vmatpush1.bf16.msra.mxu1 %v7775_v56  ;;  %v6769_v24 = vcombine.low %v1406_v45, %v1414_v46  ;;  %v6784_v56 = vcombine.high %v1421_v51, %v1429_v52  ;;  %v1541_v51 = vld [vmem:[#allocation11 + $0x740] sm:$0xff]  ;;  %v1534_v52 = vld [vmem:[#allocation11 + $0x708] sm:$0xff] }
 0x1bd   :  { %4465 = vmatprep.subr.bf16.mxu0 %v6672_v58  ;;  %4547 = vmatprep.subr.bf16.mxu1 %v6674_v59  ;;  %v1437_v58 = vld [vmem:[#allocation11 + $0x400] sm:$0xff] }
 0x1be   :  { %v1445_v59 = vld [vmem:[#allocation11 + $0x440] sm:$0xff] }
 0x1bf   :  { %1211 = vmatmul.mubr.bf16.vlgmr.msra.gmra.mrb[4].mxu0 %v345_v1  ;;  %1293 = vmatmul.mubr.bf16.vlgmr.msra.gmra.mrb[4].mxu1 %v345_v1  ;;  %v1453_v1 = vld [vmem:[#allocation11 + $0x480] sm:$0xff]  ;;  %v6799_v5 = vcombine.low %v1437_v58, %v1445_v59 }
 0x1c0   :  { %4466 = vmatpush1.bf16.msra.mxu0 %v6671_v63  ;;  %4548 = vmatpush1.bf16.msra.mxu1 %v6673_v0  ;;  %v6800_v63 = vcombine.high %v1437_v58, %v1445_v59  ;;  %v6802_v0 = vcombine.high %v1438_v60, %v1446_v61  ;;  %v1557_v58 = vld [vmem:[#allocation11 + $0x7c0] sm:$0xff]  ;;  %v1550_v59 = vld [vmem:[#allocation11 + $0x788] sm:$0xff] }
 0x1c1   :  { %4467 = vmatprep.subr.bf16.mxu0 %v6688_v2  ;;  %4549 = vmatprep.subr.bf16.mxu1 %v6690_v3  ;;  %v1461_v2 = vld [vmem:[#allocation11 + $0x4c0] sm:$0xff]  ;;  %v1454_v3 = vld [vmem:[#allocation11 + $0x488] sm:$0xff] }
 0x1c2   :  { %v6816_v7 = vcombine.high %v1453_v1, %v1461_v2  ;;  %v6815_v13 = vcombine.low %v1453_v1, %v1461_v2  ;;  %v6817_v14 = vcombine.low %v1454_v3, %v1462_v4  ;;  %v1558_v61 = vld [vmem:[#allocation11 + $0x7c8] sm:$0xff]  ;;  %v1573_v1 = vld [vmem:[#allocation11 + $0x840] sm:$0xff] }
 0x1c3   :  { %v1566_v2 = vld [vmem:[#allocation11 + $0x808] sm:$0xff] }
 0x1c4   :  { %4468 = vmatpush1.bf16.msra.mxu0 %v6687_v8  ;;  %4550 = vmatpush1.bf16.msra.mxu1 %v6689_v9  ;;  %v6818_v8 = vcombine.high %v1454_v3, %v1462_v4  ;;  %v1469_v9 = vld [vmem:[#allocation11 + $0x500] sm:$0xff]  ;;  %v1574_v4 = vld [vmem:[#allocation11 + $0x848] sm:$0xff] }
 0x1c5   :  { %4469 = vmatprep.subr.bf16.mxu0 %v6704_v10  ;;  %4551 = vmatprep.subr.bf16.mxu1 %v6706_v11  ;;  %v1477_v10 = vld [vmem:[#allocation11 + $0x540] sm:$0xff]  ;;  %v1470_v11 = vld [vmem:[#allocation11 + $0x508] sm:$0xff] }
 0x1c6   :  { %v6832_v15 = vcombine.high %v1469_v9, %v1477_v10  ;;  %v6831_v21 = vcombine.low %v1469_v9, %v1477_v10  ;;  %v6833_v26 = vcombine.low %v1470_v11, %v1478_v12 }
 0x1c8   :  { %4470 = vmatpush1.bf16.msra.mxu0 %v6703_v16  ;;  %4552 = vmatpush1.bf16.msra.mxu1 %v6705_v17  ;;  %v6834_v16 = vcombine.high %v1470_v11, %v1478_v12  ;;  %v1485_v17 = vld [vmem:[#allocation11 + $0x580] sm:$0xff] }
 0x1c9   :  { %4471 = vmatprep.subr.bf16.mxu0 %v6720_v18  ;;  %4553 = vmatprep.subr.bf16.mxu1 %v6722_v19  ;;  %v1493_v18 = vld [vmem:[#allocation11 + $0x5c0] sm:$0xff]  ;;  %v1486_v19 = vld [vmem:[#allocation11 + $0x588] sm:$0xff] }
 0x1ca   :  { %v6848_v27 = vcombine.high %v1485_v17, %v1493_v18  ;;  %v6847_v34 = vcombine.low %v1485_v17, %v1493_v18  ;;  %v6849_v35 = vcombine.low %v1486_v19, %v1494_v20 }
 0x1cc   :  { %4472 = vmatpush1.bf16.msra.mxu0 %v6719_v28  ;;  %4554 = vmatpush1.bf16.msra.mxu1 %v6721_v30  ;;  %v6850_v28 = vcombine.high %v1486_v19, %v1494_v20  ;;  %v1501_v30 = vld [vmem:[#allocation11 + $0x600] sm:$0xff] }
 0x1cd   :  { %4473 = vmatprep.subr.bf16.mxu0 %v6736_v31  ;;  %4555 = vmatprep.subr.bf16.mxu1 %v6738_v32  ;;  %v1509_v31 = vld [vmem:[#allocation11 + $0x640] sm:$0xff]  ;;  %v1502_v32 = vld [vmem:[#allocation11 + $0x608] sm:$0xff] }
 0x1ce   :  { %v6864_v36 = vcombine.high %v1501_v30, %v1509_v31  ;;  %v6863_v44 = vcombine.low %v1501_v30, %v1509_v31  ;;  %v6865_v45 = vcombine.low %v1502_v32, %v1510_v33  ;;  %v1581_v30 = vld [vmem:[#allocation11 + $0x880] sm:$0xff] }
 0x1d0   :  { %4474 = vmatpush1.bf16.msra.mxu0 %v6735_v37  ;;  %4556 = vmatpush1.bf16.msra.mxu1 %v6737_v39  ;;  %v6866_v37 = vcombine.high %v1502_v32, %v1510_v33  ;;  %v1517_v39 = vld [vmem:[#allocation11 + $0x680] sm:$0xff]  ;;  %v1582_v33 = vld [vmem:[#allocation11 + $0x888] sm:$0xff] }
 0x1d1   :  { %4475 = vmatprep.subr.bf16.mxu0 %v6752_v40  ;;  %4557 = vmatprep.subr.bf16.mxu1 %v6754_v42  ;;  %v1525_v40 = vld [vmem:[#allocation11 + $0x6c0] sm:$0xff]  ;;  %v1518_v42 = vld [vmem:[#allocation11 + $0x688] sm:$0xff] }
 0x1d2   :  { %v6880_v46 = vcombine.high %v1517_v39, %v1525_v40  ;;  %v1589_v32 = vld [vmem:[#allocation11 + $0x8c0] sm:$0xff] }
 0x1d4   :  { %4476 = vmatpush1.bf16.msra.mxu0 %v6751_v47  ;;  %4558 = vmatpush1.bf16.msra.mxu1 %v6753_v48  ;;  %v6882_v47 = vcombine.high %v1518_v42, %v1526_v43  ;;  %v6879_v48 = vcombine.low %v1517_v39, %v1525_v40  ;;  %v6944_v39 = vcombine.high %v1581_v30, %v1589_v32 }
 0x1d5   :  { %4477 = vmatprep.subr.bf16.mxu0 %v6768_v49  ;;  %4559 = vmatprep.subr.bf16.mxu1 %v6770_v50  ;;  %v6881_v49 = vcombine.low %v1518_v42, %v1526_v43  ;;  %v1533_v50 = vld [vmem:[#allocation11 + $0x700] sm:$0xff]  ;;  %v1598_v43 = vld [vmem:[#allocation11 + $0x908] sm:$0xff] }
 0x1d6   :  { %v6896_v53 = vcombine.high %v1533_v50, %v1541_v51  ;;  %v1605_v42 = vld [vmem:[#allocation11 + $0x940] sm:$0xff] }
 0x1d8   :  { %4478 = vmatpush1.bf16.msra.mxu0 %v6767_v55  ;;  %4560 = vmatpush1.bf16.msra.mxu1 %v6769_v24  ;;  %v6895_v55 = vcombine.low %v1533_v50, %v1541_v51  ;;  %v6897_v24 = vcombine.low %v1534_v52, %v1542_v54  ;;  %v1613_v50 = vld [vmem:[#allocation11 + $0x980] sm:$0xff] }
 0x1d9   :  { %4479 = vmatprep.subr.bf16.mxu0 %v6784_v56  ;;  %4561 = vmatprep.subr.bf16.mxu1 %v6786_v57  ;;  %v6898_v56 = vcombine.high %v1534_v52, %v1542_v54  ;;  %v1549_v57 = vld [vmem:[#allocation11 + $0x780] sm:$0xff]  ;;  %v1614_v52 = vld [vmem:[#allocation11 + $0x988] sm:$0xff] }
 0x1da   :  { %v6912_v60 = vcombine.high %v1549_v57, %v1557_v58  ;;  %v1621_v51 = vld [vmem:[#allocation11 + $0x9c0] sm:$0xff] }
 0x1dc   :  { %4480 = vmatpush1.bf16.msra.mxu0 %v6783_v41  ;;  %4562 = vmatpush1.bf16.msra.mxu1 %v6785_v62  ;;  %v6911_v41 = vcombine.low %v1549_v57, %v1557_v58  ;;  %v6913_v62 = vcombine.low %v1550_v59, %v1558_v61  ;;  %v1629_v57 = vld [vmem:[#allocation11 + $0xa00] sm:$0xff] }
 0x1dd   :  { %4481 = vmatprep.subr.bf16.mxu0 %v6800_v63  ;;  %4563 = vmatprep.subr.bf16.mxu1 %v6802_v0  ;;  %v6914_v63 = vcombine.high %v1550_v59, %v1558_v61  ;;  %v1565_v0 = vld [vmem:[#allocation11 + $0x800] sm:$0xff]  ;;  %v1630_v59 = vld [vmem:[#allocation11 + $0xa08] sm:$0xff]  ;;  %v6975_v61 = vcombine.low %v1613_v50, %v1621_v51 }
 0x1de   :  { %v6928_v3 = vcombine.high %v1565_v0, %v1573_v1  ;;  %v1637_v58 = vld [vmem:[#allocation11 + $0xa40] sm:$0xff] }
 0x1e0   :  { %4482 = vmatpush1.bf16.msra.mxu0 %v6799_v5  ;;  %4564 = vmatpush1.bf16.msra.mxu1 %v6801_v6  ;;  %v6927_v5 = vcombine.low %v1565_v0, %v1573_v1  ;;  %v6929_v6 = vcombine.low %v1566_v2, %v1574_v4  ;;  %v1645_v0 = vld [vmem:[#allocation11 + $0xa80] sm:$0xff] }
 0x1e1   :  { %4483 = vmatprep.subr.bf16.mxu0 %v6816_v7  ;;  %4565 = vmatprep.subr.bf16.mxu1 %v6818_v8  ;;  %v6930_v7 = vcombine.high %v1566_v2, %v1574_v4  ;;  %v8305_v8 = vld [vmem:[#allocation10] sm:$0xf]  ;;  %v1653_v1 = vld [vmem:[#allocation11 + $0xac0] sm:$0xff]  ;;  %v1646_v2 = vld [vmem:[#allocation11 + $0xa88] sm:$0xff]  ;;  %v6991_v4 = vcombine.low %v1629_v57, %v1637_v58 }
 0x1e2   :  { %v480_v9 = vrot.slane %v8305_v8, %v8281_v23  ;;  %v484_v10 = vrot.slane %v8305_v8, %v8286_v25  ;;  %v492_v11 = vrot.slane %v8305_v8, %v8293_v29 }
 0x1e4   :  { %4484 = vmatpush1.bf16.msra.mxu0 %v6815_v13  ;;  %4566 = vmatpush1.bf16.msra.mxu1 %v6817_v14 }
 0x1e5   :  { %4485 = vmatprep.subr.bf16.mxu0 %v6832_v15  ;;  %4567 = vmatprep.subr.bf16.mxu1 %v6834_v16 }
 0x1e8   :  { %4486 = vmatpush1.bf16.msra.mxu0 %v6831_v21  ;;  %4568 = vmatpush1.bf16.msra.mxu1 %v6833_v26 }
 0x1e9   :  { %4487 = vmatprep.subr.bf16.mxu0 %v6848_v27  ;;  %4569 = vmatprep.subr.bf16.mxu1 %v6850_v28 }
 0x1ec   :  { %4488 = vmatpush1.bf16.msra.mxu0 %v6847_v34  ;;  %4570 = vmatpush1.bf16.msra.mxu1 %v6849_v35  ;;  %v1590_v34 = vld [vmem:[#allocation11 + $0x8c8] sm:$0xff] }
 0x1ed   :  { %4489 = vmatprep.subr.bf16.mxu0 %v6864_v36  ;;  %4571 = vmatprep.subr.bf16.mxu1 %v6866_v37  ;;  %v1597_v37 = vld [vmem:[#allocation11 + $0x900] sm:$0xff]  ;;  %v6946_v40 = vcombine.high %v1582_v33, %v1590_v34 }
 0x1ee   :  { %v6959_v54 = vcombine.low %v1597_v37, %v1605_v42 }
 0x1f0   :  { %4490 = vmatpush1.bf16.msra.mxu0 %v6863_v44  ;;  %4572 = vmatpush1.bf16.msra.mxu1 %v6865_v45  ;;  %v1606_v44 = vld [vmem:[#allocation11 + $0x948] sm:$0xff] }
 0x1f1   :  { %4491 = vmatprep.subr.bf16.mxu0 %v6880_v46  ;;  %4573 = vmatprep.subr.bf16.mxu1 %v6882_v47  ;;  %v6943_v46 = vcombine.low %v1581_v30, %v1589_v32  ;;  %v6945_v47 = vcombine.low %v1582_v33, %v1590_v34  ;;  %v1701_v32 = vld [vmem:[#allocation11 + $0xc40] sm:$0xff]  ;;  %v1694_v33 = vld [vmem:[#allocation11 + $0xc08] sm:$0xff] }
 0x1f2   :  { %v1702_v34 = vld [vmem:[#allocation11 + $0xc48] sm:$0xff] }
 0x1f4   :  { %4492 = vmatpush1.bf16.msra.mxu0 %v6879_v48  ;;  %4574 = vmatpush1.bf16.msra.mxu1 %v6881_v49  ;;  %v6960_v48 = vcombine.high %v1597_v37, %v1605_v42  ;;  %v6962_v49 = vcombine.high %v1598_v43, %v1606_v44  ;;  %v7058_v42 = vcombine.high %v1694_v33, %v1702_v34 }
 0x1f5   :  { %4493 = vmatprep.subr.bf16.mxu0 %v6896_v53  ;;  %4575 = vmatprep.subr.bf16.mxu1 %v6898_v56  ;;  %v1622_v53 = vld [vmem:[#allocation11 + $0x9c8] sm:$0xff] }
 0x1f6   :  { %v6978_v56 = vcombine.high %v1614_v52, %v1622_v53 }
 0x1f8   :  { %4494 = vmatpush1.bf16.msra.mxu0 %v6895_v55  ;;  %4576 = vmatpush1.bf16.msra.mxu1 %v6897_v24  ;;  %v6961_v55 = vcombine.low %v1598_v43, %v1606_v44  ;;  %v6976_v24 = vcombine.high %v1613_v50, %v1621_v51  ;;  %v1709_v43 = vld [vmem:[#allocation11 + $0xc80] sm:$0xff] }
 0x1f9   :  { %4495 = vmatprep.subr.bf16.mxu0 %v6912_v60  ;;  %4577 = vmatprep.subr.bf16.mxu1 %v6914_v63  ;;  %v1638_v60 = vld [vmem:[#allocation11 + $0xa48] sm:$0xff]  ;;  %v1717_v44 = vld [vmem:[#allocation11 + $0xcc0] sm:$0xff] }
 0x1fa   :  { %v6994_v63 = vcombine.high %v1630_v59, %v1638_v60  ;;  %v7072_v50 = vcombine.high %v1709_v43, %v1717_v44 }
 0x1fc   :  { %4496 = vmatpush1.bf16.msra.mxu0 %v6911_v41  ;;  %4578 = vmatpush1.bf16.msra.mxu1 %v6913_v62  ;;  %v6977_v41 = vcombine.low %v1614_v52, %v1622_v53  ;;  %v6992_v62 = vcombine.high %v1629_v57, %v1637_v58  ;;  %v1725_v52 = vld [vmem:[#allocation11 + $0xd00] sm:$0xff] }
 0x1fd   :  { %4506 = vmatprep.subr.bf16.mxu0 %v6928_v3  ;;  %4588 = vmatprep.subr.bf16.mxu1 %v6930_v7  ;;  %v1654_v3 = vld [vmem:[#allocation11 + $0xac8] sm:$0xff]  ;;  %v1733_v53 = vld [vmem:[#allocation11 + $0xd40] sm:$0xff] }
 0x1fe   :  { %v7010_v7 = vcombine.high %v1646_v2, %v1654_v3  ;;  %v7088_v57 = vcombine.high %v1725_v52, %v1733_v53 }
 0x292   :  { %v1212_v12 = vpop.f32.mrb[4].mxu0  ;;  %v8313_v13 = vpop.f32.mrb[4].mxu1 }
 0x293   :  { %v7488_v14 = vadd.f32 %v1212_v12, %v480_v9  ;;  %v1214_v15 = vpop.f32.mrb[5].mxu0  ;;  %v1296_v16 = vpop.f32.mrb[5].mxu1  ;;  %v1661_v9 = vld [vmem:[#allocation11 + $0xb00] sm:$0xff]  ;;  %v1670_v12 = vld [vmem:[#allocation11 + $0xb48] sm:$0xff] }
 0x294   :  { %v7489_v17 = vadd.f32 %v1214_v15, %v484_v10  ;;  %v7491_v18 = vadd.f32 %v1296_v16, %v492_v11  ;;  %v1216_v19 = vpop.f32.mrb[6].mxu0  ;;  %v1298_v20 = vpop.f32.mrb[6].mxu1  ;;  %v1669_v10 = vld [vmem:[#allocation11 + $0xb40] sm:$0xff]  ;;  %v1662_v11 = vld [vmem:[#allocation11 + $0xb08] sm:$0xff]  ;;  %v7009_v15 = vcombine.low %v1646_v2, %v1654_v3 }
 0x295   :  { %v1301_v21 = vmax.f32 %v7488_v14, 0.0  ;;  %v1217_v26 = vpop.f32.mrb[7].mxu0  ;;  %v1299_v27 = vpop.f32.mrb[7].mxu1  ;;  %v7007_v14 = vcombine.low %v1645_v0, %v1653_v1  ;;  %v7024_v16 = vcombine.high %v1661_v9, %v1669_v10  ;;  %v1685_v19 = vld [vmem:[#allocation11 + $0xbc0] sm:$0xff]  ;;  %v1678_v20 = vld [vmem:[#allocation11 + $0xb88] sm:$0xff] }
 0x296   :  { %v1302_v28 = vmax.f32 %v7489_v17, 0.0  ;;  %v1304_v31 = vmax.f32 %v7491_v18, 0.0  ;;  %v7026_v17 = vcombine.high %v1662_v11, %v1670_v12  ;;  %v1677_v18 = vld [vmem:[#allocation11 + $0xb80] sm:$0xff]  ;;  %v7023_v26 = vcombine.low %v1661_v9, %v1669_v10 }
 0x297   :  { %v8317_v36 = vpack.c.bf16 %v1301_v21, %v1301_v21  ;;  %v1686_v21 = vld [vmem:[#allocation11 + $0xbc8] sm:$0xff]  ;;  %v7025_v27 = vcombine.low %v1662_v11, %v1670_v12  ;;  %v7039_v37 = vcombine.low %v1677_v18, %v1685_v19  ;;  %v1757_v2 = vld [vmem:[#allocation11 + $0xe00] sm:$0xff] }
 0x298   :  { %v8315_v35 = vpack.c.bf16 %v1302_v28, %v1302_v28  ;;  %v8321_v45 = vpack.c.bf16 %v1304_v31, %v1304_v31  ;;  %v7040_v28 = vcombine.high %v1677_v18, %v1685_v19  ;;  %v7042_v30 = vcombine.high %v1678_v20, %v1686_v21  ;;  %v1693_v31 = vld [vmem:[#allocation11 + $0xc00] sm:$0xff] }
 0x299   :  { %v1765_v3 = vld [vmem:[#allocation11 + $0xe40] sm:$0xff] }
 0x29a   :  { %4497 = vmatprep.mubr.bf16.mxu0 %v8315_v35  ;;  %4579 = vmatprep.mubr.bf16.mxu1 %v8315_v35  ;;  %v7120_v9 = vcombine.high %v1757_v2, %v1765_v3  ;;  %v1773_v11 = vld [vmem:[#allocation11 + $0xe80] sm:$0xff] }
 0x29b   :  { %4498 = vmatmul.mubr.bf16.vlgmr.msra.gmra.mrb[8].mxu0 %v8317_v36  ;;  %4580 = vmatmul.mubr.bf16.vlgmr.msra.gmra.mrb[8].mxu1 %v8317_v36  ;;  %v1781_v12 = vld [vmem:[#allocation11 + $0xec0] sm:$0xff] }
 0x29c   :  { %4507 = vmatpush1.bf16.msra.mxu0 %v6927_v5  ;;  %4589 = vmatpush1.bf16.msra.mxu1 %v6929_v6  ;;  %v6993_v5 = vcombine.low %v1630_v59, %v1638_v60  ;;  %v7008_v6 = vcombine.high %v1645_v0, %v1653_v1  ;;  %v1741_v59 = vld [vmem:[#allocation11 + $0xd80] sm:$0xff]  ;;  %v7136_v18 = vcombine.high %v1773_v11, %v1781_v12 }
 0x29d   :  { %4538 = vmatprep.mubr.bf16.mxu0 %v8321_v45  ;;  %4620 = vmatprep.mubr.bf16.mxu1 %v8321_v45  ;;  %v1749_v60 = vld [vmem:[#allocation11 + $0xdc0] sm:$0xff] }
 0x29e   :  { %4508 = vmatprep.subr.bf16.mxu0 %v6944_v39  ;;  %4590 = vmatprep.subr.bf16.mxu1 %v6946_v40  ;;  %v7041_v39 = vcombine.low %v1678_v20, %v1686_v21  ;;  %v7056_v40 = vcombine.high %v1693_v31, %v1701_v32  ;;  %v7104_v0 = vcombine.high %v1741_v59, %v1749_v60  ;;  %v1789_v20 = vld [vmem:[#allocation11 + $0xf00] sm:$0xff] }
 0x29f   :  { %v1797_v21 = vld [vmem:[#allocation11 + $0xf40] sm:$0xff] }
 0x2a0   :  { %4509 = vmatpush1.bf16.msra.mxu0 %v6943_v46  ;;  %4591 = vmatpush1.bf16.msra.mxu1 %v6945_v47  ;;  %v1710_v46 = vld [vmem:[#allocation11 + $0xc88] sm:$0xff] }
 0x2a1   :  { %4510 = vmatprep.subr.bf16.mxu0 %v6960_v48  ;;  %4592 = vmatprep.subr.bf16.mxu1 %v6962_v49  ;;  %v1718_v47 = vld [vmem:[#allocation11 + $0xcc8] sm:$0xff]  ;;  %v7055_v48 = vcombine.low %v1693_v31, %v1701_v32  ;;  %v7057_v49 = vcombine.low %v1694_v33, %v1702_v34  ;;  %v488_v31 = vrot.slane %v8305_v8, %v8300_v38  ;;  %v1805_v34 = vld [vmem:[#allocation11 + $0xf80] sm:$0xff]  ;;  %v1319_v8 = vld [vmem:[#allocation11 + $0x50] sm:$0xff] }
 0x2a2   :  { %v7074_v51 = vcombine.high %v1710_v46, %v1718_v47  ;;  %v7152_v32 = vcombine.high %v1789_v20, %v1797_v21 }
 0x2a4   :  { %4511 = vmatpush1.bf16.msra.mxu0 %v6959_v54  ;;  %4593 = vmatpush1.bf16.msra.mxu1 %v6961_v55  ;;  %v1726_v54 = vld [vmem:[#allocation11 + $0xd08] sm:$0xff] }
 0x2a5   :  { %4512 = vmatprep.subr.bf16.mxu0 %v6976_v24  ;;  %4594 = vmatprep.subr.bf16.mxu1 %v6978_v56  ;;  %v1734_v55 = vld [vmem:[#allocation11 + $0xd48] sm:$0xff]  ;;  %v7071_v24 = vcombine.low %v1709_v43, %v1717_v44  ;;  %v7073_v56 = vcombine.low %v1710_v46, %v1718_v47  ;;  %v7490_v44 = vadd.f32 %v8313_v13, %v488_v31  ;;  %v1328_v13 = vld [vmem:[#allocation11 + $0x98] sm:$0xff] }
 0x2a6   :  { %v7090_v58 = vcombine.high %v1726_v54, %v1734_v55  ;;  %v1392_v31 = vld [vmem:[#allocation11 + $0x298] sm:$0xff] }
 0x2a8   :  { %4513 = vmatpush1.bf16.msra.mxu0 %v6975_v61  ;;  %4595 = vmatpush1.bf16.msra.mxu1 %v6977_v41  ;;  %v1742_v61 = vld [vmem:[#allocation11 + $0xd88] sm:$0xff] }
 0x2a9   :  { %4514 = vmatprep.subr.bf16.mxu0 %v6992_v62  ;;  %4596 = vmatprep.subr.bf16.mxu1 %v6994_v63  ;;  %v1750_v41 = vld [vmem:[#allocation11 + $0xdc8] sm:$0xff]  ;;  %v7087_v62 = vcombine.low %v1725_v52, %v1733_v53  ;;  %v7089_v63 = vcombine.low %v1726_v54, %v1734_v55  ;;  %v1303_v53 = vmax.f32 %v7490_v44, 0.0  ;;  %v1416_v44 = vld [vmem:[#allocation11 + $0x358] sm:$0xff] }
 0x2aa   :  { %v7106_v1 = vcombine.high %v1742_v61, %v1750_v41 }
 0x2ac   :  { %4515 = vmatpush1.bf16.msra.mxu0 %v6991_v4  ;;  %4597 = vmatpush1.bf16.msra.mxu1 %v6993_v5  ;;  %v1758_v4 = vld [vmem:[#allocation11 + $0xe08] sm:$0xff] }
 0x2ad   :  { %4516 = vmatprep.subr.bf16.mxu0 %v7008_v6  ;;  %4598 = vmatprep.subr.bf16.mxu1 %v7010_v7  ;;  %v1766_v5 = vld [vmem:[#allocation11 + $0xe48] sm:$0xff]  ;;  %v7103_v6 = vcombine.low %v1741_v59, %v1749_v60  ;;  %v7105_v7 = vcombine.low %v1742_v61, %v1750_v41  ;;  %v8330_v59 = vpack.c.bf16 %v1303_v53, %v1303_v53 }
 0x2ae   :  { %v7122_v10 = vcombine.high %v1758_v4, %v1766_v5 }
 0x2b0   :  { %4517 = vmatpush1.bf16.msra.mxu0 %v7007_v14  ;;  %4599 = vmatpush1.bf16.msra.mxu1 %v7009_v15  ;;  %v1774_v14 = vld [vmem:[#allocation11 + $0xe88] sm:$0xff] }
 0x2b1   :  { %4518 = vmatprep.subr.bf16.mxu0 %v7024_v16  ;;  %4600 = vmatprep.subr.bf16.mxu1 %v7026_v17  ;;  %v1782_v15 = vld [vmem:[#allocation11 + $0xec8] sm:$0xff]  ;;  %v7119_v16 = vcombine.low %v1757_v2, %v1765_v3  ;;  %v7121_v17 = vcombine.low %v1758_v4, %v1766_v5 }
 0x2b2   :  { %v7138_v19 = vcombine.high %v1774_v14, %v1782_v15 }
 0x2b4   :  { %4519 = vmatpush1.bf16.msra.mxu0 %v7023_v26  ;;  %4601 = vmatpush1.bf16.msra.mxu1 %v7025_v27  ;;  %v1790_v26 = vld [vmem:[#allocation11 + $0xf08] sm:$0xff] }
 0x2b5   :  { %4520 = vmatprep.subr.bf16.mxu0 %v7040_v28  ;;  %4602 = vmatprep.subr.bf16.mxu1 %v7042_v30  ;;  %v1798_v27 = vld [vmem:[#allocation11 + $0xf48] sm:$0xff]  ;;  %v7135_v28 = vcombine.low %v1773_v11, %v1781_v12  ;;  %v7137_v30 = vcombine.low %v1774_v14, %v1782_v15 }
 0x2b6   :  { %v7154_v33 = vcombine.high %v1790_v26, %v1798_v27  ;;  %v7153_v43 = vcombine.low %v1790_v26, %v1798_v27 }
 0x2b8   :  { %4521 = vmatpush1.bf16.msra.mxu0 %v7039_v37  ;;  %4603 = vmatpush1.bf16.msra.mxu1 %v7041_v39  ;;  %v1813_v37 = vld [vmem:[#allocation11 + $0xfc0] sm:$0xff]  ;;  %v1806_v39 = vld [vmem:[#allocation11 + $0xf88] sm:$0xff] }
 0x2b9   :  { %4522 = vmatprep.subr.bf16.mxu0 %v7056_v40  ;;  %4604 = vmatprep.subr.bf16.mxu1 %v7058_v42  ;;  %v1814_v40 = vld [vmem:[#allocation11 + $0xfc8] sm:$0xff]  ;;  %v7151_v42 = vcombine.low %v1789_v20, %v1797_v21  ;;  %v7168_v46 = vcombine.high %v1805_v34, %v1813_v37 }
 0x2ba   :  { %v7170_v47 = vcombine.high %v1806_v39, %v1814_v40  ;;  %v7169_v52 = vcombine.low %v1806_v39, %v1814_v40  ;;  %v1407_v40 = vld [vmem:[#allocation11 + $0x310] sm:$0xff] }
 0x2bc   :  { %4523 = vmatpush1.bf16.msra.mxu0 %v7055_v48  ;;  %4605 = vmatpush1.bf16.msra.mxu1 %v7057_v49  ;;  %v1311_v48 = vld [vmem:[#allocation11 + $0x10] sm:$0xff]  ;;  %v1312_v49 = vld [vmem:[#allocation11 + $0x18] sm:$0xff] }
 0x2bd   :  { %4524 = vmatprep.subr.bf16.mxu0 %v7072_v50  ;;  %4606 = vmatprep.subr.bf16.mxu1 %v7074_v51  ;;  %v1320_v50 = vld [vmem:[#allocation11 + $0x58] sm:$0xff]  ;;  %v7167_v51 = vcombine.low %v1805_v34, %v1813_v37  ;;  %v6676_v54 = vcombine.high %v1311_v48, %v1319_v8 }
 0x2be   :  { %v6678_v55 = vcombine.high %v1312_v49, %v1320_v50  ;;  %v6677_v60 = vcombine.low %v1312_v49, %v1320_v50  ;;  %v1423_v49 = vld [vmem:[#allocation11 + $0x390] sm:$0xff] }
 0x2bf   :  { %v1431_v50 = vld [vmem:[#allocation11 + $0x3d0] sm:$0xff] }
 0x2c0   :  { %4525 = vmatpush1.bf16.msra.mxu0 %v7071_v24  ;;  %4607 = vmatpush1.bf16.msra.mxu1 %v7073_v56  ;;  %v1327_v24 = vld [vmem:[#allocation11 + $0x90] sm:$0xff] }
 0x2c1   :  { %4526 = vmatprep.subr.bf16.mxu0 %v7088_v57  ;;  %4608 = vmatprep.subr.bf16.mxu1 %v7090_v58  ;;  %v1335_v56 = vld [vmem:[#allocation11 + $0xd0] sm:$0xff]  ;;  %v1336_v57 = vld [vmem:[#allocation11 + $0xd8] sm:$0xff]  ;;  %v6675_v58 = vcombine.low %v1311_v48, %v1319_v8 }
 0x2c2   :  { %v6692_v61 = vcombine.high %v1327_v24, %v1335_v56  ;;  %v6694_v41 = vcombine.high %v1328_v13, %v1336_v57  ;;  %v6691_v2 = vcombine.low %v1327_v24, %v1335_v56  ;;  %v6693_v3 = vcombine.low %v1328_v13, %v1336_v57  ;;  %v1439_v56 = vld [vmem:[#allocation11 + $0x410] sm:$0xff]  ;;  %v1440_v57 = vld [vmem:[#allocation11 + $0x418] sm:$0xff] }
 0x2c3   :  { %v1447_v13 = vld [vmem:[#allocation11 + $0x450] sm:$0xff] }
 0x2c4   :  { %4527 = vmatpush1.bf16.msra.mxu0 %v7087_v62  ;;  %4609 = vmatpush1.bf16.msra.mxu1 %v7089_v63  ;;  %v1343_v62 = vld [vmem:[#allocation11 + $0x110] sm:$0xff] }
 0x2c5   :  { %4528 = vmatprep.subr.bf16.mxu0 %v7104_v0  ;;  %4610 = vmatprep.subr.bf16.mxu1 %v7106_v1  ;;  %v1351_v63 = vld [vmem:[#allocation11 + $0x150] sm:$0xff]  ;;  %v1344_v0 = vld [vmem:[#allocation11 + $0x118] sm:$0xff] }
 0x2c6   :  { %v1352_v1 = vld [vmem:[#allocation11 + $0x158] sm:$0xff]  ;;  %v6708_v4 = vcombine.high %v1343_v62, %v1351_v63  ;;  %v6707_v11 = vcombine.low %v1343_v62, %v1351_v63  ;;  %v1455_v63 = vld [vmem:[#allocation11 + $0x490] sm:$0xff] }
 0x2c7   :  { %v6710_v5 = vcombine.high %v1344_v0, %v1352_v1  ;;  %v6709_v12 = vcombine.low %v1344_v0, %v1352_v1  ;;  %v1463_v0 = vld [vmem:[#allocation11 + $0x4d0] sm:$0xff]  ;;  %v1456_v1 = vld [vmem:[#allocation11 + $0x498] sm:$0xff] }
 0x2c8   :  { %4529 = vmatpush1.bf16.msra.mxu0 %v7103_v6  ;;  %4611 = vmatpush1.bf16.msra.mxu1 %v7105_v7  ;;  %v1359_v6 = vld [vmem:[#allocation11 + $0x190] sm:$0xff] }
 0x2c9   :  { %4530 = vmatprep.subr.bf16.mxu0 %v7120_v9  ;;  %4612 = vmatprep.subr.bf16.mxu1 %v7122_v10  ;;  %v1367_v7 = vld [vmem:[#allocation11 + $0x1d0] sm:$0xff]  ;;  %v1360_v9 = vld [vmem:[#allocation11 + $0x198] sm:$0xff] }
 0x2ca   :  { %v1368_v10 = vld [vmem:[#allocation11 + $0x1d8] sm:$0xff]  ;;  %v6724_v14 = vcombine.high %v1359_v6, %v1367_v7  ;;  %v6723_v20 = vcombine.low %v1359_v6, %v1367_v7  ;;  %v1471_v7 = vld [vmem:[#allocation11 + $0x510] sm:$0xff] }
 0x2cb   :  { %v6726_v15 = vcombine.high %v1360_v9, %v1368_v10  ;;  %v6725_v21 = vcombine.low %v1360_v9, %v1368_v10  ;;  %v1479_v9 = vld [vmem:[#allocation11 + $0x550] sm:$0xff]  ;;  %v1472_v10 = vld [vmem:[#allocation11 + $0x518] sm:$0xff] }
 0x2cc   :  { %4531 = vmatpush1.bf16.msra.mxu0 %v7119_v16  ;;  %4613 = vmatpush1.bf16.msra.mxu1 %v7121_v17  ;;  %v1375_v16 = vld [vmem:[#allocation11 + $0x210] sm:$0xff] }
 0x2cd   :  { %4532 = vmatprep.subr.bf16.mxu0 %v7136_v18  ;;  %4614 = vmatprep.subr.bf16.mxu1 %v7138_v19  ;;  %v1383_v17 = vld [vmem:[#allocation11 + $0x250] sm:$0xff]  ;;  %v1376_v18 = vld [vmem:[#allocation11 + $0x218] sm:$0xff] }
 0x2ce   :  { %v1384_v19 = vld [vmem:[#allocation11 + $0x258] sm:$0xff]  ;;  %v6740_v26 = vcombine.high %v1375_v16, %v1383_v17 }
 0x2cf   :  { %v6742_v27 = vcombine.high %v1376_v18, %v1384_v19  ;;  %v6741_v34 = vcombine.low %v1376_v18, %v1384_v19  ;;  %v1495_v18 = vld [vmem:[#allocation11 + $0x5d0] sm:$0xff]  ;;  %v1488_v19 = vld [vmem:[#allocation11 + $0x598] sm:$0xff] }
 0x2d0   :  { %4533 = vmatpush1.bf16.msra.mxu0 %v7135_v28  ;;  %4615 = vmatpush1.bf16.msra.mxu1 %v7137_v30  ;;  %v1391_v28 = vld [vmem:[#allocation11 + $0x290] sm:$0xff] }
 0x2d1   :  { %4534 = vmatprep.subr.bf16.mxu0 %v7152_v32  ;;  %4616 = vmatprep.subr.bf16.mxu1 %v7154_v33  ;;  %v1399_v30 = vld [vmem:[#allocation11 + $0x2d0] sm:$0xff]  ;;  %v1400_v32 = vld [vmem:[#allocation11 + $0x2d8] sm:$0xff]  ;;  %v6739_v33 = vcombine.low %v1375_v16, %v1383_v17 }
 0x2d2   :  { %v6756_v37 = vcombine.high %v1391_v28, %v1399_v30  ;;  %v6758_v39 = vcombine.high %v1392_v31, %v1400_v32  ;;  %v1487_v17 = vld [vmem:[#allocation11 + $0x590] sm:$0xff] }
 0x2d4   :  { %4535 = vmatpush1.bf16.msra.mxu0 %v7151_v42  ;;  %4617 = vmatpush1.bf16.msra.mxu1 %v7153_v43  ;;  %v1415_v42 = vld [vmem:[#allocation11 + $0x350] sm:$0xff]  ;;  %v1408_v43 = vld [vmem:[#allocation11 + $0x318] sm:$0xff] }
 0x2d5   :  { %4536 = vmatprep.subr.bf16.mxu0 %v7168_v46  ;;  %4618 = vmatprep.subr.bf16.mxu1 %v7170_v47  ;;  %v6755_v46 = vcombine.low %v1391_v28, %v1399_v30  ;;  %v6757_v47 = vcombine.low %v1392_v31, %v1400_v32  ;;  %v6772_v48 = vcombine.high %v1407_v40, %v1415_v42  ;;  %v1503_v30 = vld [vmem:[#allocation11 + $0x610] sm:$0xff]  ;;  %v1504_v32 = vld [vmem:[#allocation11 + $0x618] sm:$0xff] }
 0x2d6   :  { %v6774_v8 = vcombine.high %v1408_v43, %v1416_v44  ;;  %v6771_v53 = vcombine.low %v1407_v40, %v1415_v42  ;;  %v1511_v31 = vld [vmem:[#allocation11 + $0x650] sm:$0xff] }
 0x2d7   :  { %v1519_v42 = vld [vmem:[#allocation11 + $0x690] sm:$0xff] }
 0x2d8   :  { %4537 = vmatpush1.bf16.msra.mxu0 %v7167_v51  ;;  %4619 = vmatpush1.bf16.msra.mxu1 %v7169_v52  ;;  %v1424_v51 = vld [vmem:[#allocation11 + $0x398] sm:$0xff] }
 0x2d9   :  { %4629 = vmatprep.subr.bf16.mxu0 %v6676_v54  ;;  %4711 = vmatprep.subr.bf16.mxu1 %v6678_v55  ;;  %v1432_v52 = vld [vmem:[#allocation11 + $0x3d8] sm:$0xff]  ;;  %v6773_v54 = vcombine.low %v1408_v43, %v1416_v44  ;;  %v6788_v55 = vcombine.high %v1423_v49, %v1431_v50  ;;  %v1527_v43 = vld [vmem:[#allocation11 + $0x6d0] sm:$0xff] }
 0x2da   :  { %v6790_v24 = vcombine.high %v1424_v51, %v1432_v52  ;;  %v1520_v44 = vld [vmem:[#allocation11 + $0x698] sm:$0xff] }
 0x2db   :  { %4539 = vmatmul.mubr.bf16.vlgmr.msra.gmra.mrb[8].mxu0 %v8330_v59  ;;  %4621 = vmatmul.mubr.bf16.vlgmr.msra.gmra.mrb[8].mxu1 %v8330_v59 }
 0x2dc   :  { %4630 = vmatpush1.bf16.msra.mxu0 %v6675_v58  ;;  %4661 = vmatprep.mubr.bf16.mxu0 %v8315_v35  ;;  %v1448_v58 = vld [vmem:[#allocation11 + $0x458] sm:$0xff] }
 0x2dd   :  { %4712 = vmatpush1.bf16.msra.mxu1 %v6677_v60  ;;  %4743 = vmatprep.mubr.bf16.mxu1 %v8315_v35  ;;  %v6787_v60 = vcombine.low %v1423_v49, %v1431_v50  ;;  %v6806_v62 = vcombine.high %v1440_v57, %v1448_v58  ;;  %v1535_v50 = vld [vmem:[#allocation11 + $0x710] sm:$0xff] }
 0x2de   :  { %4631 = vmatprep.subr.bf16.mxu0 %v6692_v61  ;;  %4713 = vmatprep.subr.bf16.mxu1 %v6694_v41  ;;  %v6789_v61 = vcombine.low %v1424_v51, %v1432_v52  ;;  %v6804_v41 = vcombine.high %v1439_v56, %v1447_v13  ;;  %v1543_v51 = vld [vmem:[#allocation11 + $0x750] sm:$0xff]  ;;  %v1536_v52 = vld [vmem:[#allocation11 + $0x718] sm:$0xff] }
 0x2e0   :  { %4632 = vmatpush1.bf16.msra.mxu0 %v6691_v2  ;;  %v1464_v2 = vld [vmem:[#allocation11 + $0x4d8] sm:$0xff] }
 0x2e1   :  { %4714 = vmatpush1.bf16.msra.mxu1 %v6693_v3  ;;  %4633 = vmatprep.subr.bf16.mxu0 %v6708_v4  ;;  %v6803_v3 = vcombine.low %v1439_v56, %v1447_v13  ;;  %v6805_v4 = vcombine.low %v1440_v57, %v1448_v58  ;;  %v6822_v6 = vcombine.high %v1456_v1, %v1464_v2  ;;  %v1551_v13 = vld [vmem:[#allocation11 + $0x790] sm:$0xff]  ;;  %v1552_v58 = vld [vmem:[#allocation11 + $0x798] sm:$0xff] }
 0x2e2   :  { %4715 = vmatprep.subr.bf16.mxu1 %v6710_v5  ;;  %v6820_v5 = vcombine.high %v1455_v63, %v1463_v0  ;;  %v1559_v57 = vld [vmem:[#allocation11 + $0x7d0] sm:$0xff] }
 0x2e4   :  { %4634 = vmatpush1.bf16.msra.mxu0 %v6707_v11  ;;  %v1480_v11 = vld [vmem:[#allocation11 + $0x558] sm:$0xff] }
 0x2e5   :  { %4716 = vmatpush1.bf16.msra.mxu1 %v6709_v12  ;;  %4635 = vmatprep.subr.bf16.mxu0 %v6724_v14  ;;  %v6819_v12 = vcombine.low %v1455_v63, %v1463_v0  ;;  %v6821_v14 = vcombine.low %v1456_v1, %v1464_v2  ;;  %v6838_v16 = vcombine.high %v1472_v10, %v1480_v11  ;;  %v1567_v0 = vld [vmem:[#allocation11 + $0x810] sm:$0xff]  ;;  %v1568_v2 = vld [vmem:[#allocation11 + $0x818] sm:$0xff] }
 0x2e6   :  { %4717 = vmatprep.subr.bf16.mxu1 %v6726_v15  ;;  %v6836_v15 = vcombine.high %v1471_v7, %v1479_v9  ;;  %v1575_v1 = vld [vmem:[#allocation11 + $0x850] sm:$0xff] }
 0x2e8   :  { %4636 = vmatpush1.bf16.msra.mxu0 %v6723_v20  ;;  %v1496_v20 = vld [vmem:[#allocation11 + $0x5d8] sm:$0xff] }
 0x2e9   :  { %4718 = vmatpush1.bf16.msra.mxu1 %v6725_v21  ;;  %4637 = vmatprep.subr.bf16.mxu0 %v6740_v26  ;;  %v6835_v21 = vcombine.low %v1471_v7, %v1479_v9  ;;  %v6837_v26 = vcombine.low %v1472_v10, %v1480_v11  ;;  %v6854_v28 = vcombine.high %v1488_v19, %v1496_v20  ;;  %v1583_v9 = vld [vmem:[#allocation11 + $0x890] sm:$0xff] }
 0x2ea   :  { %4719 = vmatprep.subr.bf16.mxu1 %v6742_v27  ;;  %v6852_v27 = vcombine.high %v1487_v17, %v1495_v18  ;;  %v1591_v10 = vld [vmem:[#allocation11 + $0x8d0] sm:$0xff]  ;;  %v6931_v11 = vcombine.low %v1567_v0, %v1575_v1 }
 0x2ec   :  { %4638 = vmatpush1.bf16.msra.mxu0 %v6739_v33  ;;  %v1512_v33 = vld [vmem:[#allocation11 + $0x658] sm:$0xff] }
 0x2ed   :  { %4720 = vmatpush1.bf16.msra.mxu1 %v6741_v34  ;;  %4639 = vmatprep.subr.bf16.mxu0 %v6756_v37  ;;  %v6851_v34 = vcombine.low %v1487_v17, %v1495_v18  ;;  %v6853_v37 = vcombine.low %v1488_v19, %v1496_v20  ;;  %v6870_v40 = vcombine.high %v1504_v32, %v1512_v33  ;;  %v1599_v17 = vld [vmem:[#allocation11 + $0x910] sm:$0xff]  ;;  %v1600_v20 = vld [vmem:[#allocation11 + $0x918] sm:$0xff] }
 0x2ee   :  { %4721 = vmatprep.subr.bf16.mxu1 %v6758_v39  ;;  %v6868_v39 = vcombine.high %v1503_v30, %v1511_v31  ;;  %v1607_v18 = vld [vmem:[#allocation11 + $0x950] sm:$0xff] }
 0x2f0   :  { %4640 = vmatpush1.bf16.msra.mxu0 %v6755_v46  ;;  %v1528_v46 = vld [vmem:[#allocation11 + $0x6d8] sm:$0xff] }
 0x2f1   :  { %4722 = vmatpush1.bf16.msra.mxu1 %v6757_v47  ;;  %4641 = vmatprep.subr.bf16.mxu0 %v6772_v48  ;;  %v6867_v47 = vcombine.low %v1503_v30, %v1511_v31  ;;  %v6869_v48 = vcombine.low %v1504_v32, %v1512_v33  ;;  %v6886_v49 = vcombine.high %v1520_v44, %v1528_v46  ;;  %v1615_v31 = vld [vmem:[#allocation11 + $0x990] sm:$0xff]  ;;  %v1616_v33 = vld [vmem:[#allocation11 + $0x998] sm:$0xff] }
 0x2f2   :  { %4723 = vmatprep.subr.bf16.mxu1 %v6774_v8  ;;  %v6884_v8 = vcombine.high %v1519_v42, %v1527_v43  ;;  %v1623_v32 = vld [vmem:[#allocation11 + $0x9d0] sm:$0xff] }
 0x2f4   :  { %4642 = vmatpush1.bf16.msra.mxu0 %v6771_v53  ;;  %v1544_v53 = vld [vmem:[#allocation11 + $0x758] sm:$0xff] }
 0x2f5   :  { %4724 = vmatpush1.bf16.msra.mxu1 %v6773_v54  ;;  %4643 = vmatprep.subr.bf16.mxu0 %v6788_v55  ;;  %v6883_v54 = vcombine.low %v1519_v42, %v1527_v43  ;;  %v6885_v55 = vcombine.low %v1520_v44, %v1528_v46  ;;  %v6902_v56 = vcombine.high %v1536_v52, %v1544_v53  ;;  %v1631_v43 = vld [vmem:[#allocation11 + $0xa10] sm:$0xff]  ;;  %v1632_v46 = vld [vmem:[#allocation11 + $0xa18] sm:$0xff] }
 0x2f6   :  { %4725 = vmatprep.subr.bf16.mxu1 %v6790_v24  ;;  %v6900_v24 = vcombine.high %v1535_v50, %v1543_v51  ;;  %v1639_v44 = vld [vmem:[#allocation11 + $0xa50] sm:$0xff] }
 0x2f8   :  { %4644 = vmatpush1.bf16.msra.mxu0 %v6787_v60  ;;  %v1560_v60 = vld [vmem:[#allocation11 + $0x7d8] sm:$0xff] }
 0x2f9   :  { %4726 = vmatpush1.bf16.msra.mxu1 %v6789_v61  ;;  %4645 = vmatprep.subr.bf16.mxu0 %v6804_v41  ;;  %v6899_v61 = vcombine.low %v1535_v50, %v1543_v51  ;;  %v6901_v41 = vcombine.low %v1536_v52, %v1544_v53  ;;  %v6918_v63 = vcombine.high %v1552_v58, %v1560_v60  ;;  %v1647_v51 = vld [vmem:[#allocation11 + $0xa90] sm:$0xff]  ;;  %v1648_v53 = vld [vmem:[#allocation11 + $0xa98] sm:$0xff] }
 0x2fa   :  { %4727 = vmatprep.subr.bf16.mxu1 %v6806_v62  ;;  %v6916_v62 = vcombine.high %v1551_v13, %v1559_v57  ;;  %v1655_v52 = vld [vmem:[#allocation11 + $0xad0] sm:$0xff] }
 0x2fc   :  { %4646 = vmatpush1.bf16.msra.mxu0 %v6803_v3  ;;  %v1576_v3 = vld [vmem:[#allocation11 + $0x858] sm:$0xff] }
 0x2fd   :  { %4728 = vmatpush1.bf16.msra.mxu1 %v6805_v4  ;;  %4647 = vmatprep.subr.bf16.mxu0 %v6820_v5  ;;  %v6915_v4 = vcombine.low %v1551_v13, %v1559_v57  ;;  %v6917_v5 = vcombine.low %v1552_v58, %v1560_v60  ;;  %v6934_v7 = vcombine.high %v1568_v2, %v1576_v3  ;;  %v1663_v57 = vld [vmem:[#allocation11 + $0xb10] sm:$0xff]  ;;  %v1664_v60 = vld [vmem:[#allocation11 + $0xb18] sm:$0xff] }
 0x2fe   :  { %4729 = vmatprep.subr.bf16.mxu1 %v6822_v6  ;;  %v6932_v6 = vcombine.high %v1567_v0, %v1575_v1  ;;  %v1671_v58 = vld [vmem:[#allocation11 + $0xb50] sm:$0xff] }
 0x2ff   :  { %v1679_v1 = vld [vmem:[#allocation11 + $0xb90] sm:$0xff] }
 0x300   :  { %4648 = vmatpush1.bf16.msra.mxu0 %v6819_v12  ;;  %v1584_v12 = vld [vmem:[#allocation11 + $0x898] sm:$0xff] }
 0x301   :  { %4730 = vmatpush1.bf16.msra.mxu1 %v6821_v14  ;;  %4649 = vmatprep.subr.bf16.mxu0 %v6836_v15  ;;  %v1592_v14 = vld [vmem:[#allocation11 + $0x8d8] sm:$0xff]  ;;  %v6933_v15 = vcombine.low %v1568_v2, %v1576_v3  ;;  %v1687_v2 = vld [vmem:[#allocation11 + $0xbd0] sm:$0xff] }
 0x302   :  { %4731 = vmatprep.subr.bf16.mxu1 %v6838_v16  ;;  %v6948_v16 = vcombine.high %v1583_v9, %v1591_v10  ;;  %v6950_v19 = vcombine.high %v1584_v12, %v1592_v14  ;;  %v1680_v3 = vld [vmem:[#allocation11 + $0xb98] sm:$0xff] }
 0x304   :  { %4650 = vmatpush1.bf16.msra.mxu0 %v6835_v21  ;;  %v1608_v21 = vld [vmem:[#allocation11 + $0x958] sm:$0xff] }
 0x305   :  { %4732 = vmatpush1.bf16.msra.mxu1 %v6837_v26  ;;  %4651 = vmatprep.subr.bf16.mxu0 %v6852_v27  ;;  %v6947_v26 = vcombine.low %v1583_v9, %v1591_v10  ;;  %v6949_v27 = vcombine.low %v1584_v12, %v1592_v14  ;;  %v6966_v30 = vcombine.high %v1600_v20, %v1608_v21  ;;  %v1695_v10 = vld [vmem:[#allocation11 + $0xc10] sm:$0xff]  ;;  %v1696_v12 = vld [vmem:[#allocation11 + $0xc18] sm:$0xff] }
 0x306   :  { %4733 = vmatprep.subr.bf16.mxu1 %v6854_v28  ;;  %v6964_v28 = vcombine.high %v1599_v17, %v1607_v18  ;;  %v1704_v14 = vld [vmem:[#allocation11 + $0xc58] sm:$0xff] }
 0x308   :  { %4652 = vmatpush1.bf16.msra.mxu0 %v6851_v34  ;;  %v1624_v34 = vld [vmem:[#allocation11 + $0x9d8] sm:$0xff] }
 0x309   :  { %4734 = vmatpush1.bf16.msra.mxu1 %v6853_v37  ;;  %4653 = vmatprep.subr.bf16.mxu0 %v6868_v39  ;;  %v6963_v37 = vcombine.low %v1599_v17, %v1607_v18  ;;  %v6965_v39 = vcombine.low %v1600_v20, %v1608_v21  ;;  %v6982_v42 = vcombine.high %v1616_v33, %v1624_v34  ;;  %v1719_v20 = vld [vmem:[#allocation11 + $0xcd0] sm:$0xff]  ;;  %v1712_v21 = vld [vmem:[#allocation11 + $0xc98] sm:$0xff] }
 0x30a   :  { %4735 = vmatprep.subr.bf16.mxu1 %v6870_v40  ;;  %v6980_v40 = vcombine.high %v1615_v31, %v1623_v32  ;;  %v7062_v18 = vcombine.high %v1696_v12, %v1704_v14 }
 0x30c   :  { %4654 = vmatpush1.bf16.msra.mxu0 %v6867_v47  ;;  %v1640_v47 = vld [vmem:[#allocation11 + $0xa58] sm:$0xff] }
 0x30d   :  { %4736 = vmatpush1.bf16.msra.mxu1 %v6869_v48  ;;  %4655 = vmatprep.subr.bf16.mxu0 %v6884_v8  ;;  %v6979_v48 = vcombine.low %v1615_v31, %v1623_v32  ;;  %v6981_v8 = vcombine.low %v1616_v33, %v1624_v34  ;;  %v6998_v50 = vcombine.high %v1632_v46, %v1640_v47  ;;  %v1727_v32 = vld [vmem:[#allocation11 + $0xd10] sm:$0xff]  ;;  %v1728_v34 = vld [vmem:[#allocation11 + $0xd18] sm:$0xff] }
 0x30e   :  { %4737 = vmatprep.subr.bf16.mxu1 %v6886_v49  ;;  %v6996_v49 = vcombine.high %v1631_v43, %v1639_v44  ;;  %v1735_v33 = vld [vmem:[#allocation11 + $0xd50] sm:$0xff] }
 0x310   :  { %4656 = vmatpush1.bf16.msra.mxu0 %v6883_v54  ;;  %v1656_v54 = vld [vmem:[#allocation11 + $0xad8] sm:$0xff] }
 0x311   :  { %4738 = vmatpush1.bf16.msra.mxu1 %v6885_v55  ;;  %4657 = vmatprep.subr.bf16.mxu0 %v6900_v24  ;;  %v6995_v55 = vcombine.low %v1631_v43, %v1639_v44  ;;  %v6997_v24 = vcombine.low %v1632_v46, %v1640_v47  ;;  %v7014_v13 = vcombine.high %v1648_v53, %v1656_v54  ;;  %v1743_v44 = vld [vmem:[#allocation11 + $0xd90] sm:$0xff]  ;;  %v1744_v47 = vld [vmem:[#allocation11 + $0xd98] sm:$0xff] }
 0x312   :  { %4739 = vmatprep.subr.bf16.mxu1 %v6902_v56  ;;  %v7012_v56 = vcombine.high %v1647_v51, %v1655_v52  ;;  %v1751_v46 = vld [vmem:[#allocation11 + $0xdd0] sm:$0xff] }
 0x314   :  { %4658 = vmatpush1.bf16.msra.mxu0 %v6899_v61  ;;  %v1672_v61 = vld [vmem:[#allocation11 + $0xb58] sm:$0xff] }
 0x315   :  { %4740 = vmatpush1.bf16.msra.mxu1 %v6901_v41  ;;  %4659 = vmatprep.subr.bf16.mxu0 %v6916_v62  ;;  %v7011_v41 = vcombine.low %v1647_v51, %v1655_v52  ;;  %v7013_v62 = vcombine.low %v1648_v53, %v1656_v54  ;;  %v7030_v0 = vcombine.high %v1664_v60, %v1672_v61  ;;  %v1759_v52 = vld [vmem:[#allocation11 + $0xe10] sm:$0xff]  ;;  %v1760_v54 = vld [vmem:[#allocation11 + $0xe18] sm:$0xff] }
 0x316   :  { %4741 = vmatprep.subr.bf16.mxu1 %v6918_v63  ;;  %v7028_v63 = vcombine.high %v1663_v57, %v1671_v58  ;;  %v1767_v53 = vld [vmem:[#allocation11 + $0xe50] sm:$0xff] }
 0x318   :  { %4660 = vmatpush1.bf16.msra.mxu0 %v6915_v4  ;;  %v1688_v4 = vld [vmem:[#allocation11 + $0xbd8] sm:$0xff] }
 0x319   :  { %4742 = vmatpush1.bf16.msra.mxu1 %v6917_v5  ;;  %4670 = vmatprep.subr.bf16.mxu0 %v6932_v6  ;;  %v7027_v5 = vcombine.low %v1663_v57, %v1671_v58  ;;  %v7029_v6 = vcombine.low %v1664_v60, %v1672_v61  ;;  %v7046_v9 = vcombine.high %v1680_v3, %v1688_v4  ;;  %v1775_v58 = vld [vmem:[#allocation11 + $0xe90] sm:$0xff]  ;;  %v1776_v61 = vld [vmem:[#allocation11 + $0xe98] sm:$0xff] }
 0x31a   :  { %4752 = vmatprep.subr.bf16.mxu1 %v6934_v7  ;;  %v7044_v7 = vcombine.high %v1679_v1, %v1687_v2  ;;  %v1783_v60 = vld [vmem:[#allocation11 + $0xed0] sm:$0xff] }
 0x31b   :  { %4662 = vmatmul.mubr.bf16.vlgmr.msra.gmra.mrb[12].mxu0 %v8317_v36 }
 0x31c   :  { %4744 = vmatmul.mubr.bf16.vlgmr.msra.gmra.mrb[12].mxu1 %v8317_v36  ;;  %4671 = vmatpush1.bf16.msra.mxu0 %v6931_v11  ;;  %v1703_v11 = vld [vmem:[#allocation11 + $0xc50] sm:$0xff] }
 0x31d   :  { %4702 = vmatprep.mubr.bf16.mxu0 %v8321_v45  ;;  %4753 = vmatpush1.bf16.msra.mxu1 %v6933_v15  ;;  %v7043_v15 = vcombine.low %v1679_v1, %v1687_v2  ;;  %v7060_v17 = vcombine.high %v1695_v10, %v1703_v11  ;;  %v1791_v2 = vld [vmem:[#allocation11 + $0xf10] sm:$0xff] }
 0x31e   :  { %4784 = vmatprep.mubr.bf16.mxu1 %v8321_v45  ;;  %4672 = vmatprep.subr.bf16.mxu0 %v6948_v16  ;;  %v7045_v16 = vcombine.low %v1680_v3, %v1688_v4  ;;  %v1799_v3 = vld [vmem:[#allocation11 + $0xf50] sm:$0xff]  ;;  %v1792_v4 = vld [vmem:[#allocation11 + $0xf18] sm:$0xff] }
 0x31f   :  { %4754 = vmatprep.subr.bf16.mxu1 %v6950_v19  ;;  %v1711_v19 = vld [vmem:[#allocation11 + $0xc90] sm:$0xff] }
 0x320   :  { %4673 = vmatpush1.bf16.msra.mxu0 %v6947_v26  ;;  %v1720_v26 = vld [vmem:[#allocation11 + $0xcd8] sm:$0xff] }
 0x321   :  { %4755 = vmatpush1.bf16.msra.mxu1 %v6949_v27  ;;  %4674 = vmatprep.subr.bf16.mxu0 %v6964_v28  ;;  %v7059_v27 = vcombine.low %v1695_v10, %v1703_v11  ;;  %v7061_v28 = vcombine.low %v1696_v12, %v1704_v14  ;;  %v7078_v31 = vcombine.high %v1712_v21, %v1720_v26  ;;  %v1807_v11 = vld [vmem:[#allocation11 + $0xf90] sm:$0xff]  ;;  %v1808_v14 = vld [vmem:[#allocation11 + $0xf98] sm:$0xff] }
 0x322   :  { %4756 = vmatprep.subr.bf16.mxu1 %v6966_v30  ;;  %v7076_v30 = vcombine.high %v1711_v19, %v1719_v20  ;;  %v1815_v12 = vld [vmem:[#allocation11 + $0xfd0] sm:$0xff] }
 0x324   :  { %4675 = vmatpush1.bf16.msra.mxu0 %v6963_v37  ;;  %v1736_v37 = vld [vmem:[#allocation11 + $0xd58] sm:$0xff] }
 0x325   :  { %4757 = vmatpush1.bf16.msra.mxu1 %v6965_v39  ;;  %4676 = vmatprep.subr.bf16.mxu0 %v6980_v40  ;;  %v7075_v39 = vcombine.low %v1711_v19, %v1719_v20  ;;  %v7077_v40 = vcombine.low %v1712_v21, %v1720_v26  ;;  %v7094_v43 = vcombine.high %v1728_v34, %v1736_v37  ;;  %v1313_v20 = vld [vmem:[#allocation11 + $0x20] sm:$0xff]  ;;  %v1314_v26 = vld [vmem:[#allocation11 + $0x28] sm:$0xff] }
 0x326   :  { %4758 = vmatprep.subr.bf16.mxu1 %v6982_v42  ;;  %v7092_v42 = vcombine.high %v1727_v32, %v1735_v33  ;;  %v1321_v21 = vld [vmem:[#allocation11 + $0x60] sm:$0xff] }
 0x328   :  { %4677 = vmatpush1.bf16.msra.mxu0 %v6979_v48  ;;  %v1752_v48 = vld [vmem:[#allocation11 + $0xdd8] sm:$0xff] }
 0x329   :  { %4759 = vmatpush1.bf16.msra.mxu1 %v6981_v8  ;;  %4678 = vmatprep.subr.bf16.mxu0 %v6996_v49  ;;  %v7091_v8 = vcombine.low %v1727_v32, %v1735_v33  ;;  %v7093_v49 = vcombine.low %v1728_v34, %v1736_v37  ;;  %v7110_v51 = vcombine.high %v1744_v47, %v1752_v48  ;;  %v1329_v33 = vld [vmem:[#allocation11 + $0xa0] sm:$0xff] }
 0x32a   :  { %4760 = vmatprep.subr.bf16.mxu1 %v6998_v50  ;;  %v7108_v50 = vcombine.high %v1743_v44, %v1751_v46  ;;  %v1337_v34 = vld [vmem:[#allocation11 + $0xe0] sm:$0xff]  ;;  %v6679_v37 = vcombine.low %v1313_v20, %v1321_v21 }
 0x32c   :  { %4679 = vmatpush1.bf16.msra.mxu0 %v6995_v55  ;;  %v1768_v55 = vld [vmem:[#allocation11 + $0xe58] sm:$0xff] }
 0x32d   :  { %4761 = vmatpush1.bf16.msra.mxu1 %v6997_v24  ;;  %4680 = vmatprep.subr.bf16.mxu0 %v7012_v56  ;;  %v7107_v24 = vcombine.low %v1743_v44, %v1751_v46  ;;  %v7109_v56 = vcombine.low %v1744_v47, %v1752_v48  ;;  %v7126_v57 = vcombine.high %v1760_v54, %v1768_v55  ;;  %v1345_v44 = vld [vmem:[#allocation11 + $0x120] sm:$0xff]  ;;  %v1346_v48 = vld [vmem:[#allocation11 + $0x128] sm:$0xff] }
 0x32e   :  { %4762 = vmatprep.subr.bf16.mxu1 %v7014_v13  ;;  %v7124_v13 = vcombine.high %v1759_v52, %v1767_v53  ;;  %v1353_v46 = vld [vmem:[#allocation11 + $0x160] sm:$0xff] }
 0x330   :  { %4681 = vmatpush1.bf16.msra.mxu0 %v7011_v41  ;;  %v1784_v41 = vld [vmem:[#allocation11 + $0xed8] sm:$0xff] }
 0x331   :  { %4763 = vmatpush1.bf16.msra.mxu1 %v7013_v62  ;;  %4682 = vmatprep.subr.bf16.mxu0 %v7028_v63  ;;  %v7123_v62 = vcombine.low %v1759_v52, %v1767_v53  ;;  %v7125_v63 = vcombine.low %v1760_v54, %v1768_v55  ;;  %v7142_v1 = vcombine.high %v1776_v61, %v1784_v41  ;;  %v1361_v53 = vld [vmem:[#allocation11 + $0x1a0] sm:$0xff]  ;;  %v1362_v55 = vld [vmem:[#allocation11 + $0x1a8] sm:$0xff] }
 0x332   :  { %4764 = vmatprep.subr.bf16.mxu1 %v7030_v0  ;;  %v7140_v0 = vcombine.high %v1775_v58, %v1783_v60  ;;  %v1369_v54 = vld [vmem:[#allocation11 + $0x1e0] sm:$0xff] }
 0x334   :  { %4683 = vmatpush1.bf16.msra.mxu0 %v7027_v5  ;;  %v1800_v5 = vld [vmem:[#allocation11 + $0xf58] sm:$0xff] }
 0x335   :  { %4765 = vmatpush1.bf16.msra.mxu1 %v7029_v6  ;;  %4684 = vmatprep.subr.bf16.mxu0 %v7044_v7  ;;  %v7139_v6 = vcombine.low %v1775_v58, %v1783_v60  ;;  %v7141_v7 = vcombine.low %v1776_v61, %v1784_v41  ;;  %v7158_v10 = vcombine.high %v1792_v4, %v1800_v5  ;;  %v1377_v60 = vld [vmem:[#allocation11 + $0x220] sm:$0xff]  ;;  %v1378_v41 = vld [vmem:[#allocation11 + $0x228] sm:$0xff] }
 0x336   :  { %4766 = vmatprep.subr.bf16.mxu1 %v7046_v9  ;;  %v7156_v9 = vcombine.high %v1791_v2, %v1799_v3  ;;  %v1385_v61 = vld [vmem:[#allocation11 + $0x260] sm:$0xff] }
 0x338   :  { %4685 = vmatpush1.bf16.msra.mxu0 %v7043_v15  ;;  %v1816_v15 = vld [vmem:[#allocation11 + $0xfd8] sm:$0xff] }
 0x339   :  { %4767 = vmatpush1.bf16.msra.mxu1 %v7045_v16  ;;  %4686 = vmatprep.subr.bf16.mxu0 %v7060_v17  ;;  %v7155_v16 = vcombine.low %v1791_v2, %v1799_v3  ;;  %v7157_v17 = vcombine.low %v1792_v4, %v1800_v5  ;;  %v7174_v19 = vcombine.high %v1808_v14, %v1816_v15  ;;  %v1393_v3 = vld [vmem:[#allocation11 + $0x2a0] sm:$0xff]  ;;  %v1394_v5 = vld [vmem:[#allocation11 + $0x2a8] sm:$0xff] }
 0x33a   :  { %4768 = vmatprep.subr.bf16.mxu1 %v7062_v18  ;;  %v7172_v18 = vcombine.high %v1807_v11, %v1815_v12  ;;  %v1401_v4 = vld [vmem:[#allocation11 + $0x2e0] sm:$0xff] }
 0x33c   :  { %4687 = vmatpush1.bf16.msra.mxu0 %v7059_v27  ;;  %v1322_v27 = vld [vmem:[#allocation11 + $0x68] sm:$0xff] }
 0x33d   :  { %4769 = vmatpush1.bf16.msra.mxu1 %v7061_v28  ;;  %4688 = vmatprep.subr.bf16.mxu0 %v7076_v30  ;;  %v7171_v28 = vcombine.low %v1807_v11, %v1815_v12  ;;  %v7173_v30 = vcombine.low %v1808_v14, %v1816_v15  ;;  %v6682_v32 = vcombine.high %v1314_v26, %v1322_v27  ;;  %v1409_v12 = vld [vmem:[#allocation11 + $0x320] sm:$0xff]  ;;  %v1410_v15 = vld [vmem:[#allocation11 + $0x328] sm:$0xff] }
 0x33e   :  { %4770 = vmatprep.subr.bf16.mxu1 %v7078_v31  ;;  %v6680_v31 = vcombine.high %v1313_v20, %v1321_v21  ;;  %v1417_v14 = vld [vmem:[#allocation11 + $0x360] sm:$0xff] }
 0x33f   :  { %v1425_v21 = vld [vmem:[#allocation11 + $0x3a0] sm:$0xff] }
 0x340   :  { %4689 = vmatpush1.bf16.msra.mxu0 %v7075_v39  ;;  %v1330_v39 = vld [vmem:[#allocation11 + $0xa8] sm:$0xff] }
 0x341   :  { %4771 = vmatpush1.bf16.msra.mxu1 %v7077_v40  ;;  %4690 = vmatprep.subr.bf16.mxu0 %v7092_v42  ;;  %v1338_v40 = vld [vmem:[#allocation11 + $0xe8] sm:$0xff]  ;;  %v6681_v42 = vcombine.low %v1314_v26, %v1322_v27  ;;  %v1433_v26 = vld [vmem:[#allocation11 + $0x3e0] sm:$0xff] }
 0x342   :  { %4772 = vmatprep.subr.bf16.mxu1 %v7094_v43  ;;  %v6696_v43 = vcombine.high %v1329_v33, %v1337_v34  ;;  %v6698_v47 = vcombine.high %v1330_v39, %v1338_v40  ;;  %v1426_v27 = vld [vmem:[#allocation11 + $0x3a8] sm:$0xff] }
 0x344   :  { %4691 = vmatpush1.bf16.msra.mxu0 %v7091_v8  ;;  %v1354_v8 = vld [vmem:[#allocation11 + $0x168] sm:$0xff] }
 0x345   :  { %4773 = vmatpush1.bf16.msra.mxu1 %v7093_v49  ;;  %4692 = vmatprep.subr.bf16.mxu0 %v7108_v50  ;;  %v6695_v49 = vcombine.low %v1329_v33, %v1337_v34  ;;  %v6697_v50 = vcombine.low %v1330_v39, %v1338_v40  ;;  %v6714_v52 = vcombine.high %v1346_v48, %v1354_v8  ;;  %v1441_v34 = vld [vmem:[#allocation11 + $0x420] sm:$0xff]  ;;  %v1442_v39 = vld [vmem:[#allocation11 + $0x428] sm:$0xff] }
 0x346   :  { %4774 = vmatprep.subr.bf16.mxu1 %v7110_v51  ;;  %v6712_v51 = vcombine.high %v1345_v44, %v1353_v46  ;;  %v1450_v40 = vld [vmem:[#allocation11 + $0x468] sm:$0xff] }
 0x348   :  { %4693 = vmatpush1.bf16.msra.mxu0 %v7107_v24  ;;  %v1370_v24 = vld [vmem:[#allocation11 + $0x1e8] sm:$0xff] }
 0x349   :  { %4775 = vmatpush1.bf16.msra.mxu1 %v7109_v56  ;;  %4694 = vmatprep.subr.bf16.mxu0 %v7124_v13  ;;  %v6711_v56 = vcombine.low %v1345_v44, %v1353_v46  ;;  %v6713_v13 = vcombine.low %v1346_v48, %v1354_v8  ;;  %v6730_v58 = vcombine.high %v1362_v55, %v1370_v24  ;;  %v1465_v48 = vld [vmem:[#allocation11 + $0x4e0] sm:$0xff]  ;;  %v1458_v8 = vld [vmem:[#allocation11 + $0x4a8] sm:$0xff] }
 0x34a   :  { %4776 = vmatprep.subr.bf16.mxu1 %v7126_v57  ;;  %v6728_v57 = vcombine.high %v1361_v53, %v1369_v54  ;;  %v6810_v46 = vcombine.high %v1442_v39, %v1450_v40 }
 0x34c   :  { %4695 = vmatpush1.bf16.msra.mxu0 %v7123_v62  ;;  %v1386_v62 = vld [vmem:[#allocation11 + $0x268] sm:$0xff] }
 0x34d   :  { %4777 = vmatpush1.bf16.msra.mxu1 %v7125_v63  ;;  %4696 = vmatprep.subr.bf16.mxu0 %v7140_v0  ;;  %v6727_v63 = vcombine.low %v1361_v53, %v1369_v54  ;;  %v6729_v0 = vcombine.low %v1362_v55, %v1370_v24  ;;  %v6746_v2 = vcombine.high %v1378_v41, %v1386_v62  ;;  %v1473_v54 = vld [vmem:[#allocation11 + $0x520] sm:$0xff]  ;;  %v1474_v24 = vld [vmem:[#allocation11 + $0x528] sm:$0xff] }
 0x34e   :  { %4778 = vmatprep.subr.bf16.mxu1 %v7142_v1  ;;  %v6744_v1 = vcombine.high %v1377_v60, %v1385_v61  ;;  %v1481_v55 = vld [vmem:[#allocation11 + $0x560] sm:$0xff] }
 0x350   :  { %4697 = vmatpush1.bf16.msra.mxu0 %v7139_v6  ;;  %v1402_v6 = vld [vmem:[#allocation11 + $0x2e8] sm:$0xff] }
 0x351   :  { %4779 = vmatpush1.bf16.msra.mxu1 %v7141_v7  ;;  %4698 = vmatprep.subr.bf16.mxu0 %v7156_v9  ;;  %v6743_v7 = vcombine.low %v1377_v60, %v1385_v61  ;;  %v6745_v9 = vcombine.low %v1378_v41, %v1386_v62  ;;  %v6762_v11 = vcombine.high %v1394_v5, %v1402_v6  ;;  %v1489_v61 = vld [vmem:[#allocation11 + $0x5a0] sm:$0xff]  ;;  %v1490_v62 = vld [vmem:[#allocation11 + $0x5a8] sm:$0xff] }
 0x352   :  { %4780 = vmatprep.subr.bf16.mxu1 %v7158_v10  ;;  %v6760_v10 = vcombine.high %v1393_v3, %v1401_v4  ;;  %v1497_v41 = vld [vmem:[#allocation11 + $0x5e0] sm:$0xff] }
 0x354   :  { %4699 = vmatpush1.bf16.msra.mxu0 %v7155_v16  ;;  %v1418_v16 = vld [vmem:[#allocation11 + $0x368] sm:$0xff] }
 0x355   :  { %4781 = vmatpush1.bf16.msra.mxu1 %v7157_v17  ;;  %4700 = vmatprep.subr.bf16.mxu0 %v7172_v18  ;;  %v6759_v17 = vcombine.low %v1393_v3, %v1401_v4  ;;  %v6761_v18 = vcombine.low %v1394_v5, %v1402_v6  ;;  %v6778_v20 = vcombine.high %v1410_v15, %v1418_v16  ;;  %v1505_v4 = vld [vmem:[#allocation11 + $0x620] sm:$0xff]  ;;  %v1506_v6 = vld [vmem:[#allocation11 + $0x628] sm:$0xff] }
 0x356   :  { %4782 = vmatprep.subr.bf16.mxu1 %v7174_v19  ;;  %v6776_v19 = vcombine.high %v1409_v12, %v1417_v14  ;;  %v1513_v5 = vld [vmem:[#allocation11 + $0x660] sm:$0xff] }
 0x358   :  { %4701 = vmatpush1.bf16.msra.mxu0 %v7171_v28  ;;  %v1434_v28 = vld [vmem:[#allocation11 + $0x3e8] sm:$0xff] }
 0x359   :  { %4783 = vmatpush1.bf16.msra.mxu1 %v7173_v30  ;;  %4793 = vmatprep.subr.bf16.mxu0 %v6680_v31  ;;  %v6775_v30 = vcombine.low %v1409_v12, %v1417_v14  ;;  %v6777_v31 = vcombine.low %v1410_v15, %v1418_v16  ;;  %v6794_v33 = vcombine.high %v1426_v27, %v1434_v28  ;;  %v1521_v14 = vld [vmem:[#allocation11 + $0x6a0] sm:$0xff]  ;;  %v1522_v16 = vld [vmem:[#allocation11 + $0x6a8] sm:$0xff] }
 0x35a   :  { %4875 = vmatprep.subr.bf16.mxu1 %v6682_v32  ;;  %v6792_v32 = vcombine.high %v1425_v21, %v1433_v26  ;;  %v1529_v15 = vld [vmem:[#allocation11 + $0x6e0] sm:$0xff] }
 0x35b   :  { %4703 = vmatmul.mubr.bf16.vlgmr.msra.gmra.mrb[12].mxu0 %v8330_v59 }
 0x35c   :  { %4785 = vmatmul.mubr.bf16.vlgmr.msra.gmra.mrb[12].mxu1 %v8330_v59  ;;  %4794 = vmatpush1.bf16.msra.mxu0 %v6679_v37  ;;  %v1449_v37 = vld [vmem:[#allocation11 + $0x460] sm:$0xff] }
 0x35d   :  { %4825 = vmatprep.mubr.bf16.mxu0 %v8315_v35  ;;  %4876 = vmatpush1.bf16.msra.mxu1 %v6681_v42  ;;  %v6791_v42 = vcombine.low %v1425_v21, %v1433_v26  ;;  %v6808_v44 = vcombine.high %v1441_v34, %v1449_v37  ;;  %v1537_v26 = vld [vmem:[#allocation11 + $0x720] sm:$0xff] }
 0x35e   :  { %4907 = vmatprep.mubr.bf16.mxu1 %v8315_v35  ;;  %4795 = vmatprep.subr.bf16.mxu0 %v6696_v43  ;;  %v6793_v43 = vcombine.low %v1426_v27, %v1434_v28  ;;  %v1545_v27 = vld [vmem:[#allocation11 + $0x760] sm:$0xff]  ;;  %v1538_v28 = vld [vmem:[#allocation11 + $0x728] sm:$0xff] }
 0x35f   :  { %4877 = vmatprep.subr.bf16.mxu1 %v6698_v47  ;;  %v1457_v47 = vld [vmem:[#allocation11 + $0x4a0] sm:$0xff] }
 0x360   :  { %4796 = vmatpush1.bf16.msra.mxu0 %v6695_v49  ;;  %v1466_v49 = vld [vmem:[#allocation11 + $0x4e8] sm:$0xff] }
 0x361   :  { %4878 = vmatpush1.bf16.msra.mxu1 %v6697_v50  ;;  %4797 = vmatprep.subr.bf16.mxu0 %v6712_v51  ;;  %v6807_v50 = vcombine.low %v1441_v34, %v1449_v37  ;;  %v6809_v51 = vcombine.low %v1442_v39, %v1450_v40  ;;  %v6826_v53 = vcombine.high %v1458_v8, %v1466_v49  ;;  %v1553_v37 = vld [vmem:[#allocation11 + $0x7a0] sm:$0xff]  ;;  %v1554_v40 = vld [vmem:[#allocation11 + $0x7a8] sm:$0xff] }
 0x362   :  { %4879 = vmatprep.subr.bf16.mxu1 %v6714_v52  ;;  %v6824_v52 = vcombine.high %v1457_v47, %v1465_v48  ;;  %v1561_v39 = vld [vmem:[#allocation11 + $0x7e0] sm:$0xff] }
 0x364   :  { %4798 = vmatpush1.bf16.msra.mxu0 %v6711_v56  ;;  %v1482_v56 = vld [vmem:[#allocation11 + $0x568] sm:$0xff] }
 0x365   :  { %4880 = vmatpush1.bf16.msra.mxu1 %v6713_v13  ;;  %4799 = vmatprep.subr.bf16.mxu0 %v6728_v57  ;;  %v6823_v13 = vcombine.low %v1457_v47, %v1465_v48  ;;  %v6825_v57 = vcombine.low %v1458_v8, %v1466_v49  ;;  %v6842_v60 = vcombine.high %v1474_v24, %v1482_v56  ;;  %v1569_v48 = vld [vmem:[#allocation11 + $0x820] sm:$0xff]  ;;  %v1570_v49 = vld [vmem:[#allocation11 + $0x828] sm:$0xff] }
 0x366   :  { %4881 = vmatprep.subr.bf16.mxu1 %v6730_v58  ;;  %v6840_v58 = vcombine.high %v1473_v54, %v1481_v55  ;;  %v1577_v8 = vld [vmem:[#allocation11 + $0x860] sm:$0xff] }
 0x368   :  { %4800 = vmatpush1.bf16.msra.mxu0 %v6727_v63  ;;  %v1498_v63 = vld [vmem:[#allocation11 + $0x5e8] sm:$0xff] }
 0x369   :  { %4882 = vmatpush1.bf16.msra.mxu1 %v6729_v0  ;;  %4801 = vmatprep.subr.bf16.mxu0 %v6744_v1  ;;  %v6839_v0 = vcombine.low %v1473_v54, %v1481_v55  ;;  %v6841_v1 = vcombine.low %v1474_v24, %v1482_v56  ;;  %v6858_v3 = vcombine.high %v1490_v62, %v1498_v63  ;;  %v1585_v55 = vld [vmem:[#allocation11 + $0x8a0] sm:$0xff] }
 0x36a   :  { %4883 = vmatprep.subr.bf16.mxu1 %v6746_v2  ;;  %v6856_v2 = vcombine.high %v1489_v61, %v1497_v41  ;;  %v1593_v24 = vld [vmem:[#allocation11 + $0x8e0] sm:$0xff]  ;;  %v6935_v56 = vcombine.low %v1569_v48, %v1577_v8 }
 0x36c   :  { %4802 = vmatpush1.bf16.msra.mxu0 %v6743_v7  ;;  %v1514_v7 = vld [vmem:[#allocation11 + $0x668] sm:$0xff] }
 0x36d   :  { %4884 = vmatpush1.bf16.msra.mxu1 %v6745_v9  ;;  %4803 = vmatprep.subr.bf16.mxu0 %v6760_v10  ;;  %v6855_v9 = vcombine.low %v1489_v61, %v1497_v41  ;;  %v6857_v10 = vcombine.low %v1490_v62, %v1498_v63  ;;  %v6874_v12 = vcombine.high %v1506_v6, %v1514_v7  ;;  %v1601_v61 = vld [vmem:[#allocation11 + $0x920] sm:$0xff]  ;;  %v1602_v63 = vld [vmem:[#allocation11 + $0x928] sm:$0xff] }
 0x36e   :  { %4885 = vmatprep.subr.bf16.mxu1 %v6762_v11  ;;  %v6872_v11 = vcombine.high %v1505_v4, %v1513_v5  ;;  %v1609_v41 = vld [vmem:[#allocation11 + $0x960] sm:$0xff] }
 0x370   :  { %4804 = vmatpush1.bf16.msra.mxu0 %v6759_v17  ;;  %v1530_v17 = vld [vmem:[#allocation11 + $0x6e8] sm:$0xff] }
 0x371   :  { %4886 = vmatpush1.bf16.msra.mxu1 %v6761_v18  ;;  %4805 = vmatprep.subr.bf16.mxu0 %v6776_v19  ;;  %v6871_v18 = vcombine.low %v1505_v4, %v1513_v5  ;;  %v6873_v19 = vcombine.low %v1506_v6, %v1514_v7  ;;  %v6890_v21 = vcombine.high %v1522_v16, %v1530_v17  ;;  %v1617_v5 = vld [vmem:[#allocation11 + $0x9a0] sm:$0xff]  ;;  %v1618_v7 = vld [vmem:[#allocation11 + $0x9a8] sm:$0xff] }
 0x372   :  { %4887 = vmatprep.subr.bf16.mxu1 %v6778_v20  ;;  %v6888_v20 = vcombine.high %v1521_v14, %v1529_v15  ;;  %v1625_v6 = vld [vmem:[#allocation11 + $0x9e0] sm:$0xff] }
 0x374   :  { %4806 = vmatpush1.bf16.msra.mxu0 %v6775_v30  ;;  %v1546_v30 = vld [vmem:[#allocation11 + $0x768] sm:$0xff] }
 0x375   :  { %4888 = vmatpush1.bf16.msra.mxu1 %v6777_v31  ;;  %4807 = vmatprep.subr.bf16.mxu0 %v6792_v32  ;;  %v6887_v31 = vcombine.low %v1521_v14, %v1529_v15  ;;  %v6889_v32 = vcombine.low %v1522_v16, %v1530_v17  ;;  %v6906_v34 = vcombine.high %v1538_v28, %v1546_v30  ;;  %v1633_v15 = vld [vmem:[#allocation11 + $0xa20] sm:$0xff]  ;;  %v1634_v17 = vld [vmem:[#allocation11 + $0xa28] sm:$0xff] }
 0x376   :  { %4889 = vmatprep.subr.bf16.mxu1 %v6794_v33  ;;  %v6904_v33 = vcombine.high %v1537_v26, %v1545_v27  ;;  %v1641_v16 = vld [vmem:[#allocation11 + $0xa60] sm:$0xff] }
 0x378   :  { %4808 = vmatpush1.bf16.msra.mxu0 %v6791_v42  ;;  %v1562_v42 = vld [vmem:[#allocation11 + $0x7e8] sm:$0xff] }
 0x379   :  { %4890 = vmatpush1.bf16.msra.mxu1 %v6793_v43  ;;  %4809 = vmatprep.subr.bf16.mxu0 %v6808_v44  ;;  %v6903_v43 = vcombine.low %v1537_v26, %v1545_v27  ;;  %v6905_v44 = vcombine.low %v1538_v28, %v1546_v30  ;;  %v6922_v47 = vcombine.high %v1554_v40, %v1562_v42  ;;  %v1649_v27 = vld [vmem:[#allocation11 + $0xaa0] sm:$0xff]  ;;  %v1650_v30 = vld [vmem:[#allocation11 + $0xaa8] sm:$0xff] }
 0x37a   :  { %4891 = vmatprep.subr.bf16.mxu1 %v6810_v46  ;;  %v6920_v46 = vcombine.high %v1553_v37, %v1561_v39  ;;  %v1657_v28 = vld [vmem:[#allocation11 + $0xae0] sm:$0xff] }
 0x37c   :  { %4810 = vmatpush1.bf16.msra.mxu0 %v6807_v50  ;;  %v1578_v50 = vld [vmem:[#allocation11 + $0x868] sm:$0xff] }
 0x37d   :  { %4892 = vmatpush1.bf16.msra.mxu1 %v6809_v51  ;;  %4811 = vmatprep.subr.bf16.mxu0 %v6824_v52  ;;  %v6919_v51 = vcombine.low %v1553_v37, %v1561_v39  ;;  %v6921_v52 = vcombine.low %v1554_v40, %v1562_v42  ;;  %v6938_v54 = vcombine.high %v1570_v49, %v1578_v50  ;;  %v1665_v39 = vld [vmem:[#allocation11 + $0xb20] sm:$0xff]  ;;  %v1666_v42 = vld [vmem:[#allocation11 + $0xb28] sm:$0xff] }
 0x37e   :  { %4893 = vmatprep.subr.bf16.mxu1 %v6826_v53  ;;  %v6936_v53 = vcombine.high %v1569_v48, %v1577_v8  ;;  %v1673_v40 = vld [vmem:[#allocation11 + $0xb60] sm:$0xff] }
 0x380   :  { %4812 = vmatpush1.bf16.msra.mxu0 %v6823_v13  ;;  %v1586_v13 = vld [vmem:[#allocation11 + $0x8a8] sm:$0xff] }
 0x381   :  { %4894 = vmatpush1.bf16.msra.mxu1 %v6825_v57  ;;  %4813 = vmatprep.subr.bf16.mxu0 %v6840_v58  ;;  %v1594_v57 = vld [vmem:[#allocation11 + $0x8e8] sm:$0xff]  ;;  %v6937_v58 = vcombine.low %v1570_v49, %v1578_v50  ;;  %v1681_v50 = vld [vmem:[#allocation11 + $0xba0] sm:$0xff] }
 0x382   :  { %4895 = vmatprep.subr.bf16.mxu1 %v6842_v60  ;;  %v6952_v60 = vcombine.high %v1585_v55, %v1593_v24  ;;  %v6954_v62 = vcombine.high %v1586_v13, %v1594_v57 }
 0x384   :  { %4814 = vmatpush1.bf16.msra.mxu0 %v6839_v0  ;;  %v1610_v0 = vld [vmem:[#allocation11 + $0x968] sm:$0xff] }
 0x385   :  { %4896 = vmatpush1.bf16.msra.mxu1 %v6841_v1  ;;  %4815 = vmatprep.subr.bf16.mxu0 %v6856_v2  ;;  %v6951_v1 = vcombine.low %v1585_v55, %v1593_v24  ;;  %v6953_v2 = vcombine.low %v1586_v13, %v1594_v57  ;;  %v6970_v4 = vcombine.high %v1602_v63, %v1610_v0  ;;  %v1690_v55 = vld [vmem:[#allocation11 + $0xbe8] sm:$0xff] }
 0x386   :  { %4897 = vmatprep.subr.bf16.mxu1 %v6858_v3  ;;  %v6968_v3 = vcombine.high %v1601_v61, %v1609_v41  ;;  %v7031_v13 = vcombine.low %v1665_v39, %v1673_v40 }
 0x388   :  { %4816 = vmatpush1.bf16.msra.mxu0 %v6855_v9  ;;  %v1626_v9 = vld [vmem:[#allocation11 + $0x9e8] sm:$0xff] }
 0x389   :  { %4898 = vmatpush1.bf16.msra.mxu1 %v6857_v10  ;;  %4817 = vmatprep.subr.bf16.mxu0 %v6872_v11  ;;  %v6967_v10 = vcombine.low %v1601_v61, %v1609_v41  ;;  %v6969_v11 = vcombine.low %v1602_v63, %v1610_v0  ;;  %v6986_v14 = vcombine.high %v1618_v7, %v1626_v9  ;;  %v1705_v63 = vld [vmem:[#allocation11 + $0xc60] sm:$0xff]  ;;  %v1698_v0 = vld [vmem:[#allocation11 + $0xc28] sm:$0xff] }
 0x38a   :  { %4899 = vmatprep.subr.bf16.mxu1 %v6874_v12  ;;  %v6984_v12 = vcombine.high %v1617_v5, %v1625_v6 }
 0x38c   :  { %4818 = vmatpush1.bf16.msra.mxu0 %v6871_v18  ;;  %v1642_v18 = vld [vmem:[#allocation11 + $0xa68] sm:$0xff] }
 0x38d   :  { %4900 = vmatpush1.bf16.msra.mxu1 %v6873_v19  ;;  %4819 = vmatprep.subr.bf16.mxu0 %v6888_v20  ;;  %v6983_v19 = vcombine.low %v1617_v5, %v1625_v6  ;;  %v6985_v20 = vcombine.low %v1618_v7, %v1626_v9  ;;  %v7002_v26 = vcombine.high %v1634_v17, %v1642_v18  ;;  %v1713_v6 = vld [vmem:[#allocation11 + $0xca0] sm:$0xff]  ;;  %v1714_v9 = vld [vmem:[#allocation11 + $0xca8] sm:$0xff] }
 0x38e   :  { %4901 = vmatprep.subr.bf16.mxu1 %v6890_v21  ;;  %v7000_v21 = vcombine.high %v1633_v15, %v1641_v16  ;;  %v1721_v7 = vld [vmem:[#allocation11 + $0xce0] sm:$0xff] }
 0x390   :  { %4820 = vmatpush1.bf16.msra.mxu0 %v6887_v31  ;;  %v1658_v31 = vld [vmem:[#allocation11 + $0xae8] sm:$0xff] }
 0x391   :  { %4902 = vmatpush1.bf16.msra.mxu1 %v6889_v32  ;;  %4821 = vmatprep.subr.bf16.mxu0 %v6904_v33  ;;  %v6999_v32 = vcombine.low %v1633_v15, %v1641_v16  ;;  %v7001_v33 = vcombine.low %v1634_v17, %v1642_v18  ;;  %v7018_v37 = vcombine.high %v1650_v30, %v1658_v31  ;;  %v1729_v16 = vld [vmem:[#allocation11 + $0xd20] sm:$0xff]  ;;  %v1730_v18 = vld [vmem:[#allocation11 + $0xd28] sm:$0xff] }
 0x392   :  { %4903 = vmatprep.subr.bf16.mxu1 %v6906_v34  ;;  %v7016_v34 = vcombine.high %v1649_v27, %v1657_v28  ;;  %v1737_v17 = vld [vmem:[#allocation11 + $0xd60] sm:$0xff] }
 0x394   :  { %4822 = vmatpush1.bf16.msra.mxu0 %v6903_v43  ;;  %v1674_v43 = vld [vmem:[#allocation11 + $0xb68] sm:$0xff] }
 0x395   :  { %4904 = vmatpush1.bf16.msra.mxu1 %v6905_v44  ;;  %4823 = vmatprep.subr.bf16.mxu0 %v6920_v46  ;;  %v7015_v44 = vcombine.low %v1649_v27, %v1657_v28  ;;  %v7017_v46 = vcombine.low %v1650_v30, %v1658_v31  ;;  %v7034_v49 = vcombine.high %v1666_v42, %v1674_v43  ;;  %v1745_v28 = vld [vmem:[#allocation11 + $0xda0] sm:$0xff]  ;;  %v1746_v31 = vld [vmem:[#allocation11 + $0xda8] sm:$0xff] }
 0x396   :  { %4905 = vmatprep.subr.bf16.mxu1 %v6922_v47  ;;  %v7032_v47 = vcombine.high %v1665_v39, %v1673_v40  ;;  %v1753_v30 = vld [vmem:[#allocation11 + $0xde0] sm:$0xff] }
 0x397   :  { %v1761_v40 = vld [vmem:[#allocation11 + $0xe20] sm:$0xff] }
 0x398   :  { %4824 = vmatpush1.bf16.msra.mxu0 %v6919_v51  ;;  %v1689_v51 = vld [vmem:[#allocation11 + $0xbe0] sm:$0xff] }
 0x399   :  { %4906 = vmatpush1.bf16.msra.mxu1 %v6921_v52  ;;  %4834 = vmatprep.subr.bf16.mxu0 %v6936_v53  ;;  %v7048_v61 = vcombine.high %v1681_v50, %v1689_v51 }
 0x39a   :  { %4916 = vmatprep.subr.bf16.mxu1 %v6938_v54  ;;  %v1682_v54 = vld [vmem:[#allocation11 + $0xba8] sm:$0xff] }
 0x39b   :  { %4826 = vmatmul.mubr.bf16.vlgmr.msra.gmra.mrb[16].mxu0 %v8317_v36  ;;  %v7050_v41 = vcombine.high %v1682_v54, %v1690_v55 }
 0x39c   :  { %4908 = vmatmul.mubr.bf16.vlgmr.msra.gmra.mrb[16].mxu1 %v8317_v36  ;;  %4835 = vmatpush1.bf16.msra.mxu0 %v6935_v56 }
 0x39d   :  { %4866 = vmatprep.mubr.bf16.mxu0 %v8321_v45  ;;  %4917 = vmatpush1.bf16.msra.mxu1 %v6937_v58 }
 0x39e   :  { %4948 = vmatprep.mubr.bf16.mxu1 %v8321_v45  ;;  %4836 = vmatprep.subr.bf16.mxu0 %v6952_v60  ;;  %v7033_v60 = vcombine.low %v1666_v42, %v1674_v43  ;;  %v1769_v42 = vld [vmem:[#allocation11 + $0xe60] sm:$0xff]  ;;  %v1762_v43 = vld [vmem:[#allocation11 + $0xe28] sm:$0xff] }
 0x39f   :  { %4918 = vmatprep.subr.bf16.mxu1 %v6954_v62  ;;  %v1697_v62 = vld [vmem:[#allocation11 + $0xc20] sm:$0xff] }
 0x3a0   :  { %4837 = vmatpush1.bf16.msra.mxu0 %v6951_v1  ;;  %v1706_v1 = vld [vmem:[#allocation11 + $0xc68] sm:$0xff] }
 0x3a1   :  { %4919 = vmatpush1.bf16.msra.mxu1 %v6953_v2  ;;  %4838 = vmatprep.subr.bf16.mxu0 %v6968_v3  ;;  %v7047_v2 = vcombine.low %v1681_v50, %v1689_v51  ;;  %v7049_v3 = vcombine.low %v1682_v54, %v1690_v55  ;;  %v7066_v5 = vcombine.high %v1698_v0, %v1706_v1  ;;  %v1777_v51 = vld [vmem:[#allocation11 + $0xea0] sm:$0xff]  ;;  %v1778_v55 = vld [vmem:[#allocation11 + $0xea8] sm:$0xff] }
 0x3a2   :  { %4920 = vmatprep.subr.bf16.mxu1 %v6970_v4  ;;  %v7064_v4 = vcombine.high %v1697_v62, %v1705_v63  ;;  %v1785_v54 = vld [vmem:[#allocation11 + $0xee0] sm:$0xff] }
 0x3a4   :  { %4839 = vmatpush1.bf16.msra.mxu0 %v6967_v10  ;;  %v1722_v10 = vld [vmem:[#allocation11 + $0xce8] sm:$0xff] }
 0x3a5   :  { %4921 = vmatpush1.bf16.msra.mxu1 %v6969_v11  ;;  %4840 = vmatprep.subr.bf16.mxu0 %v6984_v12  ;;  %v7063_v11 = vcombine.low %v1697_v62, %v1705_v63  ;;  %v7065_v12 = vcombine.low %v1698_v0, %v1706_v1  ;;  %v7082_v15 = vcombine.high %v1714_v9, %v1722_v10  ;;  %v1802_v62 = vld [vmem:[#allocation11 + $0xf68] sm:$0xff] }
 0x3a6   :  { %4922 = vmatprep.subr.bf16.mxu1 %v6986_v14  ;;  %v7080_v14 = vcombine.high %v1713_v6, %v1721_v7  ;;  %v7143_v63 = vcombine.low %v1777_v51, %v1785_v54 }
 0x3a8   :  { %4841 = vmatpush1.bf16.msra.mxu0 %v6983_v19  ;;  %v1738_v19 = vld [vmem:[#allocation11 + $0xd68] sm:$0xff] }
 0x3a9   :  { %4923 = vmatpush1.bf16.msra.mxu1 %v6985_v20  ;;  %4842 = vmatprep.subr.bf16.mxu0 %v7000_v21  ;;  %v7079_v20 = vcombine.low %v1713_v6, %v1721_v7  ;;  %v7081_v21 = vcombine.low %v1714_v9, %v1722_v10  ;;  %v7098_v27 = vcombine.high %v1730_v18, %v1738_v19  ;;  %v1818_v6 = vld [vmem:[#allocation11 + $0xfe8] sm:$0xff] }
 0x3aa   :  { %4924 = vmatprep.subr.bf16.mxu1 %v7002_v26  ;;  %v7096_v26 = vcombine.high %v1729_v16, %v1737_v17 }
 0x3ac   :  { %4843 = vmatpush1.bf16.msra.mxu0 %v6999_v32  ;;  %v1754_v32 = vld [vmem:[#allocation11 + $0xde8] sm:$0xff] }
 0x3ad   :  { %4925 = vmatpush1.bf16.msra.mxu1 %v7001_v33  ;;  %4844 = vmatprep.subr.bf16.mxu0 %v7016_v34  ;;  %v7095_v33 = vcombine.low %v1729_v16, %v1737_v17  ;;  %v7097_v34 = vcombine.low %v1730_v18, %v1738_v19  ;;  %v7114_v39 = vcombine.high %v1746_v31, %v1754_v32  ;;  %v1324_v16 = vld [vmem:[#allocation11 + $0x78] sm:$0xff] }
 0x3ae   :  { %v8348_v48 = vpop.f32.mrb[8].mxu0  ;;  %v8350_v8 = vpop.f32.mrb[8].mxu1  ;;  %4926 = vmatprep.subr.bf16.mxu1 %v7018_v37  ;;  %v7112_v37 = vcombine.high %v1745_v28, %v1753_v30 }
 0x3af   :  { %v8352_v52 = vpop.f32.mrb[9].mxu0  ;;  %v8354_v53 = vpop.f32.mrb[9].mxu1 }
 0x3b0   :  { %v4544_v24 = vpop.f32.mrb[10].mxu0  ;;  %v4626_v56 = vpop.f32.mrb[10].mxu1  ;;  %4845 = vmatpush1.bf16.msra.mxu0 %v7015_v44  ;;  %v1770_v44 = vld [vmem:[#allocation11 + $0xe68] sm:$0xff] }
 0x3b1   :  { %4927 = vmatpush1.bf16.msra.mxu1 %v7017_v46  ;;  %v4545_v57 = vpop.f32.mrb[11].mxu0  ;;  %v4627_v58 = vpop.f32.mrb[11].mxu1  ;;  %4846 = vmatprep.subr.bf16.mxu0 %v7032_v47  ;;  %v7111_v46 = vcombine.low %v1745_v28, %v1753_v30  ;;  %v7113_v47 = vcombine.low %v1746_v31, %v1754_v32  ;;  %v7130_v50 = vcombine.high %v1762_v43, %v1770_v44  ;;  %v1786_v24 = vld [vmem:[#allocation11 + $0xee8] sm:$0xff]  ;;  %v1332_v28 = vld [vmem:[#allocation11 + $0xb8] sm:$0xff] }
 0x3b2   :  { %4928 = vmatprep.subr.bf16.mxu1 %v7034_v49  ;;  %v7128_v49 = vcombine.high %v1761_v40, %v1769_v42  ;;  %v7127_v56 = vcombine.low %v1761_v40, %v1769_v42  ;;  %v7144_v57 = vcombine.high %v1777_v51, %v1785_v54  ;;  %v7146_v58 = vcombine.high %v1778_v55, %v1786_v24  ;;  %v1340_v30 = vld [vmem:[#allocation11 + $0xf8] sm:$0xff] }
 0x3b3   :  { %v7145_v0 = vcombine.low %v1778_v55, %v1786_v24  ;;  %v1356_v40 = vld [vmem:[#allocation11 + $0x178] sm:$0xff] }
 0x3b4   :  { %4847 = vmatpush1.bf16.msra.mxu0 %v7031_v13  ;;  %v7129_v13 = vcombine.low %v1762_v43, %v1770_v44  ;;  %v6701_v43 = vcombine.low %v1332_v28, %v1340_v30  ;;  %v1372_v51 = vld [vmem:[#allocation11 + $0x1f8] sm:$0xff] }
 0x3b5   :  { %4929 = vmatpush1.bf16.msra.mxu1 %v7033_v60  ;;  %4848 = vmatprep.subr.bf16.mxu0 %v7048_v61  ;;  %v1793_v60 = vld [vmem:[#allocation11 + $0xf20] sm:$0xff] }
 0x3b6   :  { %4930 = vmatprep.subr.bf16.mxu1 %v7050_v41  ;;  %v1801_v61 = vld [vmem:[#allocation11 + $0xf60] sm:$0xff]  ;;  %v1794_v41 = vld [vmem:[#allocation11 + $0xf28] sm:$0xff] }
 0x3b7   :  { %v7160_v1 = vcombine.high %v1793_v60, %v1801_v61  ;;  %v7159_v7 = vcombine.low %v1793_v60, %v1801_v61  ;;  %v7161_v9 = vcombine.low %v1794_v41, %v1802_v62  ;;  %v1388_v60 = vld [vmem:[#allocation11 + $0x278] sm:$0xff] }
 0x3b8   :  { %4849 = vmatpush1.bf16.msra.mxu0 %v7047_v2  ;;  %v7162_v2 = vcombine.high %v1794_v41, %v1802_v62 }
 0x3b9   :  { %4931 = vmatpush1.bf16.msra.mxu1 %v7049_v3  ;;  %4850 = vmatprep.subr.bf16.mxu0 %v7064_v4  ;;  %v1809_v3 = vld [vmem:[#allocation11 + $0xfa0] sm:$0xff] }
 0x3ba   :  { %4932 = vmatprep.subr.bf16.mxu1 %v7066_v5  ;;  %v1817_v4 = vld [vmem:[#allocation11 + $0xfe0] sm:$0xff]  ;;  %v1810_v5 = vld [vmem:[#allocation11 + $0xfa8] sm:$0xff] }
 0x3bb   :  { %v7176_v10 = vcombine.high %v1809_v3, %v1817_v4  ;;  %v7175_v17 = vcombine.low %v1809_v3, %v1817_v4  ;;  %v7177_v18 = vcombine.low %v1810_v5, %v1818_v6 }
 0x3bc   :  { %4851 = vmatpush1.bf16.msra.mxu0 %v7063_v11  ;;  %v7178_v11 = vcombine.high %v1810_v5, %v1818_v6 }
 0x3bd   :  { %4933 = vmatpush1.bf16.msra.mxu1 %v7065_v12  ;;  %4852 = vmatprep.subr.bf16.mxu0 %v7080_v14  ;;  %v1315_v12 = vld [vmem:[#allocation11 + $0x30] sm:$0xff] }
 0x3be   :  { %4934 = vmatprep.subr.bf16.mxu1 %v7082_v15  ;;  %v1323_v14 = vld [vmem:[#allocation11 + $0x70] sm:$0xff]  ;;  %v1316_v15 = vld [vmem:[#allocation11 + $0x38] sm:$0xff] }
 0x3bf   :  { %v6684_v19 = vcombine.high %v1315_v12, %v1323_v14  ;;  %v6685_v31 = vcombine.low %v1316_v15, %v1324_v16 }
 0x3c0   :  { %4853 = vmatpush1.bf16.msra.mxu0 %v7079_v20  ;;  %v6686_v20 = vcombine.high %v1316_v15, %v1324_v16 }
 0x3c1   :  { %4935 = vmatpush1.bf16.msra.mxu1 %v7081_v21  ;;  %4854 = vmatprep.subr.bf16.mxu0 %v7096_v26  ;;  %v1331_v21 = vld [vmem:[#allocation11 + $0xb0] sm:$0xff] }
 0x3c2   :  { %4936 = vmatprep.subr.bf16.mxu1 %v7098_v27  ;;  %v1339_v26 = vld [vmem:[#allocation11 + $0xf0] sm:$0xff]  ;;  %v6683_v27 = vcombine.low %v1315_v12, %v1323_v14 }
 0x3c3   :  { %v6700_v32 = vcombine.high %v1331_v21, %v1339_v26  ;;  %v6699_v42 = vcombine.low %v1331_v21, %v1339_v26 }
 0x3c4   :  { %4855 = vmatpush1.bf16.msra.mxu0 %v7095_v33  ;;  %v1347_v33 = vld [vmem:[#allocation11 + $0x130] sm:$0xff] }
 0x3c5   :  { %4937 = vmatpush1.bf16.msra.mxu1 %v7097_v34  ;;  %4856 = vmatprep.subr.bf16.mxu0 %v7112_v37  ;;  %v1355_v34 = vld [vmem:[#allocation11 + $0x170] sm:$0xff]  ;;  %v6702_v37 = vcombine.high %v1332_v28, %v1340_v30 }
 0x3c6   :  { %4938 = vmatprep.subr.bf16.mxu1 %v7114_v39  ;;  %v1348_v39 = vld [vmem:[#allocation11 + $0x138] sm:$0xff]  ;;  %v6716_v44 = vcombine.high %v1347_v33, %v1355_v34  ;;  %v6715_v54 = vcombine.low %v1347_v33, %v1355_v34  ;;  %v1443_v30 = vld [vmem:[#allocation11 + $0x430] sm:$0xff] }
 0x3c7   :  { %v6717_v55 = vcombine.low %v1348_v39, %v1356_v40  ;;  %v1452_v33 = vld [vmem:[#allocation11 + $0x478] sm:$0xff] }
 0x3c8   :  { %4857 = vmatpush1.bf16.msra.mxu0 %v7111_v46  ;;  %v6718_v46 = vcombine.high %v1348_v39, %v1356_v40 }
 0x3c9   :  { %4939 = vmatpush1.bf16.msra.mxu1 %v7113_v47  ;;  %4858 = vmatprep.subr.bf16.mxu0 %v7128_v49  ;;  %v1363_v47 = vld [vmem:[#allocation11 + $0x1b0] sm:$0xff] }
 0x3ca   :  { %4940 = vmatprep.subr.bf16.mxu1 %v7130_v50  ;;  %v1371_v49 = vld [vmem:[#allocation11 + $0x1f0] sm:$0xff]  ;;  %v1364_v50 = vld [vmem:[#allocation11 + $0x1b8] sm:$0xff] }
 0x3cb   :  { %v6732_v24 = vcombine.high %v1363_v47, %v1371_v49  ;;  %v6733_v61 = vcombine.low %v1364_v50, %v1372_v51 }
 0x3cc   :  { %4859 = vmatpush1.bf16.msra.mxu0 %v7127_v56  ;;  %v6734_v56 = vcombine.high %v1364_v50, %v1372_v51 }
 0x3cd   :  { %4941 = vmatpush1.bf16.msra.mxu1 %v7129_v13  ;;  %4860 = vmatprep.subr.bf16.mxu0 %v7144_v57  ;;  %v1379_v13 = vld [vmem:[#allocation11 + $0x230] sm:$0xff] }
 0x3ce   :  { %4942 = vmatprep.subr.bf16.mxu1 %v7146_v58  ;;  %v1387_v57 = vld [vmem:[#allocation11 + $0x270] sm:$0xff]  ;;  %v1380_v58 = vld [vmem:[#allocation11 + $0x238] sm:$0xff] }
 0x3cf   :  { %v6748_v41 = vcombine.high %v1379_v13, %v1387_v57  ;;  %v6750_v62 = vcombine.high %v1380_v58, %v1388_v60  ;;  %v6747_v3 = vcombine.low %v1379_v13, %v1387_v57  ;;  %v6749_v4 = vcombine.low %v1380_v58, %v1388_v60 }
 0x3d0   :  { %4861 = vmatpush1.bf16.msra.mxu0 %v7143_v63  ;;  %v1395_v63 = vld [vmem:[#allocation11 + $0x2b0] sm:$0xff] }
 0x3d1   :  { %4943 = vmatpush1.bf16.msra.mxu1 %v7145_v0  ;;  %4862 = vmatprep.subr.bf16.mxu0 %v7160_v1  ;;  %v1403_v0 = vld [vmem:[#allocation11 + $0x2f0] sm:$0xff]  ;;  %v1396_v1 = vld [vmem:[#allocation11 + $0x2b8] sm:$0xff] }
 0x3d2   :  { %4944 = vmatprep.subr.bf16.mxu1 %v7162_v2  ;;  %v1404_v2 = vld [vmem:[#allocation11 + $0x2f8] sm:$0xff]  ;;  %v6764_v5 = vcombine.high %v1395_v63, %v1403_v0  ;;  %v6763_v12 = vcombine.low %v1395_v63, %v1403_v0 }
 0x3d3   :  { %v6766_v6 = vcombine.high %v1396_v1, %v1404_v2  ;;  %v6765_v14 = vcombine.low %v1396_v1, %v1404_v2 }
 0x3d4   :  { %4863 = vmatpush1.bf16.msra.mxu0 %v7159_v7  ;;  %v1411_v7 = vld [vmem:[#allocation11 + $0x330] sm:$0xff] }
 0x3d5   :  { %4945 = vmatpush1.bf16.msra.mxu1 %v7161_v9  ;;  %4864 = vmatprep.subr.bf16.mxu0 %v7176_v10  ;;  %v1419_v9 = vld [vmem:[#allocation11 + $0x370] sm:$0xff]  ;;  %v1412_v10 = vld [vmem:[#allocation11 + $0x338] sm:$0xff] }
 0x3d6   :  { %4946 = vmatprep.subr.bf16.mxu1 %v7178_v11  ;;  %v1420_v11 = vld [vmem:[#allocation11 + $0x378] sm:$0xff]  ;;  %v6780_v15 = vcombine.high %v1411_v7, %v1419_v9  ;;  %v6779_v21 = vcombine.low %v1411_v7, %v1419_v9 }
 0x3d7   :  { %v6782_v16 = vcombine.high %v1412_v10, %v1420_v11  ;;  %v6781_v26 = vcombine.low %v1412_v10, %v1420_v11 }
 0x3d8   :  { %4865 = vmatpush1.bf16.msra.mxu0 %v7175_v17  ;;  %v1427_v17 = vld [vmem:[#allocation11 + $0x3b0] sm:$0xff] }
 0x3d9   :  { %4947 = vmatpush1.bf16.msra.mxu1 %v7177_v18  ;;  %4957 = vmatprep.subr.bf16.mxu0 %v6684_v19  ;;  %v1435_v18 = vld [vmem:[#allocation11 + $0x3f0] sm:$0xff]  ;;  %v1428_v19 = vld [vmem:[#allocation11 + $0x3b8] sm:$0xff] }
 0x3da   :  { %5039 = vmatprep.subr.bf16.mxu1 %v6686_v20  ;;  %v1436_v20 = vld [vmem:[#allocation11 + $0x3f8] sm:$0xff]  ;;  %v6795_v34 = vcombine.low %v1427_v17, %v1435_v18 }
 0x3db   :  { %4867 = vmatmul.mubr.bf16.vlgmr.msra.gmra.mrb[16].mxu0 %v8330_v59  ;;  %v6798_v28 = vcombine.high %v1428_v19, %v1436_v20 }
 0x3dc   :  { %4949 = vmatmul.mubr.bf16.vlgmr.msra.gmra.mrb[16].mxu1 %v8330_v59  ;;  %4958 = vmatpush1.bf16.msra.mxu0 %v6683_v27  ;;  %v6796_v27 = vcombine.high %v1427_v17, %v1435_v18 }
 0x3dd   :  { %4989 = vmatprep.mubr.bf16.mxu0 %v8315_v35  ;;  %5040 = vmatpush1.bf16.msra.mxu1 %v6685_v31  ;;  %v1451_v31 = vld [vmem:[#allocation11 + $0x470] sm:$0xff] }
 0x3de   :  { %5071 = vmatprep.mubr.bf16.mxu1 %v8315_v35  ;;  %4959 = vmatprep.subr.bf16.mxu0 %v6700_v32  ;;  %v6731_v35 = vcombine.low %v1363_v47, %v1371_v49  ;;  %v1444_v32 = vld [vmem:[#allocation11 + $0x438] sm:$0xff]  ;;  %v6812_v39 = vcombine.high %v1443_v30, %v1451_v31  ;;  %v6811_v47 = vcombine.low %v1443_v30, %v1451_v31 }
 0x3df   :  { %5041 = vmatprep.subr.bf16.mxu1 %v6702_v37  ;;  %v6797_v37 = vcombine.low %v1428_v19, %v1436_v20  ;;  %v6814_v40 = vcombine.high %v1444_v32, %v1452_v33  ;;  %v6813_v49 = vcombine.low %v1444_v32, %v1452_v33 }
 0x3e0   :  { %4960 = vmatpush1.bf16.msra.mxu0 %v6699_v42  ;;  %v1459_v42 = vld [vmem:[#allocation11 + $0x4b0] sm:$0xff] }
 0x3e1   :  { %5042 = vmatpush1.bf16.msra.mxu1 %v6701_v43  ;;  %4961 = vmatprep.subr.bf16.mxu0 %v6716_v44  ;;  %v1467_v43 = vld [vmem:[#allocation11 + $0x4f0] sm:$0xff]  ;;  %v1460_v44 = vld [vmem:[#allocation11 + $0x4b8] sm:$0xff] }
 0x3e2   :  { %5043 = vmatprep.subr.bf16.mxu1 %v6718_v46  ;;  %v1468_v46 = vld [vmem:[#allocation11 + $0x4f8] sm:$0xff]  ;;  %v6828_v50 = vcombine.high %v1459_v42, %v1467_v43  ;;  %v6827_v13 = vcombine.low %v1459_v42, %v1467_v43 }
 0x3e3   :  { %v6830_v51 = vcombine.high %v1460_v44, %v1468_v46  ;;  %v6829_v57 = vcombine.low %v1460_v44, %v1468_v46 }
 0x3e4   :  { %4962 = vmatpush1.bf16.msra.mxu0 %v6715_v54  ;;  %v1475_v54 = vld [vmem:[#allocation11 + $0x530] sm:$0xff] }
 0x3e5   :  { %5044 = vmatpush1.bf16.msra.mxu1 %v6717_v55  ;;  %4963 = vmatprep.subr.bf16.mxu0 %v6732_v24  ;;  %v1483_v55 = vld [vmem:[#allocation11 + $0x570] sm:$0xff]  ;;  %v1476_v24 = vld [vmem:[#allocation11 + $0x538] sm:$0xff] }
 0x3e6   :  { %5045 = vmatprep.subr.bf16.mxu1 %v6734_v56  ;;  %v1484_v56 = vld [vmem:[#allocation11 + $0x578] sm:$0xff]  ;;  %v6844_v58 = vcombine.high %v1475_v54, %v1483_v55  ;;  %v6843_v63 = vcombine.low %v1475_v54, %v1483_v55 }
 0x3e7   :  { %v6846_v60 = vcombine.high %v1476_v24, %v1484_v56  ;;  %v6845_v0 = vcombine.low %v1476_v24, %v1484_v56 }
 0x3e8   :  { %4964 = vmatpush1.bf16.msra.mxu0 %v6731_v35  ;;  %v1491_v35 = vld [vmem:[#allocation11 + $0x5b0] sm:$0xff] }
 0x3e9   :  { %5046 = vmatpush1.bf16.msra.mxu1 %v6733_v61  ;;  %4965 = vmatprep.subr.bf16.mxu0 %v6748_v41  ;;  %v1499_v61 = vld [vmem:[#allocation11 + $0x5f0] sm:$0xff]  ;;  %v1492_v41 = vld [vmem:[#allocation11 + $0x5b8] sm:$0xff] }
 0x3ea   :  { %5047 = vmatprep.subr.bf16.mxu1 %v6750_v62  ;;  %v1500_v62 = vld [vmem:[#allocation11 + $0x5f8] sm:$0xff]  ;;  %v6860_v1 = vcombine.high %v1491_v35, %v1499_v61  ;;  %v6859_v7 = vcombine.low %v1491_v35, %v1499_v61 }
 0x3eb   :  { %v6862_v2 = vcombine.high %v1492_v41, %v1500_v62  ;;  %v6861_v9 = vcombine.low %v1492_v41, %v1500_v62  ;;  %v1596_v35 = vld [vmem:[#allocation11 + $0x8f8] sm:$0xff]  ;;  %v1603_v62 = vld [vmem:[#allocation11 + $0x930] sm:$0xff] }
 0x3ec   :  { %4966 = vmatpush1.bf16.msra.mxu0 %v6747_v3  ;;  %v1507_v3 = vld [vmem:[#allocation11 + $0x630] sm:$0xff] }
 0x3ed   :  { %5048 = vmatpush1.bf16.msra.mxu1 %v6749_v4  ;;  %4967 = vmatprep.subr.bf16.mxu0 %v6764_v5  ;;  %v1515_v4 = vld [vmem:[#allocation11 + $0x670] sm:$0xff]  ;;  %v1508_v5 = vld [vmem:[#allocation11 + $0x638] sm:$0xff] }
 0x3ee   :  { %5049 = vmatprep.subr.bf16.mxu1 %v6766_v6  ;;  %v1516_v6 = vld [vmem:[#allocation11 + $0x678] sm:$0xff]  ;;  %v6876_v10 = vcombine.high %v1507_v3, %v1515_v4  ;;  %v6875_v17 = vcombine.low %v1507_v3, %v1515_v4 }
 0x3ef   :  { %v6878_v11 = vcombine.high %v1508_v5, %v1516_v6  ;;  %v6877_v18 = vcombine.low %v1508_v5, %v1516_v6 }
 0x3f0   :  { %4968 = vmatpush1.bf16.msra.mxu0 %v6763_v12  ;;  %v1523_v12 = vld [vmem:[#allocation11 + $0x6b0] sm:$0xff] }
 0x3f1   :  { %5050 = vmatpush1.bf16.msra.mxu1 %v6765_v14  ;;  %4969 = vmatprep.subr.bf16.mxu0 %v6780_v15  ;;  %v1531_v14 = vld [vmem:[#allocation11 + $0x6f0] sm:$0xff]  ;;  %v1524_v15 = vld [vmem:[#allocation11 + $0x6b8] sm:$0xff] }
 0x3f2   :  { %5051 = vmatprep.subr.bf16.mxu1 %v6782_v16  ;;  %v1532_v16 = vld [vmem:[#allocation11 + $0x6f8] sm:$0xff]  ;;  %v6892_v19 = vcombine.high %v1523_v12, %v1531_v14  ;;  %v6891_v30 = vcombine.low %v1523_v12, %v1531_v14 }
 0x3f3   :  { %v6894_v20 = vcombine.high %v1524_v15, %v1532_v16  ;;  %v6893_v31 = vcombine.low %v1524_v15, %v1532_v16  ;;  %v1635_v16 = vld [vmem:[#allocation11 + $0xa30] sm:$0xff] }
 0x3f4   :  { %4970 = vmatpush1.bf16.msra.mxu0 %v6779_v21  ;;  %v1539_v21 = vld [vmem:[#allocation11 + $0x730] sm:$0xff] }
 0x3f5   :  { %5052 = vmatpush1.bf16.msra.mxu1 %v6781_v26  ;;  %4971 = vmatprep.subr.bf16.mxu0 %v6796_v27  ;;  %v1547_v26 = vld [vmem:[#allocation11 + $0x770] sm:$0xff]  ;;  %v1540_v27 = vld [vmem:[#allocation11 + $0x738] sm:$0xff] }
 0x3f6   :  { %5053 = vmatprep.subr.bf16.mxu1 %v6798_v28  ;;  %v1548_v28 = vld [vmem:[#allocation11 + $0x778] sm:$0xff]  ;;  %v6908_v32 = vcombine.high %v1539_v21, %v1547_v26  ;;  %v6907_v42 = vcombine.low %v1539_v21, %v1547_v26 }
 0x3f7   :  { %v6910_v33 = vcombine.high %v1540_v27, %v1548_v28  ;;  %v6909_v43 = vcombine.low %v1540_v27, %v1548_v28  ;;  %v1651_v27 = vld [vmem:[#allocation11 + $0xab0] sm:$0xff] }
 0x3f8   :  { %4972 = vmatpush1.bf16.msra.mxu0 %v6795_v34  ;;  %v1555_v34 = vld [vmem:[#allocation11 + $0x7b0] sm:$0xff] }
 0x3f9   :  { %5054 = vmatpush1.bf16.msra.mxu1 %v6797_v37  ;;  %4973 = vmatprep.subr.bf16.mxu0 %v6812_v39  ;;  %v1563_v37 = vld [vmem:[#allocation11 + $0x7f0] sm:$0xff]  ;;  %v1556_v39 = vld [vmem:[#allocation11 + $0x7b8] sm:$0xff] }
 0x3fa   :  { %5055 = vmatprep.subr.bf16.mxu1 %v6814_v40  ;;  %v1564_v40 = vld [vmem:[#allocation11 + $0x7f8] sm:$0xff]  ;;  %v6924_v44 = vcombine.high %v1555_v34, %v1563_v37  ;;  %v6923_v54 = vcombine.low %v1555_v34, %v1563_v37  ;;  %v1659_v28 = vld [vmem:[#allocation11 + $0xaf0] sm:$0xff] }
 0x3fb   :  { %v6926_v46 = vcombine.high %v1556_v39, %v1564_v40  ;;  %v6925_v55 = vcombine.low %v1556_v39, %v1564_v40  ;;  %v7020_v34 = vcombine.high %v1651_v27, %v1659_v28  ;;  %v1667_v39 = vld [vmem:[#allocation11 + $0xb30] sm:$0xff] }
 0x3fc   :  { %4974 = vmatpush1.bf16.msra.mxu0 %v6811_v47  ;;  %v1571_v47 = vld [vmem:[#allocation11 + $0x830] sm:$0xff] }
 0x3fd   :  { %5056 = vmatpush1.bf16.msra.mxu1 %v6813_v49  ;;  %4975 = vmatprep.subr.bf16.mxu0 %v6828_v50  ;;  %v1579_v49 = vld [vmem:[#allocation11 + $0x870] sm:$0xff]  ;;  %v1572_v50 = vld [vmem:[#allocation11 + $0x838] sm:$0xff] }
 0x3fe   :  { %5057 = vmatprep.subr.bf16.mxu1 %v6830_v51  ;;  %v1580_v51 = vld [vmem:[#allocation11 + $0x878] sm:$0xff]  ;;  %v6940_v24 = vcombine.high %v1571_v47, %v1579_v49  ;;  %v1675_v40 = vld [vmem:[#allocation11 + $0xb70] sm:$0xff] }
 0x3ff   :  { %v6942_v56 = vcombine.high %v1572_v50, %v1580_v51  ;;  %v6941_v61 = vcombine.low %v1572_v50, %v1580_v51  ;;  %v1683_v51 = vld [vmem:[#allocation11 + $0xbb0] sm:$0xff] }
 0x400   :  { %4976 = vmatpush1.bf16.msra.mxu0 %v6827_v13  ;;  %v1587_v13 = vld [vmem:[#allocation11 + $0x8b0] sm:$0xff] }
 0x401   :  { %5058 = vmatpush1.bf16.msra.mxu1 %v6829_v57  ;;  %4977 = vmatprep.subr.bf16.mxu0 %v6844_v58  ;;  %v1595_v57 = vld [vmem:[#allocation11 + $0x8f0] sm:$0xff]  ;;  %v6939_v58 = vcombine.low %v1571_v47, %v1579_v49  ;;  %v7036_v47 = vcombine.high %v1667_v39, %v1675_v40 }
 0x402   :  { %5059 = vmatprep.subr.bf16.mxu1 %v6846_v60  ;;  %v1588_v60 = vld [vmem:[#allocation11 + $0x8b8] sm:$0xff]  ;;  %v6956_v41 = vcombine.high %v1587_v13, %v1595_v57  ;;  %v6955_v3 = vcombine.low %v1587_v13, %v1595_v57 }
 0x403   :  { %v6957_v4 = vcombine.low %v1588_v60, %v1596_v35  ;;  %v1692_v13 = vld [vmem:[#allocation11 + $0xbf8] sm:$0xff] }
 0x404   :  { %4978 = vmatpush1.bf16.msra.mxu0 %v6843_v63  ;;  %v1611_v63 = vld [vmem:[#allocation11 + $0x970] sm:$0xff] }
 0x405   :  { %5060 = vmatpush1.bf16.msra.mxu1 %v6845_v0  ;;  %4979 = vmatprep.subr.bf16.mxu0 %v6860_v1  ;;  %v6958_v0 = vcombine.high %v1588_v60, %v1596_v35  ;;  %v1604_v1 = vld [vmem:[#allocation11 + $0x938] sm:$0xff]  ;;  %v6972_v5 = vcombine.high %v1603_v62, %v1611_v63  ;;  %v6971_v12 = vcombine.low %v1603_v62, %v1611_v63 }
 0x406   :  { %5061 = vmatprep.subr.bf16.mxu1 %v6862_v2  ;;  %v1612_v2 = vld [vmem:[#allocation11 + $0x978] sm:$0xff]  ;;  %v7035_v60 = vcombine.low %v1667_v39, %v1675_v40 }
 0x407   :  { %v6974_v6 = vcombine.high %v1604_v1, %v1612_v2 }
 0x408   :  { %4980 = vmatpush1.bf16.msra.mxu0 %v6859_v7  ;;  %v1619_v7 = vld [vmem:[#allocation11 + $0x9b0] sm:$0xff] }
 0x409   :  { %5062 = vmatpush1.bf16.msra.mxu1 %v6861_v9  ;;  %4981 = vmatprep.subr.bf16.mxu0 %v6876_v10  ;;  %v1627_v9 = vld [vmem:[#allocation11 + $0x9f0] sm:$0xff]  ;;  %v1620_v10 = vld [vmem:[#allocation11 + $0x9b8] sm:$0xff] }
 0x40a   :  { %5063 = vmatprep.subr.bf16.mxu1 %v6878_v11  ;;  %v1628_v11 = vld [vmem:[#allocation11 + $0x9f8] sm:$0xff]  ;;  %v6988_v14 = vcombine.high %v1619_v7, %v1627_v9 }
 0x40b   :  { %v6990_v15 = vcombine.high %v1620_v10, %v1628_v11 }
 0x40c   :  { %4982 = vmatpush1.bf16.msra.mxu0 %v6875_v17  ;;  %v1643_v17 = vld [vmem:[#allocation11 + $0xa70] sm:$0xff] }
 0x40d   :  { %5064 = vmatpush1.bf16.msra.mxu1 %v6877_v18  ;;  %4983 = vmatprep.subr.bf16.mxu0 %v6892_v19  ;;  %v1636_v18 = vld [vmem:[#allocation11 + $0xa38] sm:$0xff]  ;;  %v7004_v21 = vcombine.high %v1635_v16, %v1643_v17 }
 0x40e   :  { %5065 = vmatprep.subr.bf16.mxu1 %v6894_v20  ;;  %v1644_v19 = vld [vmem:[#allocation11 + $0xa78] sm:$0xff]  ;;  %v6989_v20 = vcombine.low %v1620_v10, %v1628_v11  ;;  %v1715_v10 = vld [vmem:[#allocation11 + $0xcb0] sm:$0xff] }
 0x40f   :  { %v7006_v26 = vcombine.high %v1636_v18, %v1644_v19  ;;  %v1723_v11 = vld [vmem:[#allocation11 + $0xcf0] sm:$0xff] }
 0x410   :  { %4984 = vmatpush1.bf16.msra.mxu0 %v6891_v30  ;;  %v1652_v30 = vld [vmem:[#allocation11 + $0xab8] sm:$0xff] }
 0x411   :  { %5066 = vmatpush1.bf16.msra.mxu1 %v6893_v31  ;;  %4985 = vmatprep.subr.bf16.mxu0 %v6908_v32  ;;  %v1660_v31 = vld [vmem:[#allocation11 + $0xaf8] sm:$0xff]  ;;  %v7003_v32 = vcombine.low %v1635_v16, %v1643_v17  ;;  %v7084_v16 = vcombine.high %v1715_v10, %v1723_v11 }
 0x412   :  { %5067 = vmatprep.subr.bf16.mxu1 %v6910_v33  ;;  %v7005_v33 = vcombine.low %v1636_v18, %v1644_v19  ;;  %v7022_v37 = vcombine.high %v1652_v30, %v1660_v31  ;;  %v1731_v18 = vld [vmem:[#allocation11 + $0xd30] sm:$0xff] }
 0x413   :  { %v1739_v19 = vld [vmem:[#allocation11 + $0xd70] sm:$0xff] }
 0x414   :  { %4986 = vmatpush1.bf16.msra.mxu0 %v6907_v42  ;;  %v1668_v42 = vld [vmem:[#allocation11 + $0xb38] sm:$0xff] }
 0x415   :  { %5068 = vmatpush1.bf16.msra.mxu1 %v6909_v43  ;;  %4987 = vmatprep.subr.bf16.mxu0 %v6924_v44  ;;  %v1676_v43 = vld [vmem:[#allocation11 + $0xb78] sm:$0xff]  ;;  %v7019_v44 = vcombine.low %v1651_v27, %v1659_v28  ;;  %v7100_v27 = vcombine.high %v1731_v18, %v1739_v19 }
 0x416   :  { %5069 = vmatprep.subr.bf16.mxu1 %v6926_v46  ;;  %v7021_v46 = vcombine.low %v1652_v30, %v1660_v31  ;;  %v7038_v50 = vcombine.high %v1668_v42, %v1676_v43  ;;  %v1747_v30 = vld [vmem:[#allocation11 + $0xdb0] sm:$0xff] }
 0x417   :  { %v1755_v31 = vld [vmem:[#allocation11 + $0xdf0] sm:$0xff] }
 0x418   :  { %4988 = vmatpush1.bf16.msra.mxu0 %v6923_v54  ;;  %v1691_v54 = vld [vmem:[#allocation11 + $0xbf0] sm:$0xff]  ;;  %v7116_v39 = vcombine.high %v1747_v30, %v1755_v31 }
 0x419   :  { %5070 = vmatpush1.bf16.msra.mxu1 %v6925_v55  ;;  %4998 = vmatprep.subr.bf16.mxu0 %v6940_v24  ;;  %v7052_v62 = vcombine.high %v1683_v51, %v1691_v54 }
 0x41a   :  { %5080 = vmatprep.subr.bf16.mxu1 %v6942_v56  ;;  %v1684_v56 = vld [vmem:[#allocation11 + $0xbb8] sm:$0xff] }
 0x41b   :  { %4990 = vmatmul.mubr.bf16.vlgmr.msra.gmra.mrb[20].mxu0 %v8317_v36 }
 0x41c   :  { %5072 = vmatmul.mubr.bf16.vlgmr.msra.gmra.mrb[20].mxu1 %v8317_v36  ;;  %4999 = vmatpush1.bf16.msra.mxu0 %v6939_v58  ;;  %v6973_v36 = vcombine.low %v1604_v1, %v1612_v2  ;;  %v1699_v1 = vld [vmem:[#allocation11 + $0xc30] sm:$0xff] }
 0x41d   :  { %5030 = vmatprep.mubr.bf16.mxu0 %v8321_v45  ;;  %5081 = vmatpush1.bf16.msra.mxu1 %v6941_v61  ;;  %v1707_v2 = vld [vmem:[#allocation11 + $0xc70] sm:$0xff] }
 0x41e   :  { %5112 = vmatprep.mubr.bf16.mxu1 %v8321_v45  ;;  %5000 = vmatprep.subr.bf16.mxu0 %v6956_v41  ;;  %v6987_v45 = vcombine.low %v1619_v7, %v1627_v9  ;;  %v7037_v41 = vcombine.low %v1668_v42, %v1676_v43  ;;  %v7068_v7 = vcombine.high %v1699_v1, %v1707_v2  ;;  %v1763_v42 = vld [vmem:[#allocation11 + $0xe30] sm:$0xff] }
 0x41f   :  { %5082 = vmatprep.subr.bf16.mxu1 %v6958_v0  ;;  %v7054_v0 = vcombine.high %v1684_v56, %v1692_v13  ;;  %v1771_v43 = vld [vmem:[#allocation11 + $0xe70] sm:$0xff] }
 0x420   :  { %5001 = vmatpush1.bf16.msra.mxu0 %v6955_v3  ;;  %v1700_v3 = vld [vmem:[#allocation11 + $0xc38] sm:$0xff] }
 0x421   :  { %5083 = vmatpush1.bf16.msra.mxu1 %v6957_v4  ;;  %5002 = vmatprep.subr.bf16.mxu0 %v6972_v5  ;;  %v1708_v4 = vld [vmem:[#allocation11 + $0xc78] sm:$0xff]  ;;  %v7051_v5 = vcombine.low %v1683_v51, %v1691_v54  ;;  %v7132_v51 = vcombine.high %v1763_v42, %v1771_v43 }
 0x422   :  { %5084 = vmatprep.subr.bf16.mxu1 %v6974_v6  ;;  %v7053_v6 = vcombine.low %v1684_v56, %v1692_v13  ;;  %v7070_v9 = vcombine.high %v1700_v3, %v1708_v4  ;;  %v1779_v56 = vld [vmem:[#allocation11 + $0xeb0] sm:$0xff] }
 0x423   :  { %v1787_v13 = vld [vmem:[#allocation11 + $0xef0] sm:$0xff] }
 0x424   :  { %5003 = vmatpush1.bf16.msra.mxu0 %v6971_v12  ;;  %v1716_v12 = vld [vmem:[#allocation11 + $0xcb8] sm:$0xff] }
 0x425   :  { %5085 = vmatpush1.bf16.msra.mxu1 %v6973_v36  ;;  %5004 = vmatprep.subr.bf16.mxu0 %v6988_v14  ;;  %v1724_v36 = vld [vmem:[#allocation11 + $0xcf8] sm:$0xff]  ;;  %v7067_v14 = vcombine.low %v1699_v1, %v1707_v2 }
 0x426   :  { %5086 = vmatprep.subr.bf16.mxu1 %v6990_v15  ;;  %v7069_v15 = vcombine.low %v1700_v3, %v1708_v4  ;;  %v7086_v17 = vcombine.high %v1716_v12, %v1724_v36  ;;  %v1796_v1 = vld [vmem:[#allocation11 + $0xf38] sm:$0xff]  ;;  %v8372_v3 = vld [vmem:[#allocation13] sm:$0xff]  ;;  %v7147_v4 = vcombine.low %v1779_v56, %v1787_v13 }
 0x427   :  { %v1804_v2 = vld [vmem:[#allocation11 + $0xf78] sm:$0xff] }
 0x428   :  { %5005 = vmatpush1.bf16.msra.mxu0 %v6987_v45  ;;  %v1732_v45 = vld [vmem:[#allocation11 + $0xd38] sm:$0xff] }
 0x429   :  { %5087 = vmatpush1.bf16.msra.mxu1 %v6989_v20  ;;  %5006 = vmatprep.subr.bf16.mxu0 %v7004_v21  ;;  %v1740_v20 = vld [vmem:[#allocation11 + $0xd78] sm:$0xff]  ;;  %v7083_v21 = vcombine.low %v1715_v10, %v1723_v11  ;;  %v1819_v10 = vld [vmem:[#allocation11 + $0xff0] sm:$0xff]  ;;  %v1832_v11 = vrot.slane %v8372_v3, %v8286_v25 }
 0x42a   :  { %5088 = vmatprep.subr.bf16.mxu1 %v7006_v26  ;;  %v7085_v26 = vcombine.low %v1716_v12, %v1724_v36  ;;  %v7102_v28 = vcombine.high %v1732_v45, %v1740_v20  ;;  %v1812_v12 = vld [vmem:[#allocation11 + $0xfb8] sm:$0xff] }
 0x42b   :  { %v1820_v36 = vld [vmem:[#allocation11 + $0xff8] sm:$0xff] }
 0x42c   :  { %5007 = vmatpush1.bf16.msra.mxu0 %v7003_v32  ;;  %v1748_v32 = vld [vmem:[#allocation11 + $0xdb8] sm:$0xff] }
 0x42d   :  { %5089 = vmatpush1.bf16.msra.mxu1 %v7005_v33  ;;  %5008 = vmatprep.subr.bf16.mxu0 %v7020_v34  ;;  %v1756_v33 = vld [vmem:[#allocation11 + $0xdf8] sm:$0xff]  ;;  %v7099_v34 = vcombine.low %v1731_v18, %v1739_v19  ;;  %v7182_v18 = vcombine.high %v1812_v12, %v1820_v36  ;;  %v7493_v19 = vadd.f32 %v8352_v52, %v1832_v11  ;;  %v7780_v52 = vld [vmem:[%s8833_s7] sm:$0xff]  }
 0x42e   :  { %v8364_v49 = vpop.f32.mrb[12].mxu0  ;;  %5090 = vmatprep.subr.bf16.mxu1 %v7022_v37  ;;  %v7101_v37 = vcombine.low %v1732_v45, %v1740_v20  ;;  %v7118_v40 = vcombine.high %v1748_v32, %v1756_v33 }
 0x42f   :  { %v8366_v55 = vpop.f32.mrb[12].mxu1  ;;  %v8368_v24 = vpop.f32.mrb[13].mxu0 }
 0x430   :  { %v8370_v57 = vpop.f32.mrb[13].mxu1  ;;  %v4708_v58 = vpop.f32.mrb[14].mxu0  ;;  %5009 = vmatpush1.bf16.msra.mxu0 %v7019_v44  ;;  %v1764_v44 = vld [vmem:[#allocation11 + $0xe38] sm:$0xff] }
 0x431   :  { %v4790_v35 = vpop.f32.mrb[14].mxu1  ;;  %5091 = vmatpush1.bf16.msra.mxu1 %v7021_v46  ;;  %v4709_v61 = vpop.f32.mrb[15].mxu0  ;;  %5010 = vmatprep.subr.bf16.mxu0 %v7036_v47  ;;  %v1772_v46 = vld [vmem:[#allocation11 + $0xe78] sm:$0xff]  ;;  %v7115_v47 = vcombine.low %v1747_v30, %v1755_v31 }
 0x432   :  { %v4791_v63 = vpop.f32.mrb[15].mxu1  ;;  %5092 = vmatprep.subr.bf16.mxu1 %v7038_v50  ;;  %v7117_v50 = vcombine.low %v1748_v32, %v1756_v33  ;;  %v7134_v54 = vcombine.high %v1764_v44, %v1772_v46  ;;  %v1780_v58 = vld [vmem:[#allocation11 + $0xeb8] sm:$0xff]  ;;  %v7131_v35 = vcombine.low %v1763_v42, %v1771_v43  ;;  %v7133_v61 = vcombine.low %v1764_v44, %v1772_v46  ;;  %v7788_v42 = vld [vmem:[%s8833_s7 + $0x10] sm:$0xff]   ;;  %v7790_v44 = vld [vmem:[%s8833_s7 + $0x58] sm:$0xff]  }
 0x433   :  { %v1795_v63 = vld [vmem:[#allocation11 + $0xf30] sm:$0xff]  ;;  %v7782_v31 = vld [vmem:[%s8833_s7 + $0x48] sm:$0xff]   ;;  %v7789_v43 = vld [vmem:[%s8833_s7 + $0x90] sm:$0xff]  }
 0x434   :  { %5011 = vmatpush1.bf16.msra.mxu0 %v7035_v60  ;;  %v1788_v60 = vld [vmem:[#allocation11 + $0xef8] sm:$0xff]  ;;  %v7791_v46 = vld [vmem:[%s8833_s7 + $0xd8] sm:$0xff]  }
 0x435   :  { %5093 = vmatpush1.bf16.msra.mxu1 %v7037_v41  ;;  %5012 = vmatprep.subr.bf16.mxu0 %v7052_v62  ;;  %v7148_v41 = vcombine.high %v1779_v56, %v1787_v13  ;;  %v7150_v62 = vcombine.high %v1780_v58, %v1788_v60  ;;  %v7783_v33 = vld [vmem:[%s8833_s7 + $0xc8] sm:$0xff]   ;;  %v7796_v56 = vld [vmem:[%s8833_s7 + $0x20] sm:$0xff]  }
 0x436   :  { %5094 = vmatprep.subr.bf16.mxu1 %v7054_v0  ;;  %v1803_v0 = vld [vmem:[#allocation11 + $0xf70] sm:$0xff] }
 0x437   :  { %v7797_v13 = vld [vmem:[%s8833_s7 + $0xa0] sm:$0xff]  }
 0x438   :  { %5013 = vmatpush1.bf16.msra.mxu0 %v7051_v5  ;;  %v7149_v5 = vcombine.low %v1780_v58, %v1788_v60  ;;  %v7798_v58 = vld [vmem:[%s8833_s7 + $0x68] sm:$0xff]  }
 0x439   :  { %5095 = vmatpush1.bf16.msra.mxu1 %v7053_v6  ;;  %5014 = vmatprep.subr.bf16.mxu0 %v7068_v7  ;;  %v7164_v6 = vcombine.high %v1795_v63, %v1803_v0  ;;  %v7166_v7 = vcombine.high %v1796_v1, %v1804_v2  ;;  %v7799_v60 = vld [vmem:[%s8833_s7 + $0xe8] sm:$0xff]  }
 0x43a   :  { %5096 = vmatprep.subr.bf16.mxu1 %v7070_v9  ;;  %v1811_v9 = vld [vmem:[#allocation11 + $0xfb0] sm:$0xff] }
 0x43b   :  { %v7179_v20 = vcombine.low %v1811_v9, %v1819_v10 }
 0x43c   :  { %5015 = vmatpush1.bf16.msra.mxu0 %v7067_v14  ;;  %v1840_v14 = vrot.slane %v8372_v3, %v8293_v29 }
 0x43d   :  { %5097 = vmatpush1.bf16.msra.mxu1 %v7069_v15  ;;  %5016 = vmatprep.subr.bf16.mxu0 %v7084_v16  ;;  %v7163_v15 = vcombine.low %v1795_v63, %v1803_v0  ;;  %v7165_v16 = vcombine.low %v1796_v1, %v1804_v2  ;;  %v7801_v63 = vld [vmem:[%s8833_s7 + $0xa8] sm:$0xff]   ;;  %v7802_v0 = vld [vmem:[%s8833_s7 + $0x70] sm:$0xff]   ;;  %v1836_v1 = vrot.slane %v8372_v3, %v8300_v38 }
 0x43e   :  { %5098 = vmatprep.subr.bf16.mxu1 %v7086_v17  ;;  %v7180_v17 = vcombine.high %v1811_v9, %v1819_v10  ;;  %v7495_v45 = vadd.f32 %v8354_v53, %v1840_v14  ;;  %v7781_v53 = vld [vmem:[%s8833_s7 + $0x80] sm:$0xff]   ;;  %v7803_v2 = vld [vmem:[%s8833_s7 + $0xf0] sm:$0xff]   ;;  %v7806_v10 = vld [vmem:[%s8833_s7 + $0x78] sm:$0xff]  }
 0x43f   :  { %v7805_v9 = vld [vmem:[%s8833_s7 + $0xb0] sm:$0xff]   ;;  %v7494_v11 = vadd.f32 %v8350_v8, %v1836_v1  ;;  %v7808_v14 = vld [vmem:[%s8833_s7 + $0x38] sm:$0xff]  }
 0x440   :  { %5017 = vmatpush1.bf16.msra.mxu0 %v7083_v21  ;;  %v7181_v21 = vcombine.low %v1812_v12, %v1820_v36  ;;  %v5124_v30 = vmax.f32 %v7495_v45, 0.0  ;;  %v7807_v12 = vld [vmem:[%s8833_s7 + $0xf8] sm:$0xff]   ;;  %v7837_v1 = vld [vmem:[%s8833_s7 + $0x1b0] sm:$0xff]  }
 0x441   :  { %5099 = vmatpush1.bf16.msra.mxu1 %v7085_v26  ;;  %5018 = vmatprep.subr.bf16.mxu0 %v7100_v27  ;;  %v7778_v26 = vld [vmem:[%s8833_s7 + $0x40] sm:$0xff]   ;;  %v7809_v8 = vld [vmem:[%s8833_s7 + $0xb8] sm:$0xff]  }
 0x442   :  { %5100 = vmatprep.subr.bf16.mxu1 %v7102_v28  ;;  %v7779_v27 = vld [vmem:[%s8833_s7 + $0xc0] sm:$0xff]   ;;  %v5122_v28 = vmax.f32 %v7493_v19, 0.0 }
 0x443   :  { %v7812_v19 = vld [vmem:[%s8833_s7 + $0x100] sm:$0xff]  }
 0x444   :  { %5019 = vmatpush1.bf16.msra.mxu0 %v7099_v34  ;;  %v5138_v32 = vpack.c.bf16 %v5122_v28, %v5122_v28  ;;  %v5140_v34 = vpack.c.bf16 %v5124_v30, %v5124_v30  ;;  %v7815_v28 = vld [vmem:[%s8833_s7 + $0x1c8] sm:$0xff]  }
 0x445   :  { %5101 = vmatpush1.bf16.msra.mxu1 %v7101_v37  ;;  %5020 = vmatprep.subr.bf16.mxu0 %v7116_v39  ;;  %v7784_v37 = vld [vmem:[%s8833_s7 + $0x8] sm:$0xff]  }
 0x446   :  { %5102 = vmatprep.subr.bf16.mxu1 %v7118_v40  ;;  %v7785_v39 = vld [vmem:[%s8833_s7 + $0x88] sm:$0xff]   ;;  %v7786_v40 = vld [vmem:[%s8833_s7 + $0x50] sm:$0xff]  }
 0x448   :  { %5021 = vmatpush1.bf16.msra.mxu0 %v7115_v47  ;;  %v7792_v47 = vld [vmem:[%s8833_s7 + $0x18] sm:$0xff]  }
 0x449   :  { %5103 = vmatpush1.bf16.msra.mxu1 %v7117_v50  ;;  %5022 = vmatprep.subr.bf16.mxu0 %v7132_v51  ;;  %v7793_v50 = vld [vmem:[%s8833_s7 + $0x98] sm:$0xff]   ;;  %v7794_v51 = vld [vmem:[%s8833_s7 + $0x60] sm:$0xff]  }
 0x44a   :  { %5104 = vmatprep.subr.bf16.mxu1 %v7134_v54  ;;  %v7795_v54 = vld [vmem:[%s8833_s7 + $0xe0] sm:$0xff]  }
 0x44c   :  { %5023 = vmatpush1.bf16.msra.mxu0 %v7131_v35  ;;  %v1847_v35 = vsub.s32 5, %v8278_v22 }
 0x44d   :  { %5105 = vmatpush1.bf16.msra.mxu1 %v7133_v61  ;;  %5024 = vmatprep.subr.bf16.mxu0 %v7148_v41  ;;  %v1855_v61 = vsub.s32 7, %v8278_v22  ;;  %v7800_v41 = vld [vmem:[%s8833_s7 + $0x28] sm:$0xff]  }
 0x44e   :  { %5106 = vmatprep.subr.bf16.mxu1 %v7150_v62  ;;  %v1828_v62 = vrot.slane %v8372_v3, %v8281_v23 }
 0x450   :  { %5025 = vmatpush1.bf16.msra.mxu0 %v7147_v4  ;;  %v1848_v4 = vrot.slane %v8372_v3, %v1847_v35 }
 0x451   :  { %5107 = vmatpush1.bf16.msra.mxu1 %v7149_v5  ;;  %5026 = vmatprep.subr.bf16.mxu0 %v7164_v6  ;;  %v1856_v5 = vrot.slane %v8372_v3, %v1855_v61  ;;  %v7804_v6 = vld [vmem:[%s8833_s7 + $0x30] sm:$0xff]  }
 0x452   :  { %5108 = vmatprep.subr.bf16.mxu1 %v7166_v7  ;;  %v7492_v7 = vadd.f32 %v8348_v48, %v1828_v62  ;;  %v7497_v36 = vadd.f32 %v8368_v24, %v1848_v4  ;;  %v7811_v24 = vld [vmem:[%s8833_s7 + $0x1c0] sm:$0xff]   ;;  %v7835_v62 = vld [vmem:[%s8833_s7 + $0x1f0] sm:$0xff]   ;;  %v7839_v4 = vld [vmem:[%s8833_s7 + $0x1f8] sm:$0xff]  }
 0x453   :  { %v7499_v48 = vadd.f32 %v8370_v57, %v1856_v5 }
 0x454   :  { %5027 = vmatpush1.bf16.msra.mxu0 %v7163_v15  ;;  %v5121_v15 = vmax.f32 %v7492_v7, 0.0  ;;  %v5126_v57 = vmax.f32 %v7497_v36, 0.0  ;;  %v7846_v36 = vld [vmem:[%s8833_s7 + $0x248] sm:$0xff]  }
 0x455   :  { %5109 = vmatpush1.bf16.msra.mxu1 %v7165_v16  ;;  %5028 = vmatprep.subr.bf16.mxu0 %v7180_v17  ;;  %v7810_v16 = vld [vmem:[%s8833_s7 + $0x140] sm:$0xff]   ;;  %v5123_v17 = vmax.f32 %v7494_v11, 0.0 }
 0x456   :  { %5110 = vmatprep.subr.bf16.mxu1 %v7182_v18  ;;  %v5128_v18 = vmax.f32 %v7499_v48, 0.0  ;;  %v5137_v45 = vpack.c.bf16 %v5121_v15, %v5121_v15  ;;  %v7848_v15 = vld [vmem:[%s8833_s7 + $0x208] sm:$0xff]  }
 0x458   :  { %5029 = vmatpush1.bf16.msra.mxu0 %v7179_v20  ;;  %v7813_v20 = vld [vmem:[%s8833_s7 + $0x180] sm:$0xff]   ;;  %v5144_v30 = vpack.c.bf16 %v5128_v18, %v5128_v18  ;;  %v7854_v18 = vld [vmem:[%s8833_s7 + $0x258] sm:$0xff]  }
 0x459   :  { %5111 = vmatpush1.bf16.msra.mxu1 %v7181_v21  ;;  %7312 = vmatprep.subr.bf16.mxu0 %v7778_v26  ;;  %v5139_v21 = vpack.c.bf16 %v5123_v17, %v5123_v17  ;;  %v7814_v26 = vld [vmem:[%s8833_s7 + $0x148] sm:$0xff]   ;;  %v7851_v17 = vld [vmem:[%s8833_s7 + $0x2d0] sm:$0xff]  }
 0x45a   :  { %7334 = vmatprep.subr.bf16.mxu1 %v7779_v27  ;;  %v5142_v27 = vpack.c.bf16 %v5126_v57, %v5126_v57  ;;  %v7853_v57 = vld [vmem:[%s8833_s7 + $0x290] sm:$0xff]  }
 0x45b   :  { %5031 = vmatmul.mubr.bf16.vlgmr.msra.gmra.mrb[20].mxu0 %v8330_v59 }
 0x45c   :  { %5113 = vmatmul.mubr.bf16.vlgmr.msra.gmra.mrb[20].mxu1 %v8330_v59  ;;  %7313 = vmatpush3.bf16.msra.mxu0 %v7780_v52  ;;  %v7787_v59 = vld [vmem:[%s8833_s7 + $0xd0] sm:$0xff]   ;;  %v7816_v52 = vld [vmem:[%s8833_s7 + $0x108] sm:$0xff]  }
 0x45d   :  { %6216 = vmatprep.mubr.bf16.mxu0 %v5138_v32  ;;  %7335 = vmatpush3.bf16.msra.mxu1 %v7781_v53  ;;  %v7817_v53 = vld [vmem:[%s8833_s7 + $0x188] sm:$0xff]   ;;  %v7819_v32 = vld [vmem:[%s8833_s7 + $0x1d0] sm:$0xff]  }
 0x45e   :  { %6256 = vmatprep.mubr.bf16.mxu1 %v5140_v34  ;;  %7314 = vmatprep.subr.bf16.mxu0 %v7782_v31  ;;  %v7818_v31 = vld [vmem:[%s8833_s7 + $0x150] sm:$0xff]  }
 0x45f   :  { %7336 = vmatprep.subr.bf16.mxu1 %v7783_v33  ;;  %v7820_v33 = vld [vmem:[%s8833_s7 + $0x110] sm:$0xff]  }
 0x460   :  { %7315 = vmatpush3.bf16.msra.mxu0 %v7784_v37  ;;  %v7821_v34 = vld [vmem:[%s8833_s7 + $0x190] sm:$0xff]   ;;  %v7822_v37 = vld [vmem:[%s8833_s7 + $0x158] sm:$0xff]  }
 0x461   :  { %7337 = vmatpush3.bf16.msra.mxu1 %v7785_v39  ;;  %7316 = vmatprep.subr.bf16.mxu0 %v7786_v40  ;;  %v7823_v39 = vld [vmem:[%s8833_s7 + $0x1d8] sm:$0xff]  }
 0x462   :  { %7338 = vmatprep.subr.bf16.mxu1 %v7787_v59  ;;  %v7824_v40 = vld [vmem:[%s8833_s7 + $0x118] sm:$0xff]  }
 0x463   :  { %v7825_v59 = vld [vmem:[%s8833_s7 + $0x198] sm:$0xff]  }
 0x464   :  { %7317 = vmatpush3.bf16.msra.mxu0 %v7788_v42  ;;  %v7826_v42 = vld [vmem:[%s8833_s7 + $0x160] sm:$0xff]  }
 0x465   :  { %7339 = vmatpush3.bf16.msra.mxu1 %v7789_v43  ;;  %7318 = vmatprep.subr.bf16.mxu0 %v7790_v44  ;;  %v7827_v43 = vld [vmem:[%s8833_s7 + $0x1e0] sm:$0xff]  }
 0x466   :  { %7340 = vmatprep.subr.bf16.mxu1 %v7791_v46  ;;  %v7828_v44 = vld [vmem:[%s8833_s7 + $0x120] sm:$0xff]   ;;  %v1843_v46 = vsub.s32 4, %v8278_v22 }
 0x468   :  { %7319 = vmatpush3.bf16.msra.mxu0 %v7792_v47  ;;  %v7829_v47 = vld [vmem:[%s8833_s7 + $0x1a0] sm:$0xff]  }
 0x469   :  { %7341 = vmatpush3.bf16.msra.mxu1 %v7793_v50  ;;  %7320 = vmatprep.subr.bf16.mxu0 %v7794_v51  ;;  %v7830_v50 = vld [vmem:[%s8833_s7 + $0x168] sm:$0xff]   ;;  %v1851_v51 = vsub.s32 6, %v8278_v22 }
 0x46a   :  { %7342 = vmatprep.subr.bf16.mxu1 %v7795_v54  ;;  %v7831_v54 = vld [vmem:[%s8833_s7 + $0x1e8] sm:$0xff]  }
 0x46c   :  { %7321 = vmatpush3.bf16.msra.mxu0 %v7796_v56  ;;  %v7832_v56 = vld [vmem:[%s8833_s7 + $0x128] sm:$0xff]  }
 0x46d   :  { %7343 = vmatpush3.bf16.msra.mxu1 %v7797_v13  ;;  %7322 = vmatprep.subr.bf16.mxu0 %v7798_v58  ;;  %v1844_v13 = vrot.slane %v8372_v3, %v1843_v46  ;;  %v7833_v58 = vld [vmem:[%s8833_s7 + $0x1a8] sm:$0xff]  }
 0x46e   :  { %7344 = vmatprep.subr.bf16.mxu1 %v7799_v60  ;;  %v7834_v60 = vld [vmem:[%s8833_s7 + $0x170] sm:$0xff]  }
 0x470   :  { %7323 = vmatpush3.bf16.msra.mxu0 %v7800_v41  ;;  %v1852_v41 = vrot.slane %v8372_v3, %v1851_v51  ;;  %v7838_v3 = vld [vmem:[%s8833_s7 + $0x178] sm:$0xff]  }
 0x471   :  { %7345 = vmatpush3.bf16.msra.mxu1 %v7801_v63  ;;  %7324 = vmatprep.subr.bf16.mxu0 %v7802_v0  ;;  %v7836_v63 = vld [vmem:[%s8833_s7 + $0x130] sm:$0xff]   ;;  %v7496_v0 = vadd.f32 %v8364_v49, %v1844_v13  ;;  %v7840_v49 = vld [vmem:[%s8833_s7 + $0x138] sm:$0xff]  }
 0x472   :  { %7346 = vmatprep.subr.bf16.mxu1 %v7803_v2  ;;  %v7498_v2 = vadd.f32 %v8366_v55, %v1852_v41  ;;  %v7842_v55 = vld [vmem:[%s8833_s7 + $0x240] sm:$0xff]   ;;  %v7869_v13 = vld [vmem:[%s8833_s7 + $0x2b0] sm:$0xff]  }
 0x473   :  { %v5125_v5 = vmax.f32 %v7496_v0, 0.0 }
 0x474   :  { %7325 = vmatpush3.bf16.msra.mxu0 %v7804_v6  ;;  %v7841_v6 = vld [vmem:[%s8833_s7 + $0x1b8] sm:$0xff]   ;;  %v5127_v7 = vmax.f32 %v7498_v2, 0.0 }
 0x475   :  { %7347 = vmatpush3.bf16.msra.mxu1 %v7805_v9  ;;  %7326 = vmatprep.subr.bf16.mxu0 %v7806_v10  ;;  %v7843_v9 = vld [vmem:[%s8833_s7 + $0x2c0] sm:$0xff]   ;;  %v5141_v11 = vpack.c.bf16 %v5125_v5, %v5125_v5 }
 0x476   :  { %7348 = vmatprep.subr.bf16.mxu1 %v7807_v12  ;;  %v7844_v10 = vld [vmem:[%s8833_s7 + $0x200] sm:$0xff]   ;;  %v5143_v48 = vpack.c.bf16 %v5127_v7, %v5127_v7 }
 0x477   :  { %v7845_v12 = vld [vmem:[%s8833_s7 + $0x280] sm:$0xff]  }
 0x478   :  { %7327 = vmatpush3.bf16.msra.mxu0 %v7808_v14  ;;  %v7847_v14 = vld [vmem:[%s8833_s7 + $0x2c8] sm:$0xff]   ;;  %v7874_v5 = vld [vmem:[%s8833_s7 + $0x340] sm:$0xff]  }
 0x479   :  { %7349 = vmatpush3.bf16.msra.mxu1 %v7809_v8  ;;  %7356 = vmatprep.subr.bf16.mxu0 %v7810_v16  ;;  %v7849_v8 = vld [vmem:[%s8833_s7 + $0x288] sm:$0xff]   ;;  %v7850_v16 = vld [vmem:[%s8833_s7 + $0x250] sm:$0xff]   ;;  %v7876_v7 = vld [vmem:[%s8833_s7 + $0x300] sm:$0xff]  }
 0x47a   :  { %7378 = vmatprep.subr.bf16.mxu1 %v7811_v24  ;;  %v7852_v24 = vld [vmem:[%s8833_s7 + $0x210] sm:$0xff]  }
 0x47b   :  { %6217 = vmatmul.mubr.bf16.vlgmr.msra.gmra.mrb[24].mxu0 %v5137_v45  ;;  %v7856_v45 = vld [vmem:[%s8833_s7 + $0x218] sm:$0xff]  }
 0x47c   :  { %6257 = vmatmul.mubr.bf16.vlgmr.msra.gmra.mrb[24].mxu1 %v5139_v21  ;;  %7357 = vmatpush3.bf16.msra.mxu0 %v7812_v19  ;;  %v7855_v19 = vld [vmem:[%s8833_s7 + $0x2d8] sm:$0xff]   ;;  %v7858_v21 = vld [vmem:[%s8833_s7 + $0x260] sm:$0xff]  }
 0x47d   :  { %6296 = vmatprep.mubr.bf16.mxu0 %v5142_v27  ;;  %7379 = vmatpush3.bf16.msra.mxu1 %v7813_v20  ;;  %v7857_v20 = vld [vmem:[%s8833_s7 + $0x298] sm:$0xff]   ;;  %v7860_v27 = vld [vmem:[%s8833_s7 + $0x220] sm:$0xff]  }
 0x47e   :  { %6336 = vmatprep.mubr.bf16.mxu1 %v5144_v30  ;;  %7358 = vmatprep.subr.bf16.mxu0 %v7814_v26  ;;  %v7859_v26 = vld [vmem:[%s8833_s7 + $0x2e0] sm:$0xff]   ;;  %v8660_v30 = vld [vmem:[#allocation13 + $0x8] sm:$0xff] }
 0x47f   :  { %7380 = vmatprep.subr.bf16.mxu1 %v7815_v28  ;;  %v7861_v28 = vld [vmem:[%s8833_s7 + $0x2a0] sm:$0xff]  }
 0x480   :  { %7359 = vmatpush3.bf16.msra.mxu0 %v7816_v52  ;;  %v7862_v52 = vld [vmem:[%s8833_s7 + $0x268] sm:$0xff]  }
 0x481   :  { %7381 = vmatpush3.bf16.msra.mxu1 %v7817_v53  ;;  %7360 = vmatprep.subr.bf16.mxu0 %v7818_v31  ;;  %v7863_v53 = vld [vmem:[%s8833_s7 + $0x2e8] sm:$0xff]   ;;  %v1864_v31 = vrot.slane %v8660_v30, %v8286_v25  ;;  %v7866_v25 = vld [vmem:[%s8833_s7 + $0x270] sm:$0xff]  }
 0x482   :  { %7382 = vmatprep.subr.bf16.mxu1 %v7819_v32  ;;  %v7864_v32 = vld [vmem:[%s8833_s7 + $0x228] sm:$0xff]  }
 0x484   :  { %7361 = vmatpush3.bf16.msra.mxu0 %v7820_v33  ;;  %v1860_v33 = vrot.slane %v8660_v30, %v8281_v23  ;;  %v7867_v23 = vld [vmem:[%s8833_s7 + $0x2f0] sm:$0xff]  }
 0x485   :  { %7383 = vmatpush3.bf16.msra.mxu1 %v7821_v34  ;;  %7362 = vmatprep.subr.bf16.mxu0 %v7822_v37  ;;  %v1872_v34 = vrot.slane %v8660_v30, %v8293_v29  ;;  %v7865_v37 = vld [vmem:[%s8833_s7 + $0x2a8] sm:$0xff]  }
 0x486   :  { %7384 = vmatprep.subr.bf16.mxu1 %v7823_v39 }
 0x488   :  { %7363 = vmatpush3.bf16.msra.mxu0 %v7824_v40  ;;  %v1868_v40 = vrot.slane %v8660_v30, %v8300_v38 }
 0x489   :  { %7385 = vmatpush3.bf16.msra.mxu1 %v7825_v59  ;;  %7364 = vmatprep.subr.bf16.mxu0 %v7826_v42 }
 0x48a   :  { %7386 = vmatprep.subr.bf16.mxu1 %v7827_v43 }
 0x48c   :  { %7365 = vmatpush3.bf16.msra.mxu0 %v7828_v44 }
 0x48d   :  { %7387 = vmatpush3.bf16.msra.mxu1 %v7829_v47  ;;  %7366 = vmatprep.subr.bf16.mxu0 %v7830_v50  ;;  %v7868_v47 = vld [vmem:[%s8833_s7 + $0x230] sm:$0xff]  }
 0x48e   :  { %7388 = vmatprep.subr.bf16.mxu1 %v7831_v54 }
 0x490   :  { %7367 = vmatpush3.bf16.msra.mxu0 %v7832_v56 }
 0x491   :  { %7389 = vmatpush3.bf16.msra.mxu1 %v7833_v58  ;;  %7368 = vmatprep.subr.bf16.mxu0 %v7834_v60  ;;  %v7870_v58 = vld [vmem:[%s8833_s7 + $0x278] sm:$0xff]  }
 0x492   :  { %7390 = vmatprep.subr.bf16.mxu1 %v7835_v62 }
 0x494   :  { %7369 = vmatpush3.bf16.msra.mxu0 %v7836_v63  ;;  %v7871_v63 = vld [vmem:[%s8833_s7 + $0x2f8] sm:$0xff]  }
 0x495   :  { %7391 = vmatpush3.bf16.msra.mxu1 %v7837_v1  ;;  %7370 = vmatprep.subr.bf16.mxu0 %v7838_v3  ;;  %v7872_v3 = vld [vmem:[%s8833_s7 + $0x238] sm:$0xff]  }
 0x496   :  { %7392 = vmatprep.subr.bf16.mxu1 %v7839_v4 }
 0x498   :  { %7371 = vmatpush3.bf16.msra.mxu0 %v7840_v49  ;;  %v7873_v49 = vld [vmem:[%s8833_s7 + $0x2b8] sm:$0xff]  }
 0x499   :  { %7393 = vmatpush3.bf16.msra.mxu1 %v7841_v6  ;;  %7400 = vmatprep.subr.bf16.mxu0 %v7842_v55  ;;  %v7875_v55 = vld [vmem:[%s8833_s7 + $0x3c0] sm:$0xff]  }
 0x49a   :  { %7422 = vmatprep.subr.bf16.mxu1 %v7843_v9 }
 0x49b   :  { %6297 = vmatmul.mubr.bf16.vlgmr.msra.gmra.mrb[28].mxu0 %v5141_v11  ;;  %v7878_v11 = vld [vmem:[%s8833_s7 + $0x348] sm:$0xff]  }
 0x49c   :  { %6337 = vmatmul.mubr.bf16.vlgmr.msra.gmra.mrb[28].mxu1 %v5143_v48  ;;  %7401 = vmatpush3.bf16.msra.mxu0 %v7844_v10  ;;  %v7877_v10 = vld [vmem:[%s8833_s7 + $0x380] sm:$0xff]   ;;  %v7880_v48 = vld [vmem:[%s8833_s7 + $0x308] sm:$0xff]  }
 0x49d   :  { %7423 = vmatpush3.bf16.msra.mxu1 %v7845_v12  ;;  %7402 = vmatprep.subr.bf16.mxu0 %v7846_v36  ;;  %v7879_v36 = vld [vmem:[%s8833_s7 + $0x3c8] sm:$0xff]  }
 0x49e   :  { %7424 = vmatprep.subr.bf16.mxu1 %v7847_v14  ;;  %v7881_v14 = vld [vmem:[%s8833_s7 + $0x388] sm:$0xff]  }
 0x4a0   :  { %7403 = vmatpush3.bf16.msra.mxu0 %v7848_v15  ;;  %v7882_v15 = vld [vmem:[%s8833_s7 + $0x350] sm:$0xff]  }
 0x4a1   :  { %7425 = vmatpush3.bf16.msra.mxu1 %v7849_v8  ;;  %7404 = vmatprep.subr.bf16.mxu0 %v7850_v16  ;;  %v7883_v8 = vld [vmem:[%s8833_s7 + $0x3d0] sm:$0xff]  }
 0x4a2   :  { %7426 = vmatprep.subr.bf16.mxu1 %v7851_v17  ;;  %v7884_v16 = vld [vmem:[%s8833_s7 + $0x310] sm:$0xff]  }
 0x4a3   :  { %v7885_v17 = vld [vmem:[%s8833_s7 + $0x390] sm:$0xff]  }
 0x4a4   :  { %7405 = vmatpush3.bf16.msra.mxu0 %v7852_v24  ;;  %v7886_v24 = vld [vmem:[%s8833_s7 + $0x358] sm:$0xff]  }
 0x4a5   :  { %7427 = vmatpush3.bf16.msra.mxu1 %v7853_v57  ;;  %7406 = vmatprep.subr.bf16.mxu0 %v7854_v18  ;;  %v7887_v57 = vld [vmem:[%s8833_s7 + $0x3d8] sm:$0xff]  }
 0x4a6   :  { %7428 = vmatprep.subr.bf16.mxu1 %v7855_v19  ;;  %v7888_v18 = vld [vmem:[%s8833_s7 + $0x318] sm:$0xff]  }
 0x4a7   :  { %v7889_v19 = vld [vmem:[%s8833_s7 + $0x398] sm:$0xff]  }
 0x4a8   :  { %7407 = vmatpush3.bf16.msra.mxu0 %v7856_v45  ;;  %v7890_v45 = vld [vmem:[%s8833_s7 + $0x360] sm:$0xff]  }
 0x4a9   :  { %7429 = vmatpush3.bf16.msra.mxu1 %v7857_v20  ;;  %7408 = vmatprep.subr.bf16.mxu0 %v7858_v21  ;;  %v7891_v20 = vld [vmem:[%s8833_s7 + $0x3e0] sm:$0xff]  }
 0x4aa   :  { %7430 = vmatprep.subr.bf16.mxu1 %v7859_v26  ;;  %v7892_v21 = vld [vmem:[%s8833_s7 + $0x320] sm:$0xff]  }
 0x4ab   :  { %v7893_v26 = vld [vmem:[%s8833_s7 + $0x3a0] sm:$0xff]  }
 0x4ac   :  { %7409 = vmatpush3.bf16.msra.mxu0 %v7860_v27  ;;  %v7894_v27 = vld [vmem:[%s8833_s7 + $0x368] sm:$0xff]  }
 0x4ad   :  { %7431 = vmatpush3.bf16.msra.mxu1 %v7861_v28  ;;  %7410 = vmatprep.subr.bf16.mxu0 %v7862_v52  ;;  %v7895_v28 = vld [vmem:[%s8833_s7 + $0x3e8] sm:$0xff]  }
 0x4ae   :  { %v4868_v39 = vpop.f32.mrb[16].mxu0  ;;  %7432 = vmatprep.subr.bf16.mxu1 %v7863_v53  ;;  %v7896_v52 = vld [vmem:[%s8833_s7 + $0x328] sm:$0xff]  }
 0x4af   :  { %v4950_v59 = vpop.f32.mrb[16].mxu1  ;;  %v4870_v29 = vpop.f32.mrb[17].mxu0  ;;  %v7500_v50 = vadd.f32 %v4868_v39, %v1860_v33  ;;  %v7897_v53 = vld [vmem:[%s8833_s7 + $0x3a8] sm:$0xff]   ;;  %v7900_v33 = vld [vmem:[%s8833_s7 + $0x330] sm:$0xff]   ;;  %v7904_v39 = vld [vmem:[%s8833_s7 + $0x338] sm:$0xff]  }
 0x4b0   :  { %v7501_v42 = vadd.f32 %v4870_v29, %v1864_v31  ;;  %v4952_v43 = vpop.f32.mrb[17].mxu1  ;;  %v4872_v44 = vpop.f32.mrb[18].mxu0  ;;  %7411 = vmatpush3.bf16.msra.mxu0 %v7864_v32  ;;  %v7502_v60 = vadd.f32 %v4950_v59, %v1868_v40  ;;  %v7898_v31 = vld [vmem:[%s8833_s7 + $0x370] sm:$0xff]   ;;  %v7905_v40 = vld [vmem:[%s8833_s7 + $0x3b8] sm:$0xff]   ;;  %v1884_v59 = vrot.slane %v8660_v30, %v1851_v51  ;;  %v1880_v29 = vrot.slane %v8660_v30, %v1847_v35 }
 0x4b1   :  { %v7503_v54 = vadd.f32 %v4952_v43, %v1872_v34  ;;  %v4954_v56 = vpop.f32.mrb[18].mxu1  ;;  %7433 = vmatpush3.bf16.msra.mxu1 %v7865_v37  ;;  %v4873_v38 = vpop.f32.mrb[19].mxu0  ;;  %7412 = vmatprep.subr.bf16.mxu0 %v7866_v25  ;;  %v5129_v2 = vmax.f32 %v7500_v50, 0.0  ;;  %v7899_v32 = vld [vmem:[%s8833_s7 + $0x3f0] sm:$0xff]   ;;  %v7902_v37 = vld [vmem:[%s8833_s7 + $0x378] sm:$0xff]  }
 0x4b2   :  { %v5130_v41 = vmax.f32 %v7501_v42, 0.0  ;;  %v4955_v62 = vpop.f32.mrb[19].mxu1  ;;  %7434 = vmatprep.subr.bf16.mxu1 %v7867_v23  ;;  %v5131_v6 = vmax.f32 %v7502_v60, 0.0  ;;  %v7901_v34 = vld [vmem:[%s8833_s7 + $0x3b0] sm:$0xff]   ;;  %v7903_v25 = vld [vmem:[%s8833_s7 + $0x3f8] sm:$0xff]   ;;  %v1876_v23 = vrot.slane %v8660_v30, %v1843_v46  ;;  %v1888_v42 = vrot.slane %v8660_v30, %v1855_v61  ;;  %s8129_s7 = smov [#allocation16]  }
 0x4b3   :  { %v5132_v0 = vmax.f32 %v7503_v54, 0.0  ;;  %v5145_v9 = vpack.c.bf16 %v5129_v2, %v5129_v2  ;;  %v7183_v2 = vld [vmem:[#allocation14] ss:$0 sm:$0xff]  ;;  %s6512_s13 = sshll.u32 %s8129_s7, 4  ;;  %s6513_s13 = int_to_ptr.vmem [resolvable:$true] %s6512_s13 }
 0x4b4   :  { %v5146_v1 = vpack.c.bf16 %v5130_v41, %v5130_v41  ;;  %7413 = vmatpush3.bf16.msra.mxu0 %v7868_v47  ;;  %v5147_v12 = vpack.c.bf16 %v5131_v6, %v5131_v6  ;;  %s8082_s1 = scalar_lea.vmem %s6513_s13, 128  ;;  %p8087_p9 = scmp.lt.s32.totalorder %s6513_s13, %s6513_s13 }
 0x4b5   :  { %v5148_v4 = vpack.c.bf16 %v5132_v0, %v5132_v0  ;;  %7435 = vmatpush3.bf16.msra.mxu1 %v7869_v13  ;;  %7414 = vmatprep.subr.bf16.mxu0 %v7870_v58  ;;  %p8083_p8 = scmp.ne.s32.totalorder %s6513_s13, %s8082_s1  ;;  %p8088_p10 = scmp.lt.s32.totalorder %s8082_s1, %s8082_s1 }
 0x4b6   :  { %6376 = vmatprep.mubr.bf16.mxu0 %v5146_v1  ;;  %7436 = vmatprep.subr.bf16.mxu1 %v7871_v63 }
 0x4b7   :  { %6416 = vmatprep.mubr.bf16.mxu1 %v5148_v4  ;;  %p8089_p11 = por %p8088_p10, %p8087_p9 }
 0x4b8   :  { %7415 = vmatpush3.bf16.msra.mxu0 %v7872_v3 }
 0x4b9   :  { %7437 = vmatpush3.bf16.msra.mxu1 %v7873_v49  ;;  %7444 = vmatprep.subr.bf16.mxu0 %v7874_v5  ;;  %p8090_p12 = pnand %p8089_p11, %p8083_p8 }
 0x4ba   :  { %7466 = vmatprep.subr.bf16.mxu1 %v7875_v55 }
 0x4bb   :  { %6377 = vmatmul.mubr.bf16.vlgmr.msra.gmra.mrb[32].mxu0 %v5145_v9 }
 0x4bc   :  { %6417 = vmatmul.mubr.bf16.vlgmr.msra.gmra.mrb[32].mxu1 %v5147_v12  ;;  %7445 = vmatpush3.bf16.msra.mxu0 %v7876_v7 }
 0x4bd   :  { %7467 = vmatpush3.bf16.msra.mxu1 %v7877_v10  ;;  %7446 = vmatprep.subr.bf16.mxu0 %v7878_v11 }
 0x4be   :  { %7468 = vmatprep.subr.bf16.mxu1 %v7879_v36 }
 0x4c0   :  { %7447 = vmatpush3.bf16.msra.mxu0 %v7880_v48 }
 0x4c1   :  { %7469 = vmatpush3.bf16.msra.mxu1 %v7881_v14  ;;  %7448 = vmatprep.subr.bf16.mxu0 %v7882_v15 }
 0x4c2   :  { %7470 = vmatprep.subr.bf16.mxu1 %v7883_v8 }
 0x4c4   :  { %7449 = vmatpush3.bf16.msra.mxu0 %v7884_v16 }
 0x4c5   :  { %7471 = vmatpush3.bf16.msra.mxu1 %v7885_v17  ;;  %7450 = vmatprep.subr.bf16.mxu0 %v7886_v24 }
 0x4c6   :  { %7472 = vmatprep.subr.bf16.mxu1 %v7887_v57 }
 0x4c8   :  { %7451 = vmatpush3.bf16.msra.mxu0 %v7888_v18 }
 0x4c9   :  { %7473 = vmatpush3.bf16.msra.mxu1 %v7889_v19  ;;  %7452 = vmatprep.subr.bf16.mxu0 %v7890_v45 }
 0x4ca   :  { %7474 = vmatprep.subr.bf16.mxu1 %v7891_v20 }
 0x4cc   :  { %7453 = vmatpush3.bf16.msra.mxu0 %v7892_v21 }
 0x4cd   :  { %7475 = vmatpush3.bf16.msra.mxu1 %v7893_v26  ;;  %7454 = vmatprep.subr.bf16.mxu0 %v7894_v27 }
 0x4ce   :  { %7476 = vmatprep.subr.bf16.mxu1 %v7895_v28 }
 0x4d0   :  { %7455 = vmatpush3.bf16.msra.mxu0 %v7896_v52 }
 0x4d1   :  { %7477 = vmatpush3.bf16.msra.mxu1 %v7897_v53  ;;  %7456 = vmatprep.subr.bf16.mxu0 %v7898_v31 }
 0x4d2   :  { %7478 = vmatprep.subr.bf16.mxu1 %v7899_v32 }
 0x4d4   :  { %7457 = vmatpush3.bf16.msra.mxu0 %v7900_v33 }
 0x4d5   :  { %7479 = vmatpush3.bf16.msra.mxu1 %v7901_v34  ;;  %7458 = vmatprep.subr.bf16.mxu0 %v7902_v37 }
 0x4d6   :  { %7480 = vmatprep.subr.bf16.mxu1 %v7903_v25 }
 0x4d8   :  { %7459 = vmatpush3.bf16.msra.mxu0 %v7904_v39 }
 0x4d9   :  { %7481 = vmatpush3.bf16.msra.mxu1 %v7905_v40 }
 0x52e   :  { %v5032_v43 = vpop.f32.mrb[20].mxu0 }
 0x52f   :  { %v7504_v44 = vadd.f32 %v5032_v43, %v1876_v23  ;;  %v5114_v47 = vpop.f32.mrb[20].mxu1  ;;  %v5034_v50 = vpop.f32.mrb[21].mxu0 }
 0x530   :  { %v7506_v54 = vadd.f32 %v5114_v47, %v1884_v59  ;;  %v7505_v56 = vadd.f32 %v5034_v50, %v1880_v29  ;;  %v5116_v38 = vpop.f32.mrb[21].mxu1  ;;  %v5036_v46 = vpop.f32.mrb[22].mxu0 }
 0x531   :  { %v5133_v13 = vmax.f32 %v7504_v44, 0.0  ;;  %v7507_v58 = vadd.f32 %v5116_v38, %v1888_v42  ;;  %v5118_v60 = vpop.f32.mrb[22].mxu1  ;;  %v5037_v51 = vpop.f32.mrb[23].mxu0 }
 0x532   :  { %v5135_v41 = vmax.f32 %v7506_v54, 0.0  ;;  %v5134_v62 = vmax.f32 %v7505_v56, 0.0  ;;  %v5119_v63 = vpop.f32.mrb[23].mxu1 }
 0x533   :  { %v5136_v35 = vmax.f32 %v7507_v58, 0.0  ;;  %v5149_v22 = vpack.c.bf16 %v5133_v13, %v5133_v13 }
 0x534   :  { %v5150_v0 = vpack.c.bf16 %v5134_v62, %v5134_v62  ;;  %v5151_v61 = vpack.c.bf16 %v5135_v41, %v5135_v41 }
 0x535   :  { %v5152_v1 = vpack.c.bf16 %v5136_v35, %v5136_v35 }
 0x536   :  { %6456 = vmatprep.mubr.bf16.mxu0 %v5150_v0 }
 0x537   :  { %6496 = vmatprep.mubr.bf16.mxu1 %v5152_v1  ;;  %6457 = vmatmul.mubr.bf16.vlgmr.msra.gmra.mrb[36].mxu0 %v5149_v22 }
 0x538   :  { %6497 = vmatmul.mubr.bf16.vlgmr.msra.gmra.mrb[36].mxu1 %v5151_v61 }
 0x54e   :  { %v7328_v30 = vpop.f32.mrb[24].mxu0 }
 0x54f   :  { %v7350_v3 = vpop.f32.mrb[24].mxu1  ;;  %v7329_v4 = vpop.f32.mrb[25].mxu0 }
 0x550   :  { %v7330_v49 = vadd.f32 %v7329_v4, %v7328_v30  ;;  %v7351_v5 = vpop.f32.mrb[25].mxu1  ;;  %v7331_v6 = vpop.f32.mrb[26].mxu0 }
 0x551   :  { %v7352_v55 = vadd.f32 %v7351_v5, %v7350_v3  ;;  %v7353_v7 = vpop.f32.mrb[26].mxu1  ;;  %v7332_v9 = vpop.f32.mrb[27].mxu0 }
 0x552   :  { %v6219_v10 = vadd.f32 %v7330_v49, %v7183_v2  ;;  %v7354_v11 = vpop.f32.mrb[27].mxu1 }
 0x554   :  { %v6259_v12 = vadd.f32 %v7352_v55, %v6219_v10 }
 0x56e   :  { %v7372_v36 = vpop.f32.mrb[28].mxu0 }
 0x56f   :  { %v7394_v48 = vpop.f32.mrb[28].mxu1  ;;  %v7373_v14 = vpop.f32.mrb[29].mxu0 }
 0x570   :  { %v7374_v15 = vadd.f32 %v7373_v14, %v7372_v36  ;;  %v7395_v8 = vpop.f32.mrb[29].mxu1  ;;  %v7375_v16 = vpop.f32.mrb[30].mxu0 }
 0x571   :  { %v7396_v17 = vadd.f32 %v7395_v8, %v7394_v48  ;;  %v7397_v24 = vpop.f32.mrb[30].mxu1  ;;  %v7376_v57 = vpop.f32.mrb[31].mxu0 }
 0x572   :  { %v6299_v18 = vadd.f32 %v7374_v15, %v6259_v12  ;;  %v7398_v19 = vpop.f32.mrb[31].mxu1 }
 0x574   :  { %v6339_v45 = vadd.f32 %v7396_v17, %v6299_v18 }
 0x58e   :  { %v7416_v20 = vpop.f32.mrb[32].mxu0 }
 0x58f   :  { %v7438_v21 = vpop.f32.mrb[32].mxu1  ;;  %v7417_v26 = vpop.f32.mrb[33].mxu0 }
 0x590   :  { %v7418_v27 = vadd.f32 %v7417_v26, %v7416_v20  ;;  %v7439_v28 = vpop.f32.mrb[33].mxu1  ;;  %v7419_v52 = vpop.f32.mrb[34].mxu0 }
 0x591   :  { %v7440_v53 = vadd.f32 %v7439_v28, %v7438_v21  ;;  %v7441_v31 = vpop.f32.mrb[34].mxu1  ;;  %v7420_v32 = vpop.f32.mrb[35].mxu0 }
 0x592   :  { %v6379_v33 = vadd.f32 %v7418_v27, %v6339_v45  ;;  %v7442_v34 = vpop.f32.mrb[35].mxu1 }
 0x594   :  { %v6419_v37 = vadd.f32 %v7440_v53, %v6379_v33 }
 0x60a   :  { %v7460_v25 = vpop.f32.mrb[36].mxu0 }
 0x60b   :  { %v7482_v39 = vpop.f32.mrb[36].mxu1  ;;  %v7461_v40 = vpop.f32.mrb[37].mxu0 }
 0x60c   :  { %v7462_v23 = vadd.f32 %v7461_v40, %v7460_v25  ;;  %v7483_v59 = vpop.f32.mrb[37].mxu1  ;;  %v7463_v29 = vpop.f32.mrb[38].mxu0 }
 0x60d   :  { %v7484_v42 = vadd.f32 %v7483_v59, %v7482_v39  ;;  %v7485_v43 = vpop.f32.mrb[38].mxu1  ;;  %v7464_v44 = vpop.f32.mrb[39].mxu0 }
 0x60e   :  { %v6459_v47 = vadd.f32 %v7462_v23, %v6419_v37  ;;  %v7486_v50 = vpop.f32.mrb[39].mxu1 }
 0x610   :  { %v6499_v54 = vadd.f32 %v7484_v42, %v6459_v47 }
 0x612   :  { %6505 = vst.msk [vmem:[#allocation16] sm:$0xff] %vm6504_vm1, %v6499_v54 }
 0x613   :  { %8093 = shalt.err (!%p8090_p12)
}
 0x614   :  { %s8094_s10 = scalar_lea.hbm %s8835_s9, 128 }
 0x615   :  { %p8095_p13 = scmp.ne.s32.totalorder %s8835_s9, %s8094_s10  ;;  %p8098_p0 = scmp.lt.u32.totalorder %s8094_s10, %s8835_s9 }
 0x617   :  { %p8100_p1 = pnand %p8098_p0, %p8095_p13 }
 0x619   :  { %8103 = shalt.err (!%p8100_p1)
}
 0x61a   :  { %6515 = dma.vmem_to_hbm [thread:$0]  %s6513_s13, 128, %s8835_s9, [#allocation4]  }
 0x61b   :  { %8114 = dma.done.wait [#allocation4], 128  }
 0x61c   :  { %8115 = vsyncadd [#allocation4], 4294967168 }
 0x61d   :  { %6519 = vsyncpa [#allocation3], 1 }
 0x61e   :  { %6520 = vsyncpa [#allocation6], 1 }
 0x61f   :  { %6521 = vsyncpa [#allocation9], 1 }
 0x620   :  { %6522 = vsyncpa [#allocation12], 1 }
 0x621   :  { %6523 = vsyncpa [#allocation15], 1 }
 0x622   :  { %6524 = vsyncpa [#allocation4], 1 }

</bundles_post_ra>
